<compile_context>
chip_gen: v7x
topology: tpu7x:2x2x1
jax: 0.10.0
libtpu: 0.0.40
codegen_flags: <defaults>
</compile_context>

<pallas_src>
import functools

import numpy as np
import jax
import jax.numpy as jnp
from jax.experimental import pallas as pl
from jax.experimental.pallas import tpu as pltpu

_POOL_SIZES = (1, 2, 3, 6)
_POOL_OFF12 = (0, 1, 3, 6)    # level offsets inside the 12-wide pooled axes
_G_OFF = (0, 1, 5, 14)        # level offsets inside the packed G rows
_G_ROWS = 64                  # 50 used rows + 14 zero-pad rows (lane friendly K)
_BN_EPS = 1e-5


# ---------------------------------------------------------------------------
# hardware-aware sizing helpers
# ---------------------------------------------------------------------------
def _vmem_limit_bytes():
    cap = 64 * 1024 * 1024
    try:
        info = pltpu.get_tpu_info()
        cap = int(getattr(info, "vmem_capacity_bytes", cap))
    except Exception:
        pass
    # Leave headroom for Mosaic's internal scratch: half of physical VMEM,
    # capped at 48 MiB on the big-VMEM (128 MiB) generations.
    return int(min(cap // 2, 48 * 1024 * 1024))


def _pick_row_tile(H, per_row_bytes, budget_bytes):
    # Row tile: a multiple of 8 (sublane) dividing H, as large as VMEM allows.
    if H % 8 != 0:
        return H  # TODO(synk): odd heights fall back to a single untiled row band
    best = 8
    for d in range(8, H + 1, 8):
        if H % d == 0 and d * per_row_bytes <= budget_bytes:
            best = max(best, d)
    return best


# ---------------------------------------------------------------------------
# shape-only constant builders (pooling / bilinear-interp weights)
# ---------------------------------------------------------------------------
def _pool_matrix(out_size, in_size):
    """Row i averages input[start_i:end_i] (PyTorch adaptive_avg_pool bins)."""
    i = jnp.arange(out_size)
    start = (i * in_size) // out_size
    end = ((i + 1) * in_size + out_size - 1) // out_size
    cols = jnp.arange(in_size)
    mask = (cols[None, :] >= start[:, None]) & (cols[None, :] < end[:, None])
    return mask.astype(jnp.float32) / (end - start).astype(jnp.float32)[:, None]


def _interp_matrix(out_size, in_size):
    """Bilinear align_corners=True interpolation weights, shape (out, in)."""
    if in_size == 1:
        return jnp.ones((out_size, 1), jnp.float32)
    if out_size == 1:
        return jnp.zeros((1, in_size), jnp.float32).at[0, 0].set(1.0)
    src = jnp.arange(out_size, dtype=jnp.float32) * ((in_size - 1) / (out_size - 1))
    i0 = jnp.clip(jnp.floor(src).astype(jnp.int32), 0, in_size - 1)
    i1 = jnp.minimum(i0 + 1, in_size - 1)
    w1 = src - i0.astype(jnp.float32)
    rows = jnp.arange(out_size)
    m = jnp.zeros((out_size, in_size), jnp.float32)
    m = m.at[rows, i0].add(1.0 - w1)
    m = m.at[rows, i1].add(w1)
    return m


def _build_pool_mats(H, W, compute_dtype):
    ph = jnp.concatenate([_pool_matrix(k, H) for k in _POOL_SIZES], axis=0)  # (12, H)
    pw = jnp.concatenate([_pool_matrix(k, W) for k in _POOL_SIZES], axis=0)  # (12, W)
    # height weights stay f32 (applied on the VPU), width weights feed the MXU.
    return jnp.transpose(ph).astype(jnp.float32), pw.astype(compute_dtype)


def _build_interp_cols(H, W, compute_dtype):
    blocks = []
    for k in _POOL_SIZES:
        bh = _interp_matrix(H, k)                                   # (H, k)  p index
        bw = _interp_matrix(W, k)                                   # (W, k)  q index
        # column order within a level: j = q*k + p (matches the pooled packing)
        blocks.append(jnp.einsum("hp,wq->hwqp", bh, bw).reshape(H, W, k * k))
    m = jnp.concatenate(blocks, axis=-1)                            # (H, W, 50)
    m = jnp.pad(m, ((0, 0), (0, 0), (0, _G_ROWS - m.shape[-1])))
    return m.astype(compute_dtype)


# ---------------------------------------------------------------------------
# Parameters (PyTorch layout) and BN folding
# ---------------------------------------------------------------------------
def init_params(key, in_channel, out_channel):
    assert in_channel % 4 == 0
    hidden = in_channel // 4

    def conv_bn(k, cin, cout):
        kw, kg, kb, km, kv = jax.random.split(k, 5)
        return {
            "w": 0.1 * jax.random.normal(kw, (cout, cin, 1, 1), jnp.float32),  # OIHW
            "gamma": 1.0 + 0.1 * jax.random.normal(kg, (cout,), jnp.float32),
            "beta": 0.1 * jax.random.normal(kb, (cout,), jnp.float32),
            "mean": 0.1 * jax.random.normal(km, (cout,), jnp.float32),
            "var": 1.0 + 0.5 * jax.random.uniform(kv, (cout,), jnp.float32),
        }

    ks = jax.random.split(key, 5)
    return {
        "conv1": conv_bn(ks[0], in_channel, hidden),
        "conv2": conv_bn(ks[1], in_channel, hidden),
        "conv3": conv_bn(ks[2], in_channel, hidden),
        "conv4": conv_bn(ks[3], in_channel, hidden),
        "out": conv_bn(ks[4], 2 * in_channel, out_channel),
    }


def _fold_bn(p):
    # conv (bias=False) + eval-mode BN  ->  y = (x @ W') + shift, ReLU applied later
    scale = p["gamma"] / jnp.sqrt(p["var"] + _BN_EPS)
    shift = p["beta"] - p["mean"] * scale
    w = jnp.transpose(p["w"][:, :, 0, 0]) * scale[None, :]   # (cin, cout)
    return w, shift


def _prepare_params(params, compute_dtype):
    wps, shifts = [], []
    for name in ("conv1", "conv2", "conv3", "conv4"):
        w, s = _fold_bn(params[name])
        wps.append(w)
        shifts.append(s)
    wp = jnp.stack(wps)                     # (4, C, hidden)   f32
    shiftp = jnp.stack(shifts)              # (4, hidden)      f32
    w_out, shift_out = _fold_bn(params["out"])                 # (2C, Cout), (Cout,)
    C, hidden = wp.shape[1], wp.shape[2]
    wx = w_out[:C].astype(compute_dtype)                       # x's slice of W_out
    wf = jnp.stack([w_out[C + i * hidden: C + (i + 1) * hidden] for i in range(4)])
    return {"wp": wp, "shiftp": shiftp, "wf": wf, "wx": wx,
            "shift_out": shift_out.reshape(1, -1)}


# ---------------------------------------------------------------------------
# Kernel 1: all four adaptive average pools in a single pass over x
# ---------------------------------------------------------------------------
def _pool_kernel(x_ref, pw_ref, ph_ref, o_ref, *, row_tile):
    # x_ref : (1, TH, W, C)         input row band (bf16/f32)
    # pw_ref: (12, W)               width pooling weights, all levels stacked
    # ph_ref: (TH, 12)              height pooling weights for this row band
    # o_ref : (1, 12, 12, C) f32    pooled accumulator, layout [width_bin, height_bin, C]
    @pl.when(pl.program_id(1) == 0)
    def _():
        o_ref[...] = jnp.zeros_like(o_ref)

    ph = ph_ref[...]                                   # (TH, 12)
    pw = pw_ref[...]                                   # (12, W)
    acc = jnp.zeros(o_ref.shape[1:], jnp.float32)      # (12, 12, C)
    for h in range(row_tile):                          # static unroll
        row = x_ref[0, h]                              # (W, C)
        tmp = jnp.dot(pw, row, preferred_element_type=jnp.float32)   # (12_s, C)
        wh = ph[h:h + 1, :]                            # (1, 12_r)
        acc = acc + tmp[:, None, :] * wh[:, :, None]   # outer product on the VPU
    o_ref[...] += acc[None]


def adaptive_pool_all(x_nhwc, pw, phT, row_tile, vmem_limit):
    N, H, W, C = x_nhwc.shape
    kernel = functools.partial(_pool_kernel, row_tile=row_tile)
    return pl.pallas_call(
        kernel,
        out_shape=jax.ShapeDtypeStruct((N, 12, 12, C), jnp.float32),
        grid=(N, H // row_tile),
        in_specs=[
            pl.BlockSpec((1, row_tile, W, C), lambda n, t: (n, t, 0, 0)),
            pl.BlockSpec((12, W), lambda n, t: (0, 0)),
            pl.BlockSpec((row_tile, 12), lambda n, t: (t, 0)),
        ],
        out_specs=pl.BlockSpec((1, 12, 12, C), lambda n, t: (n, 0, 0, 0)),
        compiler_params=pltpu.CompilerParams(
            dimension_semantics=("parallel", "arbitrary"),
            vmem_limit_bytes=vmem_limit,
        ),
    )(x_nhwc, pw, phT)


# ---------------------------------------------------------------------------
# Kernel 2: the four 1x1 conv + BN + ReLU heads, projected onto the output
#           conv's weight blocks  ->  packed G (N, 64, Cout)
# ---------------------------------------------------------------------------
def _project_kernel(pooled_ref, wp_ref, sp_ref, wf_ref, o_ref):
    # pooled_ref: (1, 12, 12, C) f32    wp_ref: (4, C, hidden)   sp_ref: (4, hidden)
    # wf_ref    : (4, hidden, Cout)     o_ref : (1, 64, Cout)
    o_ref[...] = jnp.zeros_like(o_ref)
    for lvl, k in enumerate(_POOL_SIZES):
        off, goff = _POOL_OFF12[lvl], _G_OFF[lvl]
        blk = pooled_ref[0, pl.ds(off, k), pl.ds(off, k), :]       # (k_q, k_p, C)
        blk = blk.reshape(k * k, blk.shape[-1])                    # row j = q*k + p
        feat = jnp.dot(blk, wp_ref[lvl], preferred_element_type=jnp.float32)
        feat = jnp.maximum(feat + sp_ref[pl.ds(lvl, 1), :], 0.0)   # conv+BN+ReLU
        g = jnp.dot(feat, wf_ref[lvl], preferred_element_type=jnp.float32)
        o_ref[0, pl.ds(goff, k * k), :] = g.astype(o_ref.dtype)


def project_levels(pooled, wp, shiftp, wf, compute_dtype, vmem_limit):
    N, _, _, C = pooled.shape
    hidden, Cout = wf.shape[1], wf.shape[2]
    return pl.pallas_call(
        _project_kernel,
        out_shape=jax.ShapeDtypeStruct((N, _G_ROWS, Cout), compute_dtype),
        grid=(N,),
        in_specs=[
            pl.BlockSpec((1, 12, 12, C), lambda n: (n, 0, 0, 0)),
            pl.BlockSpec((4, C, hidden), lambda n: (0, 0, 0)),
            pl.BlockSpec((4, hidden), lambda n: (0, 0)),
            pl.BlockSpec((4, hidden, Cout), lambda n: (0, 0, 0)),
        ],
        out_specs=pl.BlockSpec((1, _G_ROWS, Cout), lambda n: (n, 0, 0)),
        compiler_params=pltpu.CompilerParams(
            dimension_semantics=("parallel",),
            vmem_limit_bytes=vmem_limit,
        ),
    )(pooled, wp, shiftp, wf)


# ---------------------------------------------------------------------------
# Kernel 3: fused output 1x1 conv + BN + ReLU with the bilinear-upsampled
#           pyramid contribution added in-register:  out = ReLU(x@Wx + M@G + b)
# ---------------------------------------------------------------------------
def _out_conv_kernel(x_ref, m_ref, g_ref, wx_ref, b_ref, o_ref, *, row_tile):
    TH, W, C = row_tile, x_ref.shape[2], x_ref.shape[3]
    Cout = o_ref.shape[3]
    x2 = x_ref[...].reshape(TH * W, C)                 # contiguous block, lane dim = C
    m2 = m_ref[...].reshape(TH * W, _G_ROWS)
    acc = jnp.dot(x2, wx_ref[...], preferred_element_type=jnp.float32)
    acc = acc + jnp.dot(m2, g_ref[0], preferred_element_type=jnp.float32)
    y = jnp.maximum(acc + b_ref[...], 0.0)
    o_ref[...] = y.reshape(1, TH, W, Cout).astype(o_ref.dtype)


def fused_out_conv(x_nhwc, m, g, wx, shift_out, row_tile, vmem_limit):
    N, H, W, C = x_nhwc.shape
    Cout = wx.shape[1]
    kernel = functools.partial(_out_conv_kernel, row_tile=row_tile)
    flops = 2 * N * H * W * (C + _G_ROWS) * Cout
    bytes_accessed = int(x_nhwc.size * x_nhwc.dtype.itemsize
                         + N * m.size * m.dtype.itemsize
                         + N * H * W * Cout * 4
                         + wx.size * wx.dtype.itemsize
                         + g.size * g.dtype.itemsize)
    return pl.pallas_call(
        kernel,
        out_shape=jax.ShapeDtypeStruct((N, H, W, Cout), jnp.float32),
        grid=(N, H // row_tile),
        in_specs=[
            pl.BlockSpec((1, row_tile, W, C), lambda n, t: (n, t, 0, 0)),
            pl.BlockSpec((row_tile, W, _G_ROWS), lambda n, t: (t, 0, 0)),
            pl.BlockSpec((1, _G_ROWS, Cout), lambda n, t: (n, 0, 0)),
            pl.BlockSpec((C, Cout), lambda n, t: (0, 0)),
            pl.BlockSpec((1, Cout), lambda n, t: (0, 0)),
        ],
        out_specs=pl.BlockSpec((1, row_tile, W, Cout), lambda n, t: (n, t, 0, 0)),
        compiler_params=pltpu.CompilerParams(
            dimension_semantics=("parallel", "parallel"),
            vmem_limit_bytes=vmem_limit,
        ),
        cost_estimate=pl.CostEstimate(flops=flops, transcendentals=0,
                                      bytes_accessed=bytes_accessed),
    )(x_nhwc, m, g, wx, shift_out)


# ---------------------------------------------------------------------------
# Forward pass (matches PyramidPooling.forward, eval-mode BN), NCHW in/out
# ---------------------------------------------------------------------------
def pyramid_pooling_forward(params, x_nchw, compute_dtype=jnp.bfloat16):
    prep = _prepare_params(params, compute_dtype)
    N, C, H, W = x_nchw.shape
    Cout = prep["wx"].shape[1]

    x = jnp.transpose(x_nchw, (0, 2, 3, 1)).astype(compute_dtype)      # NHWC
    phT, pw = _build_pool_mats(H, W, compute_dtype)
    m = _build_interp_cols(H, W, compute_dtype)

    in_bytes = jnp.dtype(compute_dtype).itemsize
    vmem_limit = _vmem_limit_bytes()
    # double-buffered per-row footprint of the heaviest (output-conv) kernel
    per_row = 2 * W * (C * in_bytes + _G_ROWS * in_bytes + Cout * 4)
    row_tile = _pick_row_tile(H, per_row, int(vmem_limit * 0.6))

    pooled = adaptive_pool_all(x, pw, phT, row_tile, vmem_limit)        # (N,12,12,C) f32
    g = project_levels(pooled, prep["wp"], prep["shiftp"], prep["wf"],
                       compute_dtype, vmem_limit)                       # (N,64,Cout)
    out = fused_out_conv(x, m, g, prep["wx"], prep["shift_out"],
                         row_tile, vmem_limit)                          # (N,H,W,Cout) f32
    return jnp.transpose(out, (0, 3, 1, 2))                             # NCHW


# ---------------------------------------------------------------------------
# Pure-JAX f32 reference (mirrors the PyTorch module, eval-mode BN)
# ---------------------------------------------------------------------------
def reference_forward(params, x_nchw):
    x = x_nchw.astype(jnp.float32)
    N, C, H, W = x.shape

    def convbnrelu(p, h):
        w = p["w"][:, :, 0, 0]
        y = jnp.einsum("oc,nchw->nohw", w, h)
        scale = p["gamma"] / jnp.sqrt(p["var"] + _BN_EPS)
        shift = p["beta"] - p["mean"] * scale
        return jax.nn.relu(y * scale[None, :, None, None] + shift[None, :, None, None])

    def adaptive_pool(h, k):
        hh, ww = h.shape[2], h.shape[3]
        rows = []
        for i in range(k):
            r0, r1 = (i * hh) // k, ((i + 1) * hh + k - 1) // k
            cols = []
            for j in range(k):
                c0, c1 = (j * ww) // k, ((j + 1) * ww + k - 1) // k
                cols.append(jnp.mean(h[:, :, r0:r1, c0:c1], axis=(2, 3)))
            rows.append(jnp.stack(cols, axis=-1))
        return jnp.stack(rows, axis=-2)                                 # (N, C, k, k)

    def upsample(h, size):
        bh = _interp_matrix(size[0], h.shape[2])
        bw = _interp_matrix(size[1], h.shape[3])
        return jnp.einsum("hp,ncpq,wq->nchw", bh, h, bw)

    feats = [x]
    for i, k in enumerate(_POOL_SIZES):
        f = convbnrelu(params[f"conv{i + 1}"], adaptive_pool(x, k))
        feats.append(upsample(f, (H, W)))
    return convbnrelu(params["out"], jnp.concatenate(feats, axis=1))


if __name__ == "__main__":
    key = jax.random.PRNGKey(0)
    kp, kx = jax.random.split(key)

    in_channel, out_channel = 64, 64
    params = init_params(kp, in_channel, out_channel)
    x = jax.random.normal(kx, (2, in_channel, 16, 16), jnp.float32)

    ref = reference_forward(params, x)
    fwd = jax.jit(pyramid_pooling_forward, static_argnames=("compute_dtype",))

    # tight check with f32 operands
    out_f32 = jax.block_until_ready(fwd(params, x, compute_dtype=jnp.float32))
    assert out_f32.shape == (2, out_channel, 16, 16), out_f32.shape
    np.testing.assert_allclose(np.asarray(out_f32), np.asarray(ref), rtol=1e-2, atol=1e-2)

    # performance path: bf16 MXU operands, f32 accumulation
    out_bf16 = jax.block_until_ready(fwd(params, x, compute_dtype=jnp.bfloat16))
    assert out_bf16.shape == (2, out_channel, 16, 16), out_bf16.shape
    assert bool(jnp.all(jnp.isfinite(out_bf16)))
    np.testing.assert_allclose(np.asarray(out_bf16), np.asarray(ref), rtol=0.1, atol=0.1)

    print("KERNEL_OK")
</pallas_src>

<mosaic_0001>
module attributes {stable_mosaic.version = 11 : i64} {
  func.func private @main(%arg0: i32) attributes {dimension_semantics = [#tpu.dimension_semantics<core_parallel>], iteration_bounds = array<i64: 2>, tpu.core_type = #tpu.core_type<sc_scalar_subcore>, window_params = []} {
    return
  }
}

module attributes {stable_mosaic.version = 11 : i64} {
  func.func private @main(%arg0: i32) attributes {dimension_semantics = [#tpu.dimension_semantics<core_parallel>], iteration_bounds = array<i64: 2>, tpu.core_type = #tpu.core_type<sc_scalar_subcore>, window_params = []} {
    return
  }
}

module attributes {stable_mosaic.version = 11 : i64} {
  func.func @_pool_kernel(%arg0: i32, %arg1: i32, %arg2: memref<1x16x16x64xf32, #tpu.memory_space<vmem>>, %arg3: memref<12x16xf32, #tpu.memory_space<vmem>>, %arg4: memref<16x12xf32, #tpu.memory_space<vmem>>, %arg5: memref<1x12x12x64xf32, #tpu.memory_space<vmem>>) attributes {dimension_semantics = [#tpu.dimension_semantics<parallel>, #tpu.dimension_semantics<arbitrary>], iteration_bounds = array<i64: 2, 1>, scalar_prefetch = 0 : i64, scratch_operands = 0 : i64, tpu.core_type = #tpu.core_type<tc>, window_params = [{transform_indices = @transform_0, window_bounds = array<i64: 1, 16, 16, 64>}, {pipeline_mode = #tpu.pipeline_mode<synchronous>, transform_indices = @transform_1, window_bounds = array<i64: 12, 16>}, {transform_indices = @transform_2, window_bounds = array<i64: 16, 12>}, {transform_indices = @transform_3, window_bounds = array<i64: 1, 12, 12, 64>}]} {
    %c0_i32 = arith.constant 0 : i32
    %0 = arith.cmpi eq, %arg1, %c0_i32 : i32
    %1 = arith.extui %0 : i1 to i32
    %c0_i32_0 = arith.constant 0 : i32
    %2 = arith.cmpi ne, %1, %c0_i32_0 : i32
    scf.if %2 {
      %cst_77 = arith.constant 0.000000e+00 : f32
      %170 = vector.broadcast %cst_77 : f32 to vector<1x12x12x64xf32>
      %c0_78 = arith.constant 0 : index
      %c0_79 = arith.constant 0 : index
      %c0_80 = arith.constant 0 : index
      %c0_81 = arith.constant 0 : index
      %171 = vector.load %arg5[%c0_78, %c0_79, %c0_80, %c0_81] : memref<1x12x12x64xf32, #tpu.memory_space<vmem>>, vector<1x12x12x64xf32>
      tpu.vector_store %arg5[%c0_78, %c0_79, %c0_80, %c0_81], %170 {strides = array<i32>} : memref<1x12x12x64xf32, #tpu.memory_space<vmem>>, vector<1x12x12x64xf32>,
    } else {
    }
    %c0 = arith.constant 0 : index
    %c0_1 = arith.constant 0 : index
    %3 = vector.load %arg4[%c0, %c0_1] : memref<16x12xf32, #tpu.memory_space<vmem>>, vector<16x12xf32>
    %c0_2 = arith.constant 0 : index
    %c0_3 = arith.constant 0 : index
    %4 = vector.load %arg3[%c0_2, %c0_3] : memref<12x16xf32, #tpu.memory_space<vmem>>, vector<12x16xf32>
    %cst = arith.constant 0.000000e+00 : f32
    %5 = vector.broadcast %cst : f32 to vector<12x12x64xf32>
    %c0_4 = arith.constant 0 : index
    %c0_5 = arith.constant 0 : index
    %c0_6 = arith.constant 0 : index
    %c0_7 = arith.constant 0 : index
    %6 = vector.load %arg2[%c0_4, %c0_5, %c0_6, %c0_7] : memref<1x16x16x64xf32, #tpu.memory_space<vmem>>, vector<1x1x16x64xf32>
    %7 = vector.shape_cast %6 : vector<1x1x16x64xf32> to vector<16x64xf32>
    %cst_8 = arith.constant dense<0.000000e+00> : vector<12x64xf32>
    %8 = tpu.matmul %4, %7, %cst_8 {dimension_numbers = #tpu.dot_dimension_numbers<[1], [0], [0], [1], [0, 0, 1, 1], [], []>} : vector<12x16xf32>, vector<16x64xf32>, vector<12x64xf32> -> vector<12x64xf32>
    %9 = vector.extract_strided_slice %3 {offsets = [0, 0], sizes = [1, 12], strides = [1, 1]} : vector<16x12xf32> to vector<1x12xf32>
    %10 = vector.shape_cast %8 : vector<12x64xf32> to vector<12x1x64xf32>
    %11 = vector.shape_cast %9 : vector<1x12xf32> to vector<1x12x1xf32>
    %12 = vector.broadcast %10 : vector<12x1x64xf32> to vector<12x12x64xf32>
    %13 = vector.broadcast %11 : vector<1x12x1xf32> to vector<12x12x64xf32>
    %14 = arith.mulf %12, %13 : vector<12x12x64xf32>
    %15 = arith.addf %5, %14 : vector<12x12x64xf32>
    %c0_9 = arith.constant 0 : index
    %c1 = arith.constant 1 : index
    %c0_10 = arith.constant 0 : index
    %c0_11 = arith.constant 0 : index
    %16 = vector.load %arg2[%c0_9, %c1, %c0_10, %c0_11] : memref<1x16x16x64xf32, #tpu.memory_space<vmem>>, vector<1x1x16x64xf32>
    %17 = vector.shape_cast %16 : vector<1x1x16x64xf32> to vector<16x64xf32>
    %cst_12 = arith.constant dense<0.000000e+00> : vector<12x64xf32>
    %18 = tpu.matmul %4, %17, %cst_12 {dimension_numbers = #tpu.dot_dimension_numbers<[1], [0], [0], [1], [0, 0, 1, 1], [], []>} : vector<12x16xf32>, vector<16x64xf32>, vector<12x64xf32> -> vector<12x64xf32>
    %19 = vector.extract_strided_slice %3 {offsets = [1, 0], sizes = [1, 12], strides = [1, 1]} : vector<16x12xf32> to vector<1x12xf32>
    %20 = vector.shape_cast %18 : vector<12x64xf32> to vector<12x1x64xf32>
    %21 = vector.shape_cast %19 : vector<1x12xf32> to vector<1x12x1xf32>
    %22 = vector.broadcast %20 : vector<12x1x64xf32> to vector<12x12x64xf32>
    %23 = vector.broadcast %21 : vector<1x12x1xf32> to vector<12x12x64xf32>
    %24 = arith.mulf %22, %23 : vector<12x12x64xf32>
    %25 = arith.addf %15, %24 : vector<12x12x64xf32>
    %c0_13 = arith.constant 0 : index
    %c2 = arith.constant 2 : index
    %c0_14 = arith.constant 0 : index
    %c0_15 = arith.constant 0 : index
    %26 = vector.load %arg2[%c0_13, %c2, %c0_14, %c0_15] : memref<1x16x16x64xf32, #tpu.memory_space<vmem>>, vector<1x1x16x64xf32>
    %27 = vector.shape_cast %26 : vector<1x1x16x64xf32> to vector<16x64xf32>
    %cst_16 = arith.constant dense<0.000000e+00> : vector<12x64xf32>
    %28 = tpu.matmul %4, %27, %cst_16 {dimension_numbers = #tpu.dot_dimension_numbers<[1], [0], [0], [1], [0, 0, 1, 1], [], []>} : vector<12x16xf32>, vector<16x64xf32>, vector<12x64xf32> -> vector<12x64xf32>
    %29 = vector.extract_strided_slice %3 {offsets = [2, 0], sizes = [1, 12], strides = [1, 1]} : vector<16x12xf32> to vector<1x12xf32>
    %30 = vector.shape_cast %28 : vector<12x64xf32> to vector<12x1x64xf32>
    %31 = vector.shape_cast %29 : vector<1x12xf32> to vector<1x12x1xf32>
    %32 = vector.broadcast %30 : vector<12x1x64xf32> to vector<12x12x64xf32>
    %33 = vector.broadcast %31 : vector<1x12x1xf32> to vector<12x12x64xf32>
    %34 = arith.mulf %32, %33 : vector<12x12x64xf32>
    %35 = arith.addf %25, %34 : vector<12x12x64xf32>
    %c0_17 = arith.constant 0 : index
    %c3 = arith.constant 3 : index
    %c0_18 = arith.constant 0 : index
    %c0_19 = arith.constant 0 : index
    %36 = vector.load %arg2[%c0_17, %c3, %c0_18, %c0_19] : memref<1x16x16x64xf32, #tpu.memory_space<vmem>>, vector<1x1x16x64xf32>
    %37 = vector.shape_cast %36 : vector<1x1x16x64xf32> to vector<16x64xf32>
    %cst_20 = arith.constant dense<0.000000e+00> : vector<12x64xf32>
    %38 = tpu.matmul %4, %37, %cst_20 {dimension_numbers = #tpu.dot_dimension_numbers<[1], [0], [0], [1], [0, 0, 1, 1], [], []>} : vector<12x16xf32>, vector<16x64xf32>, vector<12x64xf32> -> vector<12x64xf32>
    %39 = vector.extract_strided_slice %3 {offsets = [3, 0], sizes = [1, 12], strides = [1, 1]} : vector<16x12xf32> to vector<1x12xf32>
    %40 = vector.shape_cast %38 : vector<12x64xf32> to vector<12x1x64xf32>
    %41 = vector.shape_cast %39 : vector<1x12xf32> to vector<1x12x1xf32>
    %42 = vector.broadcast %40 : vector<12x1x64xf32> to vector<12x12x64xf32>
    %43 = vector.broadcast %41 : vector<1x12x1xf32> to vector<12x12x64xf32>
    %44 = arith.mulf %42, %43 : vector<12x12x64xf32>
    %45 = arith.addf %35, %44 : vector<12x12x64xf32>
    %c0_21 = arith.constant 0 : index
    %c4 = arith.constant 4 : index
    %c0_22 = arith.constant 0 : index
    %c0_23 = arith.constant 0 : index
    %46 = vector.load %arg2[%c0_21, %c4, %c0_22, %c0_23] : memref<1x16x16x64xf32, #tpu.memory_space<vmem>>, vector<1x1x16x64xf32>
    %47 = vector.shape_cast %46 : vector<1x1x16x64xf32> to vector<16x64xf32>
    %cst_24 = arith.constant dense<0.000000e+00> : vector<12x64xf32>
    %48 = tpu.matmul %4, %47, %cst_24 {dimension_numbers = #tpu.dot_dimension_numbers<[1], [0], [0], [1], [0, 0, 1, 1], [], []>} : vector<12x16xf32>, vector<16x64xf32>, vector<12x64xf32> -> vector<12x64xf32>
    %49 = vector.extract_strided_slice %3 {offsets = [4, 0], sizes = [1, 12], strides = [1, 1]} : vector<16x12xf32> to vector<1x12xf32>
    %50 = vector.shape_cast %48 : vector<12x64xf32> to vector<12x1x64xf32>
    %51 = vector.shape_cast %49 : vector<1x12xf32> to vector<1x12x1xf32>
    %52 = vector.broadcast %50 : vector<12x1x64xf32> to vector<12x12x64xf32>
    %53 = vector.broadcast %51 : vector<1x12x1xf32> to vector<12x12x64xf32>
    %54 = arith.mulf %52, %53 : vector<12x12x64xf32>
    %55 = arith.addf %45, %54 : vector<12x12x64xf32>
    %c0_25 = arith.constant 0 : index
    %c5 = arith.constant 5 : index
    %c0_26 = arith.constant 0 : index
    %c0_27 = arith.constant 0 : index
    %56 = vector.load %arg2[%c0_25, %c5, %c0_26, %c0_27] : memref<1x16x16x64xf32, #tpu.memory_space<vmem>>, vector<1x1x16x64xf32>
    %57 = vector.shape_cast %56 : vector<1x1x16x64xf32> to vector<16x64xf32>
    %cst_28 = arith.constant dense<0.000000e+00> : vector<12x64xf32>
    %58 = tpu.matmul %4, %57, %cst_28 {dimension_numbers = #tpu.dot_dimension_numbers<[1], [0], [0], [1], [0, 0, 1, 1], [], []>} : vector<12x16xf32>, vector<16x64xf32>, vector<12x64xf32> -> vector<12x64xf32>
    %59 = vector.extract_strided_slice %3 {offsets = [5, 0], sizes = [1, 12], strides = [1, 1]} : vector<16x12xf32> to vector<1x12xf32>
    %60 = vector.shape_cast %58 : vector<12x64xf32> to vector<12x1x64xf32>
    %61 = vector.shape_cast %59 : vector<1x12xf32> to vector<1x12x1xf32>
    %62 = vector.broadcast %60 : vector<12x1x64xf32> to vector<12x12x64xf32>
    %63 = vector.broadcast %61 : vector<1x12x1xf32> to vector<12x12x64xf32>
    %64 = arith.mulf %62, %63 : vector<12x12x64xf32>
    %65 = arith.addf %55, %64 : vector<12x12x64xf32>
    %c0_29 = arith.constant 0 : index
    %c6 = arith.constant 6 : index
    %c0_30 = arith.constant 0 : index
    %c0_31 = arith.constant 0 : index
    %66 = vector.load %arg2[%c0_29, %c6, %c0_30, %c0_31] : memref<1x16x16x64xf32, #tpu.memory_space<vmem>>, vector<1x1x16x64xf32>
    %67 = vector.shape_cast %66 : vector<1x1x16x64xf32> to vector<16x64xf32>
    %cst_32 = arith.constant dense<0.000000e+00> : vector<12x64xf32>
    %68 = tpu.matmul %4, %67, %cst_32 {dimension_numbers = #tpu.dot_dimension_numbers<[1], [0], [0], [1], [0, 0, 1, 1], [], []>} : vector<12x16xf32>, vector<16x64xf32>, vector<12x64xf32> -> vector<12x64xf32>
    %69 = vector.extract_strided_slice %3 {offsets = [6, 0], sizes = [1, 12], strides = [1, 1]} : vector<16x12xf32> to vector<1x12xf32>
    %70 = vector.shape_cast %68 : vector<12x64xf32> to vector<12x1x64xf32>
    %71 = vector.shape_cast %69 : vector<1x12xf32> to vector<1x12x1xf32>
    %72 = vector.broadcast %70 : vector<12x1x64xf32> to vector<12x12x64xf32>
    %73 = vector.broadcast %71 : vector<1x12x1xf32> to vector<12x12x64xf32>
    %74 = arith.mulf %72, %73 : vector<12x12x64xf32>
    %75 = arith.addf %65, %74 : vector<12x12x64xf32>
    %c0_33 = arith.constant 0 : index
    %c7 = arith.constant 7 : index
    %c0_34 = arith.constant 0 : index
    %c0_35 = arith.constant 0 : index
    %76 = vector.load %arg2[%c0_33, %c7, %c0_34, %c0_35] : memref<1x16x16x64xf32, #tpu.memory_space<vmem>>, vector<1x1x16x64xf32>
    %77 = vector.shape_cast %76 : vector<1x1x16x64xf32> to vector<16x64xf32>
    %cst_36 = arith.constant dense<0.000000e+00> : vector<12x64xf32>
    %78 = tpu.matmul %4, %77, %cst_36 {dimension_numbers = #tpu.dot_dimension_numbers<[1], [0], [0], [1], [0, 0, 1, 1], [], []>} : vector<12x16xf32>, vector<16x64xf32>, vector<12x64xf32> -> vector<12x64xf32>
    %79 = vector.extract_strided_slice %3 {offsets = [7, 0], sizes = [1, 12], strides = [1, 1]} : vector<16x12xf32> to vector<1x12xf32>
    %80 = vector.shape_cast %78 : vector<12x64xf32> to vector<12x1x64xf32>
    %81 = vector.shape_cast %79 : vector<1x12xf32> to vector<1x12x1xf32>
    %82 = vector.broadcast %80 : vector<12x1x64xf32> to vector<12x12x64xf32>
    %83 = vector.broadcast %81 : vector<1x12x1xf32> to vector<12x12x64xf32>
    %84 = arith.mulf %82, %83 : vector<12x12x64xf32>
    %85 = arith.addf %75, %84 : vector<12x12x64xf32>
    %c0_37 = arith.constant 0 : index
    %c8 = arith.constant 8 : index
    %c0_38 = arith.constant 0 : index
    %c0_39 = arith.constant 0 : index
    %86 = vector.load %arg2[%c0_37, %c8, %c0_38, %c0_39] : memref<1x16x16x64xf32, #tpu.memory_space<vmem>>, vector<1x1x16x64xf32>
    %87 = vector.shape_cast %86 : vector<1x1x16x64xf32> to vector<16x64xf32>
    %cst_40 = arith.constant dense<0.000000e+00> : vector<12x64xf32>
    %88 = tpu.matmul %4, %87, %cst_40 {dimension_numbers = #tpu.dot_dimension_numbers<[1], [0], [0], [1], [0, 0, 1, 1], [], []>} : vector<12x16xf32>, vector<16x64xf32>, vector<12x64xf32> -> vector<12x64xf32>
    %89 = vector.extract_strided_slice %3 {offsets = [8, 0], sizes = [1, 12], strides = [1, 1]} : vector<16x12xf32> to vector<1x12xf32>
    %90 = vector.shape_cast %88 : vector<12x64xf32> to vector<12x1x64xf32>
    %91 = vector.shape_cast %89 : vector<1x12xf32> to vector<1x12x1xf32>
    %92 = vector.broadcast %90 : vector<12x1x64xf32> to vector<12x12x64xf32>
    %93 = vector.broadcast %91 : vector<1x12x1xf32> to vector<12x12x64xf32>
    %94 = arith.mulf %92, %93 : vector<12x12x64xf32>
    %95 = arith.addf %85, %94 : vector<12x12x64xf32>
    %c0_41 = arith.constant 0 : index
    %c9 = arith.constant 9 : index
    %c0_42 = arith.constant 0 : index
    %c0_43 = arith.constant 0 : index
    %96 = vector.load %arg2[%c0_41, %c9, %c0_42, %c0_43] : memref<1x16x16x64xf32, #tpu.memory_space<vmem>>, vector<1x1x16x64xf32>
    %97 = vector.shape_cast %96 : vector<1x1x16x64xf32> to vector<16x64xf32>
    %cst_44 = arith.constant dense<0.000000e+00> : vector<12x64xf32>
    %98 = tpu.matmul %4, %97, %cst_44 {dimension_numbers = #tpu.dot_dimension_numbers<[1], [0], [0], [1], [0, 0, 1, 1], [], []>} : vector<12x16xf32>, vector<16x64xf32>, vector<12x64xf32> -> vector<12x64xf32>
    %99 = vector.extract_strided_slice %3 {offsets = [9, 0], sizes = [1, 12], strides = [1, 1]} : vector<16x12xf32> to vector<1x12xf32>
    %100 = vector.shape_cast %98 : vector<12x64xf32> to vector<12x1x64xf32>
    %101 = vector.shape_cast %99 : vector<1x12xf32> to vector<1x12x1xf32>
    %102 = vector.broadcast %100 : vector<12x1x64xf32> to vector<12x12x64xf32>
    %103 = vector.broadcast %101 : vector<1x12x1xf32> to vector<12x12x64xf32>
    %104 = arith.mulf %102, %103 : vector<12x12x64xf32>
    %105 = arith.addf %95, %104 : vector<12x12x64xf32>
    %c0_45 = arith.constant 0 : index
    %c10 = arith.constant 10 : index
    %c0_46 = arith.constant 0 : index
    %c0_47 = arith.constant 0 : index
    %106 = vector.load %arg2[%c0_45, %c10, %c0_46, %c0_47] : memref<1x16x16x64xf32, #tpu.memory_space<vmem>>, vector<1x1x16x64xf32>
    %107 = vector.shape_cast %106 : vector<1x1x16x64xf32> to vector<16x64xf32>
    %cst_48 = arith.constant dense<0.000000e+00> : vector<12x64xf32>
    %108 = tpu.matmul %4, %107, %cst_48 {dimension_numbers = #tpu.dot_dimension_numbers<[1], [0], [0], [1], [0, 0, 1, 1], [], []>} : vector<12x16xf32>, vector<16x64xf32>, vector<12x64xf32> -> vector<12x64xf32>
    %109 = vector.extract_strided_slice %3 {offsets = [10, 0], sizes = [1, 12], strides = [1, 1]} : vector<16x12xf32> to vector<1x12xf32>
    %110 = vector.shape_cast %108 : vector<12x64xf32> to vector<12x1x64xf32>
    %111 = vector.shape_cast %109 : vector<1x12xf32> to vector<1x12x1xf32>
    %112 = vector.broadcast %110 : vector<12x1x64xf32> to vector<12x12x64xf32>
    %113 = vector.broadcast %111 : vector<1x12x1xf32> to vector<12x12x64xf32>
    %114 = arith.mulf %112, %113 : vector<12x12x64xf32>
    %115 = arith.addf %105, %114 : vector<12x12x64xf32>
    %c0_49 = arith.constant 0 : index
    %c11 = arith.constant 11 : index
    %c0_50 = arith.constant 0 : index
    %c0_51 = arith.constant 0 : index
    %116 = vector.load %arg2[%c0_49, %c11, %c0_50, %c0_51] : memref<1x16x16x64xf32, #tpu.memory_space<vmem>>, vector<1x1x16x64xf32>
    %117 = vector.shape_cast %116 : vector<1x1x16x64xf32> to vector<16x64xf32>
    %cst_52 = arith.constant dense<0.000000e+00> : vector<12x64xf32>
    %118 = tpu.matmul %4, %117, %cst_52 {dimension_numbers = #tpu.dot_dimension_numbers<[1], [0], [0], [1], [0, 0, 1, 1], [], []>} : vector<12x16xf32>, vector<16x64xf32>, vector<12x64xf32> -> vector<12x64xf32>
    %119 = vector.extract_strided_slice %3 {offsets = [11, 0], sizes = [1, 12], strides = [1, 1]} : vector<16x12xf32> to vector<1x12xf32>
    %120 = vector.shape_cast %118 : vector<12x64xf32> to vector<12x1x64xf32>
    %121 = vector.shape_cast %119 : vector<1x12xf32> to vector<1x12x1xf32>
    %122 = vector.broadcast %120 : vector<12x1x64xf32> to vector<12x12x64xf32>
    %123 = vector.broadcast %121 : vector<1x12x1xf32> to vector<12x12x64xf32>
    %124 = arith.mulf %122, %123 : vector<12x12x64xf32>
    %125 = arith.addf %115, %124 : vector<12x12x64xf32>
    %c0_53 = arith.constant 0 : index
    %c12 = arith.constant 12 : index
    %c0_54 = arith.constant 0 : index
    %c0_55 = arith.constant 0 : index
    %126 = vector.load %arg2[%c0_53, %c12, %c0_54, %c0_55] : memref<1x16x16x64xf32, #tpu.memory_space<vmem>>, vector<1x1x16x64xf32>
    %127 = vector.shape_cast %126 : vector<1x1x16x64xf32> to vector<16x64xf32>
    %cst_56 = arith.constant dense<0.000000e+00> : vector<12x64xf32>
    %128 = tpu.matmul %4, %127, %cst_56 {dimension_numbers = #tpu.dot_dimension_numbers<[1], [0], [0], [1], [0, 0, 1, 1], [], []>} : vector<12x16xf32>, vector<16x64xf32>, vector<12x64xf32> -> vector<12x64xf32>
    %129 = vector.extract_strided_slice %3 {offsets = [12, 0], sizes = [1, 12], strides = [1, 1]} : vector<16x12xf32> to vector<1x12xf32>
    %130 = vector.shape_cast %128 : vector<12x64xf32> to vector<12x1x64xf32>
    %131 = vector.shape_cast %129 : vector<1x12xf32> to vector<1x12x1xf32>
    %132 = vector.broadcast %130 : vector<12x1x64xf32> to vector<12x12x64xf32>
    %133 = vector.broadcast %131 : vector<1x12x1xf32> to vector<12x12x64xf32>
    %134 = arith.mulf %132, %133 : vector<12x12x64xf32>
    %135 = arith.addf %125, %134 : vector<12x12x64xf32>
    %c0_57 = arith.constant 0 : index
    %c13 = arith.constant 13 : index
    %c0_58 = arith.constant 0 : index
    %c0_59 = arith.constant 0 : index
    %136 = vector.load %arg2[%c0_57, %c13, %c0_58, %c0_59] : memref<1x16x16x64xf32, #tpu.memory_space<vmem>>, vector<1x1x16x64xf32>
    %137 = vector.shape_cast %136 : vector<1x1x16x64xf32> to vector<16x64xf32>
    %cst_60 = arith.constant dense<0.000000e+00> : vector<12x64xf32>
    %138 = tpu.matmul %4, %137, %cst_60 {dimension_numbers = #tpu.dot_dimension_numbers<[1], [0], [0], [1], [0, 0, 1, 1], [], []>} : vector<12x16xf32>, vector<16x64xf32>, vector<12x64xf32> -> vector<12x64xf32>
    %139 = vector.extract_strided_slice %3 {offsets = [13, 0], sizes = [1, 12], strides = [1, 1]} : vector<16x12xf32> to vector<1x12xf32>
    %140 = vector.shape_cast %138 : vector<12x64xf32> to vector<12x1x64xf32>
    %141 = vector.shape_cast %139 : vector<1x12xf32> to vector<1x12x1xf32>
    %142 = vector.broadcast %140 : vector<12x1x64xf32> to vector<12x12x64xf32>
    %143 = vector.broadcast %141 : vector<1x12x1xf32> to vector<12x12x64xf32>
    %144 = arith.mulf %142, %143 : vector<12x12x64xf32>
    %145 = arith.addf %135, %144 : vector<12x12x64xf32>
    %c0_61 = arith.constant 0 : index
    %c14 = arith.constant 14 : index
    %c0_62 = arith.constant 0 : index
    %c0_63 = arith.constant 0 : index
    %146 = vector.load %arg2[%c0_61, %c14, %c0_62, %c0_63] : memref<1x16x16x64xf32, #tpu.memory_space<vmem>>, vector<1x1x16x64xf32>
    %147 = vector.shape_cast %146 : vector<1x1x16x64xf32> to vector<16x64xf32>
    %cst_64 = arith.constant dense<0.000000e+00> : vector<12x64xf32>
    %148 = tpu.matmul %4, %147, %cst_64 {dimension_numbers = #tpu.dot_dimension_numbers<[1], [0], [0], [1], [0, 0, 1, 1], [], []>} : vector<12x16xf32>, vector<16x64xf32>, vector<12x64xf32> -> vector<12x64xf32>
    %149 = vector.extract_strided_slice %3 {offsets = [14, 0], sizes = [1, 12], strides = [1, 1]} : vector<16x12xf32> to vector<1x12xf32>
    %150 = vector.shape_cast %148 : vector<12x64xf32> to vector<12x1x64xf32>
    %151 = vector.shape_cast %149 : vector<1x12xf32> to vector<1x12x1xf32>
    %152 = vector.broadcast %150 : vector<12x1x64xf32> to vector<12x12x64xf32>
    %153 = vector.broadcast %151 : vector<1x12x1xf32> to vector<12x12x64xf32>
    %154 = arith.mulf %152, %153 : vector<12x12x64xf32>
    %155 = arith.addf %145, %154 : vector<12x12x64xf32>
    %c0_65 = arith.constant 0 : index
    %c15 = arith.constant 15 : index
    %c0_66 = arith.constant 0 : index
    %c0_67 = arith.constant 0 : index
    %156 = vector.load %arg2[%c0_65, %c15, %c0_66, %c0_67] : memref<1x16x16x64xf32, #tpu.memory_space<vmem>>, vector<1x1x16x64xf32>
    %157 = vector.shape_cast %156 : vector<1x1x16x64xf32> to vector<16x64xf32>
    %cst_68 = arith.constant dense<0.000000e+00> : vector<12x64xf32>
    %158 = tpu.matmul %4, %157, %cst_68 {dimension_numbers = #tpu.dot_dimension_numbers<[1], [0], [0], [1], [0, 0, 1, 1], [], []>} : vector<12x16xf32>, vector<16x64xf32>, vector<12x64xf32> -> vector<12x64xf32>
    %159 = vector.extract_strided_slice %3 {offsets = [15, 0], sizes = [1, 12], strides = [1, 1]} : vector<16x12xf32> to vector<1x12xf32>
    %160 = vector.shape_cast %158 : vector<12x64xf32> to vector<12x1x64xf32>
    %161 = vector.shape_cast %159 : vector<1x12xf32> to vector<1x12x1xf32>
    %162 = vector.broadcast %160 : vector<12x1x64xf32> to vector<12x12x64xf32>
    %163 = vector.broadcast %161 : vector<1x12x1xf32> to vector<12x12x64xf32>
    %164 = arith.mulf %162, %163 : vector<12x12x64xf32>
    %165 = arith.addf %155, %164 : vector<12x12x64xf32>
    %c0_69 = arith.constant 0 : index
    %c0_70 = arith.constant 0 : index
    %c0_71 = arith.constant 0 : index
    %c0_72 = arith.constant 0 : index
    %166 = vector.load %arg5[%c0_69, %c0_70, %c0_71, %c0_72] : memref<1x12x12x64xf32, #tpu.memory_space<vmem>>, vector<1x12x12x64xf32>
    %167 = vector.shape_cast %165 : vector<12x12x64xf32> to vector<1x12x12x64xf32>
    %168 = arith.addf %166, %167 : vector<1x12x12x64xf32>
    %c0_73 = arith.constant 0 : index
    %c0_74 = arith.constant 0 : index
    %c0_75 = arith.constant 0 : index
    %c0_76 = arith.constant 0 : index
    %169 = vector.load %arg5[%c0_73, %c0_74, %c0_75, %c0_76] : memref<1x12x12x64xf32, #tpu.memory_space<vmem>>, vector<1x12x12x64xf32>
    tpu.vector_store %arg5[%c0_73, %c0_74, %c0_75, %c0_76], %168 {strides = array<i32>} : memref<1x12x12x64xf32, #tpu.memory_space<vmem>>, vector<1x12x12x64xf32>,
    return
  }
  func.func @transform_0(%arg0: i32, %arg1: i32) -> (i32, i32, i32, i32) {
    %c0_i32 = arith.constant 0 : i32
    %c0_i32_0 = arith.constant 0 : i32
    %c0_i32_1 = arith.constant 0 : i32
    return %arg0, %arg1, %c0_i32, %c0_i32_0 : i32, i32, i32, i32
  }
  func.func @transform_1(%arg0: i32, %arg1: i32) -> (i32, i32) {
    %c0_i32 = arith.constant 0 : i32
    %c0_i32_0 = arith.constant 0 : i32
    %c0_i32_1 = arith.constant 0 : i32
    return %c0_i32, %c0_i32_0 : i32, i32
  }
  func.func @transform_2(%arg0: i32, %arg1: i32) -> (i32, i32) {
    %c0_i32 = arith.constant 0 : i32
    %c0_i32_0 = arith.constant 0 : i32
    return %arg1, %c0_i32 : i32, i32
  }
  func.func @transform_3(%arg0: i32, %arg1: i32) -> (i32, i32, i32, i32) {
    %c0_i32 = arith.constant 0 : i32
    %c0_i32_0 = arith.constant 0 : i32
    %c0_i32_1 = arith.constant 0 : i32
    %c0_i32_2 = arith.constant 0 : i32
    return %arg0, %c0_i32, %c0_i32_0, %c0_i32_1 : i32, i32, i32, i32
  }
}

module attributes {stable_mosaic.version = 11 : i64} {
  func.func @_project_kernel(%arg0: i32, %arg1: memref<1x12x12x64xf32, #tpu.memory_space<vmem>>, %arg2: memref<4x64x16xf32, #tpu.memory_space<vmem>>, %arg3: memref<4x16xf32, #tpu.memory_space<vmem>>, %arg4: memref<4x16x64xf32, #tpu.memory_space<vmem>>, %arg5: memref<1x64x64xf32, #tpu.memory_space<vmem>>) attributes {dimension_semantics = [#tpu.dimension_semantics<parallel>], iteration_bounds = array<i64: 2>, scalar_prefetch = 0 : i64, scratch_operands = 0 : i64, tpu.core_type = #tpu.core_type<tc>, window_params = [{transform_indices = @transform_0, window_bounds = array<i64: 1, 12, 12, 64>}, {pipeline_mode = #tpu.pipeline_mode<synchronous>, transform_indices = @transform_1, window_bounds = array<i64: 4, 64, 16>}, {pipeline_mode = #tpu.pipeline_mode<synchronous>, transform_indices = @transform_2, window_bounds = array<i64: 4, 16>}, {pipeline_mode = #tpu.pipeline_mode<synchronous>, transform_indices = @transform_3, window_bounds = array<i64: 4, 16, 64>}, {transform_indices = @transform_4, window_bounds = array<i64: 1, 64, 64>}]} {
    %cst = arith.constant 0.000000e+00 : f32
    %0 = vector.broadcast %cst : f32 to vector<1x64x64xf32>
    %c0 = arith.constant 0 : index
    %c0_0 = arith.constant 0 : index
    %c0_1 = arith.constant 0 : index
    %1 = vector.load %arg5[%c0, %c0_0, %c0_1] : memref<1x64x64xf32, #tpu.memory_space<vmem>>, vector<1x64x64xf32>
    tpu.vector_store %arg5[%c0, %c0_0, %c0_1], %0 {strides = array<i32>} : memref<1x64x64xf32, #tpu.memory_space<vmem>>, vector<1x64x64xf32>,
    %c0_2 = arith.constant 0 : index
    %c0_3 = arith.constant 0 : index
    %c0_4 = arith.constant 0 : index
    %c0_5 = arith.constant 0 : index
    %2 = vector.load %arg1[%c0_2, %c0_3, %c0_4, %c0_5] : memref<1x12x12x64xf32, #tpu.memory_space<vmem>>, vector<1x1x1x64xf32>
    %3 = vector.shape_cast %2 : vector<1x1x1x64xf32> to vector<1x1x64xf32>
    %4 = vector.shape_cast %3 : vector<1x1x64xf32> to vector<1x64xf32>
    %c0_6 = arith.constant 0 : index
    %c0_7 = arith.constant 0 : index
    %c0_8 = arith.constant 0 : index
    %5 = vector.load %arg2[%c0_6, %c0_7, %c0_8] : memref<4x64x16xf32, #tpu.memory_space<vmem>>, vector<1x64x16xf32>
    %6 = vector.shape_cast %5 : vector<1x64x16xf32> to vector<64x16xf32>
    %cst_9 = arith.constant dense<0.000000e+00> : vector<1x16xf32>
    %7 = tpu.matmul %4, %6, %cst_9 {dimension_numbers = #tpu.dot_dimension_numbers<[1], [0], [0], [1], [0, 0, 1, 1], [], []>} : vector<1x64xf32>, vector<64x16xf32>, vector<1x16xf32> -> vector<1x16xf32>
    %c0_10 = arith.constant 0 : index
    %c0_11 = arith.constant 0 : index
    %8 = vector.load %arg3[%c0_10, %c0_11] : memref<4x16xf32, #tpu.memory_space<vmem>>, vector<1x16xf32>
    %9 = arith.addf %7, %8 : vector<1x16xf32>
    %cst_12 = arith.constant 0.000000e+00 : f32
    %10 = vector.broadcast %cst_12 : f32 to vector<1x16xf32>
    %11 = arith.maximumf %9, %10 : vector<1x16xf32>
    %c0_13 = arith.constant 0 : index
    %c0_14 = arith.constant 0 : index
    %c0_15 = arith.constant 0 : index
    %12 = vector.load %arg4[%c0_13, %c0_14, %c0_15] : memref<4x16x64xf32, #tpu.memory_space<vmem>>, vector<1x16x64xf32>
    %13 = vector.shape_cast %12 : vector<1x16x64xf32> to vector<16x64xf32>
    %cst_16 = arith.constant dense<0.000000e+00> : vector<1x64xf32>
    %14 = tpu.matmul %11, %13, %cst_16 {dimension_numbers = #tpu.dot_dimension_numbers<[1], [0], [0], [1], [0, 0, 1, 1], [], []>} : vector<1x16xf32>, vector<16x64xf32>, vector<1x64xf32> -> vector<1x64xf32>
    %c0_17 = arith.constant 0 : index
    %c0_18 = arith.constant 0 : index
    %c0_19 = arith.constant 0 : index
    %15 = vector.load %arg5[%c0_17, %c0_18, %c0_19] : memref<1x64x64xf32, #tpu.memory_space<vmem>>, vector<1x1x64xf32>
    %16 = vector.shape_cast %15 : vector<1x1x64xf32> to vector<1x64xf32>
    %17 = vector.shape_cast %14 : vector<1x64xf32> to vector<1x1x64xf32>
    tpu.vector_store %arg5[%c0_17, %c0_18, %c0_19], %17 {strides = array<i32>} : memref<1x64x64xf32, #tpu.memory_space<vmem>>, vector<1x1x64xf32>,
    %c0_20 = arith.constant 0 : index
    %c1 = arith.constant 1 : index
    %c1_21 = arith.constant 1 : index
    %c0_22 = arith.constant 0 : index
    %18 = vector.load %arg1[%c0_20, %c1, %c1_21, %c0_22] : memref<1x12x12x64xf32, #tpu.memory_space<vmem>>, vector<1x2x2x64xf32>
    %19 = vector.shape_cast %18 : vector<1x2x2x64xf32> to vector<2x2x64xf32>
    %20 = vector.shape_cast %19 : vector<2x2x64xf32> to vector<4x64xf32>
    %c1_23 = arith.constant 1 : index
    %c0_24 = arith.constant 0 : index
    %c0_25 = arith.constant 0 : index
    %21 = vector.load %arg2[%c1_23, %c0_24, %c0_25] : memref<4x64x16xf32, #tpu.memory_space<vmem>>, vector<1x64x16xf32>
    %22 = vector.shape_cast %21 : vector<1x64x16xf32> to vector<64x16xf32>
    %cst_26 = arith.constant dense<0.000000e+00> : vector<4x16xf32>
    %23 = tpu.matmul %20, %22, %cst_26 {dimension_numbers = #tpu.dot_dimension_numbers<[1], [0], [0], [1], [0, 0, 1, 1], [], []>} : vector<4x64xf32>, vector<64x16xf32>, vector<4x16xf32> -> vector<4x16xf32>
    %c1_27 = arith.constant 1 : index
    %c0_28 = arith.constant 0 : index
    %24 = vector.load %arg3[%c1_27, %c0_28] : memref<4x16xf32, #tpu.memory_space<vmem>>, vector<1x16xf32>
    %25 = vector.broadcast %24 : vector<1x16xf32> to vector<4x16xf32>
    %26 = arith.addf %23, %25 : vector<4x16xf32>
    %cst_29 = arith.constant 0.000000e+00 : f32
    %27 = vector.broadcast %cst_29 : f32 to vector<4x16xf32>
    %28 = arith.maximumf %26, %27 : vector<4x16xf32>
    %c1_30 = arith.constant 1 : index
    %c0_31 = arith.constant 0 : index
    %c0_32 = arith.constant 0 : index
    %29 = vector.load %arg4[%c1_30, %c0_31, %c0_32] : memref<4x16x64xf32, #tpu.memory_space<vmem>>, vector<1x16x64xf32>
    %30 = vector.shape_cast %29 : vector<1x16x64xf32> to vector<16x64xf32>
    %cst_33 = arith.constant dense<0.000000e+00> : vector<4x64xf32>
    %31 = tpu.matmul %28, %30, %cst_33 {dimension_numbers = #tpu.dot_dimension_numbers<[1], [0], [0], [1], [0, 0, 1, 1], [], []>} : vector<4x16xf32>, vector<16x64xf32>, vector<4x64xf32> -> vector<4x64xf32>
    %c0_34 = arith.constant 0 : index
    %c1_35 = arith.constant 1 : index
    %c0_36 = arith.constant 0 : index
    %32 = vector.load %arg5[%c0_34, %c1_35, %c0_36] : memref<1x64x64xf32, #tpu.memory_space<vmem>>, vector<1x4x64xf32>
    %33 = vector.shape_cast %32 : vector<1x4x64xf32> to vector<4x64xf32>
    %34 = vector.shape_cast %31 : vector<4x64xf32> to vector<1x4x64xf32>
    tpu.vector_store %arg5[%c0_34, %c1_35, %c0_36], %34 {strides = array<i32>} : memref<1x64x64xf32, #tpu.memory_space<vmem>>, vector<1x4x64xf32>,
    %c0_37 = arith.constant 0 : index
    %c3 = arith.constant 3 : index
    %c3_38 = arith.constant 3 : index
    %c0_39 = arith.constant 0 : index
    %35 = vector.load %arg1[%c0_37, %c3, %c3_38, %c0_39] : memref<1x12x12x64xf32, #tpu.memory_space<vmem>>, vector<1x3x3x64xf32>
    %36 = vector.shape_cast %35 : vector<1x3x3x64xf32> to vector<3x3x64xf32>
    %37 = vector.shape_cast %36 : vector<3x3x64xf32> to vector<9x64xf32>
    %c2 = arith.constant 2 : index
    %c0_40 = arith.constant 0 : index
    %c0_41 = arith.constant 0 : index
    %38 = vector.load %arg2[%c2, %c0_40, %c0_41] : memref<4x64x16xf32, #tpu.memory_space<vmem>>, vector<1x64x16xf32>
    %39 = vector.shape_cast %38 : vector<1x64x16xf32> to vector<64x16xf32>
    %cst_42 = arith.constant dense<0.000000e+00> : vector<9x16xf32>
    %40 = tpu.matmul %37, %39, %cst_42 {dimension_numbers = #tpu.dot_dimension_numbers<[1], [0], [0], [1], [0, 0, 1, 1], [], []>} : vector<9x64xf32>, vector<64x16xf32>, vector<9x16xf32> -> vector<9x16xf32>
    %c2_43 = arith.constant 2 : index
    %c0_44 = arith.constant 0 : index
    %41 = vector.load %arg3[%c2_43, %c0_44] : memref<4x16xf32, #tpu.memory_space<vmem>>, vector<1x16xf32>
    %42 = vector.broadcast %41 : vector<1x16xf32> to vector<9x16xf32>
    %43 = arith.addf %40, %42 : vector<9x16xf32>
    %cst_45 = arith.constant 0.000000e+00 : f32
    %44 = vector.broadcast %cst_45 : f32 to vector<9x16xf32>
    %45 = arith.maximumf %43, %44 : vector<9x16xf32>
    %c2_46 = arith.constant 2 : index
    %c0_47 = arith.constant 0 : index
    %c0_48 = arith.constant 0 : index
    %46 = vector.load %arg4[%c2_46, %c0_47, %c0_48] : memref<4x16x64xf32, #tpu.memory_space<vmem>>, vector<1x16x64xf32>
    %47 = vector.shape_cast %46 : vector<1x16x64xf32> to vector<16x64xf32>
    %cst_49 = arith.constant dense<0.000000e+00> : vector<9x64xf32>
    %48 = tpu.matmul %45, %47, %cst_49 {dimension_numbers = #tpu.dot_dimension_numbers<[1], [0], [0], [1], [0, 0, 1, 1], [], []>} : vector<9x16xf32>, vector<16x64xf32>, vector<9x64xf32> -> vector<9x64xf32>
    %c0_50 = arith.constant 0 : index
    %c5 = arith.constant 5 : index
    %c0_51 = arith.constant 0 : index
    %49 = vector.load %arg5[%c0_50, %c5, %c0_51] : memref<1x64x64xf32, #tpu.memory_space<vmem>>, vector<1x9x64xf32>
    %50 = vector.shape_cast %49 : vector<1x9x64xf32> to vector<9x64xf32>
    %51 = vector.shape_cast %48 : vector<9x64xf32> to vector<1x9x64xf32>
    tpu.vector_store %arg5[%c0_50, %c5, %c0_51], %51 {strides = array<i32>} : memref<1x64x64xf32, #tpu.memory_space<vmem>>, vector<1x9x64xf32>,
    %c0_52 = arith.constant 0 : index
    %c6 = arith.constant 6 : index
    %c6_53 = arith.constant 6 : index
    %c0_54 = arith.constant 0 : index
    %52 = vector.load %arg1[%c0_52, %c6, %c6_53, %c0_54] : memref<1x12x12x64xf32, #tpu.memory_space<vmem>>, vector<1x6x6x64xf32>
    %53 = vector.shape_cast %52 : vector<1x6x6x64xf32> to vector<6x6x64xf32>
    %54 = vector.shape_cast %53 : vector<6x6x64xf32> to vector<36x64xf32>
    %c3_55 = arith.constant 3 : index
    %c0_56 = arith.constant 0 : index
    %c0_57 = arith.constant 0 : index
    %55 = vector.load %arg2[%c3_55, %c0_56, %c0_57] : memref<4x64x16xf32, #tpu.memory_space<vmem>>, vector<1x64x16xf32>
    %56 = vector.shape_cast %55 : vector<1x64x16xf32> to vector<64x16xf32>
    %cst_58 = arith.constant dense<0.000000e+00> : vector<36x16xf32>
    %57 = tpu.matmul %54, %56, %cst_58 {dimension_numbers = #tpu.dot_dimension_numbers<[1], [0], [0], [1], [0, 0, 1, 1], [], []>} : vector<36x64xf32>, vector<64x16xf32>, vector<36x16xf32> -> vector<36x16xf32>
    %c3_59 = arith.constant 3 : index
    %c0_60 = arith.constant 0 : index
    %58 = vector.load %arg3[%c3_59, %c0_60] : memref<4x16xf32, #tpu.memory_space<vmem>>, vector<1x16xf32>
    %59 = vector.broadcast %58 : vector<1x16xf32> to vector<36x16xf32>
    %60 = arith.addf %57, %59 : vector<36x16xf32>
    %cst_61 = arith.constant 0.000000e+00 : f32
    %61 = vector.broadcast %cst_61 : f32 to vector<36x16xf32>
    %62 = arith.maximumf %60, %61 : vector<36x16xf32>
    %c3_62 = arith.constant 3 : index
    %c0_63 = arith.constant 0 : index
    %c0_64 = arith.constant 0 : index
    %63 = vector.load %arg4[%c3_62, %c0_63, %c0_64] : memref<4x16x64xf32, #tpu.memory_space<vmem>>, vector<1x16x64xf32>
    %64 = vector.shape_cast %63 : vector<1x16x64xf32> to vector<16x64xf32>
    %cst_65 = arith.constant dense<0.000000e+00> : vector<36x64xf32>
    %65 = tpu.matmul %62, %64, %cst_65 {dimension_numbers = #tpu.dot_dimension_numbers<[1], [0], [0], [1], [0, 0, 1, 1], [], []>} : vector<36x16xf32>, vector<16x64xf32>, vector<36x64xf32> -> vector<36x64xf32>
    %c0_66 = arith.constant 0 : index
    %c14 = arith.constant 14 : index
    %c0_67 = arith.constant 0 : index
    %66 = vector.load %arg5[%c0_66, %c14, %c0_67] : memref<1x64x64xf32, #tpu.memory_space<vmem>>, vector<1x36x64xf32>
    %67 = vector.shape_cast %66 : vector<1x36x64xf32> to vector<36x64xf32>
    %68 = vector.shape_cast %65 : vector<36x64xf32> to vector<1x36x64xf32>
    tpu.vector_store %arg5[%c0_66, %c14, %c0_67], %68 {strides = array<i32>} : memref<1x64x64xf32, #tpu.memory_space<vmem>>, vector<1x36x64xf32>,
    return
  }
  func.func @transform_0(%arg0: i32) -> (i32, i32, i32, i32) {
    %c0_i32 = arith.constant 0 : i32
    %c0_i32_0 = arith.constant 0 : i32
    %c0_i32_1 = arith.constant 0 : i32
    %c0_i32_2 = arith.constant 0 : i32
    return %arg0, %c0_i32, %c0_i32_0, %c0_i32_1 : i32, i32, i32, i32
  }
  func.func @transform_1(%arg0: i32) -> (i32, i32, i32) {
    %c0_i32 = arith.constant 0 : i32
    %c0_i32_0 = arith.constant 0 : i32
    %c0_i32_1 = arith.constant 0 : i32
    %c0_i32_2 = arith.constant 0 : i32
    return %c0_i32, %c0_i32_0, %c0_i32_1 : i32, i32, i32
  }
  func.func @transform_2(%arg0: i32) -> (i32, i32) {
    %c0_i32 = arith.constant 0 : i32
    %c0_i32_0 = arith.constant 0 : i32
    %c0_i32_1 = arith.constant 0 : i32
    return %c0_i32, %c0_i32_0 : i32, i32
  }
  func.func @transform_3(%arg0: i32) -> (i32, i32, i32) {
    %c0_i32 = arith.constant 0 : i32
    %c0_i32_0 = arith.constant 0 : i32
    %c0_i32_1 = arith.constant 0 : i32
    %c0_i32_2 = arith.constant 0 : i32
    return %c0_i32, %c0_i32_0, %c0_i32_1 : i32, i32, i32
  }
  func.func @transform_4(%arg0: i32) -> (i32, i32, i32) {
    %c0_i32 = arith.constant 0 : i32
    %c0_i32_0 = arith.constant 0 : i32
    %c0_i32_1 = arith.constant 0 : i32
    return %arg0, %c0_i32, %c0_i32_0 : i32, i32, i32
  }
}

module attributes {stable_mosaic.version = 11 : i64} {
  func.func @_out_conv_kernel(%arg0: i32, %arg1: i32, %arg2: memref<1x16x16x64xf32, #tpu.memory_space<vmem>>, %arg3: memref<16x16x64xf32, #tpu.memory_space<vmem>>, %arg4: memref<1x64x64xf32, #tpu.memory_space<vmem>>, %arg5: memref<64x64xf32, #tpu.memory_space<vmem>>, %arg6: memref<1x64xf32, #tpu.memory_space<vmem>>, %arg7: memref<1x16x16x64xf32, #tpu.memory_space<vmem>>) attributes {dimension_semantics = [#tpu.dimension_semantics<parallel>, #tpu.dimension_semantics<parallel>], iteration_bounds = array<i64: 2, 1>, scalar_prefetch = 0 : i64, scratch_operands = 0 : i64, tpu.core_type = #tpu.core_type<tc>, window_params = [{transform_indices = @transform_0, window_bounds = array<i64: 1, 16, 16, 64>}, {transform_indices = @transform_1, window_bounds = array<i64: 16, 16, 64>}, {transform_indices = @transform_2, window_bounds = array<i64: 1, 64, 64>}, {pipeline_mode = #tpu.pipeline_mode<synchronous>, transform_indices = @transform_3, window_bounds = array<i64: 64, 64>}, {pipeline_mode = #tpu.pipeline_mode<synchronous>, transform_indices = @transform_4, window_bounds = array<i64: 1, 64>}, {transform_indices = @transform_5, window_bounds = array<i64: 1, 16, 16, 64>}]} {
    %c0 = arith.constant 0 : index
    %c0_0 = arith.constant 0 : index
    %c0_1 = arith.constant 0 : index
    %c0_2 = arith.constant 0 : index
    %0 = vector.load %arg2[%c0, %c0_0, %c0_1, %c0_2] : memref<1x16x16x64xf32, #tpu.memory_space<vmem>>, vector<1x16x16x64xf32>
    %1 = vector.shape_cast %0 : vector<1x16x16x64xf32> to vector<256x64xf32>
    %c0_3 = arith.constant 0 : index
    %c0_4 = arith.constant 0 : index
    %c0_5 = arith.constant 0 : index
    %2 = vector.load %arg3[%c0_3, %c0_4, %c0_5] : memref<16x16x64xf32, #tpu.memory_space<vmem>>, vector<16x16x64xf32>
    %3 = vector.shape_cast %2 : vector<16x16x64xf32> to vector<256x64xf32>
    %c0_6 = arith.constant 0 : index
    %c0_7 = arith.constant 0 : index
    %4 = vector.load %arg5[%c0_6, %c0_7] : memref<64x64xf32, #tpu.memory_space<vmem>>, vector<64x64xf32>
    %cst = arith.constant dense<0.000000e+00> : vector<256x64xf32>
    %5 = tpu.matmul %1, %4, %cst {dimension_numbers = #tpu.dot_dimension_numbers<[1], [0], [0], [1], [0, 0, 1, 1], [], []>} : vector<256x64xf32>, vector<64x64xf32>, vector<256x64xf32> -> vector<256x64xf32>
    %c0_8 = arith.constant 0 : index
    %c0_9 = arith.constant 0 : index
    %c0_10 = arith.constant 0 : index
    %6 = vector.load %arg4[%c0_8, %c0_9, %c0_10] : memref<1x64x64xf32, #tpu.memory_space<vmem>>, vector<1x64x64xf32>
    %7 = vector.shape_cast %6 : vector<1x64x64xf32> to vector<64x64xf32>
    %cst_11 = arith.constant dense<0.000000e+00> : vector<256x64xf32>
    %8 = tpu.matmul %3, %7, %cst_11 {dimension_numbers = #tpu.dot_dimension_numbers<[1], [0], [0], [1], [0, 0, 1, 1], [], []>} : vector<256x64xf32>, vector<64x64xf32>, vector<256x64xf32> -> vector<256x64xf32>
    %9 = arith.addf %5, %8 : vector<256x64xf32>
    %c0_12 = arith.constant 0 : index
    %c0_13 = arith.constant 0 : index
    %10 = vector.load %arg6[%c0_12, %c0_13] : memref<1x64xf32, #tpu.memory_space<vmem>>, vector<1x64xf32>
    %11 = vector.broadcast %10 : vector<1x64xf32> to vector<256x64xf32>
    %12 = arith.addf %9, %11 : vector<256x64xf32>
    %cst_14 = arith.constant 0.000000e+00 : f32
    %13 = vector.broadcast %cst_14 : f32 to vector<256x64xf32>
    %14 = arith.maximumf %12, %13 : vector<256x64xf32>
    %15 = vector.shape_cast %14 : vector<256x64xf32> to vector<1x16x16x64xf32>
    %c0_15 = arith.constant 0 : index
    %c0_16 = arith.constant 0 : index
    %c0_17 = arith.constant 0 : index
    %c0_18 = arith.constant 0 : index
    %16 = vector.load %arg7[%c0_15, %c0_16, %c0_17, %c0_18] : memref<1x16x16x64xf32, #tpu.memory_space<vmem>>, vector<1x16x16x64xf32>
    tpu.vector_store %arg7[%c0_15, %c0_16, %c0_17, %c0_18], %15 {strides = array<i32>} : memref<1x16x16x64xf32, #tpu.memory_space<vmem>>, vector<1x16x16x64xf32>,
    return
  }
  func.func @transform_0(%arg0: i32, %arg1: i32) -> (i32, i32, i32, i32) {
    %c0_i32 = arith.constant 0 : i32
    %c0_i32_0 = arith.constant 0 : i32
    %c0_i32_1 = arith.constant 0 : i32
    return %arg0, %arg1, %c0_i32, %c0_i32_0 : i32, i32, i32, i32
  }
  func.func @transform_1(%arg0: i32, %arg1: i32) -> (i32, i32, i32) {
    %c0_i32 = arith.constant 0 : i32
    %c0_i32_0 = arith.constant 0 : i32
    %c0_i32_1 = arith.constant 0 : i32
    return %arg1, %c0_i32, %c0_i32_0 : i32, i32, i32
  }
  func.func @transform_2(%arg0: i32, %arg1: i32) -> (i32, i32, i32) {
    %c0_i32 = arith.constant 0 : i32
    %c0_i32_0 = arith.constant 0 : i32
    %c0_i32_1 = arith.constant 0 : i32
    return %arg0, %c0_i32, %c0_i32_0 : i32, i32, i32
  }
  func.func @transform_3(%arg0: i32, %arg1: i32) -> (i32, i32) {
    %c0_i32 = arith.constant 0 : i32
    %c0_i32_0 = arith.constant 0 : i32
    %c0_i32_1 = arith.constant 0 : i32
    return %c0_i32, %c0_i32_0 : i32, i32
  }
  func.func @transform_4(%arg0: i32, %arg1: i32) -> (i32, i32) {
    %c0_i32 = arith.constant 0 : i32
    %c0_i32_0 = arith.constant 0 : i32
    %c0_i32_1 = arith.constant 0 : i32
    return %c0_i32, %c0_i32_0 : i32, i32
  }
  func.func @transform_5(%arg0: i32, %arg1: i32) -> (i32, i32, i32, i32) {
    %c0_i32 = arith.constant 0 : i32
    %c0_i32_0 = arith.constant 0 : i32
    %c0_i32_1 = arith.constant 0 : i32
    return %arg0, %arg1, %c0_i32, %c0_i32_0 : i32, i32, i32, i32
  }
}

</mosaic_0001>

<bundles_post_ra>
// kernel: pyramid_pooling_forward.4
= control target key start
LH: loop header
LB: loop body
LE: loop exit
PB: predicated region body
PF: predicated region fallthrough
CT: control target
= control target key end

     0   :  { %s1725_s15 = smov 0   ;;  %s2016_s0 = inlined_call_operand.vmem [shape: f32[2,12,12,64], index: 0, kind: input, shape index: {}]   ;;  %s2017_s1 = inlined_call_operand.vmem [shape: f32[4,64,16], index: 1, kind: input, shape index: {}]   ;;  %s2018_s2 = inlined_call_operand.vmem [shape: f32[4,16], index: 2, kind: input, shape index: {}]   ;;  %s2019_s3 = inlined_call_operand.vmem [shape: f32[4,16,64], index: 3, kind: input, shape index: {}]   ;;  %s2020_s4 = inlined_call_operand.vmem [shape: f32[2,64,64], index: 4, kind: output, shape index: {}]  }
   0x1 LB: > { %s1339_s16 = sadd.s32 4294967295, %s1693_s15   ;;  %p1343_p0 = scmp.ge.s32.totalorder %s1693_s15, 1  ;;  %s1693_s15 = sphi %s1725_s15, %s14_s15  }
   0x2   : > { %p162_p1 = scmp.lt.s32.totalorder %s1693_s15, 3 }
   0x4   : > { %p163_p2 = pnand %p1343_p0, %p162_p1 }
   0x5   : > { %v208_v0 = vld [vmem:[%s2017_s1] sm:$0xff] (!%p163_p2)  ;;  %v209_v1 = vld [vmem:[%s2017_s1 + $0x8] sm:$0xff] (!%p163_p2)  ;;  %v210_v2 = vld [vmem:[%s2017_s1 + $0x10] sm:$0xff] (!%p163_p2)  ;;  %v1695_v3 = vmov (!%p163_p2), 0.0|0.0   ;;  %vm1696_vm0 = vmmov (!%p163_p2), 0   ;;  %v1697_v6 = vmov (!%p163_p2), 0.0   ;;  %v392_v30 = vlaneseq (!%p163_p2) }
   0x6   : > { %166 = sbr.rel (%p163_p2) target bundleno = 1166 (0x48e), region = 36  ;;  %1601 = vmatprep.subr.bf16.mxu0 (!%p163_p2), %v1695_v3  ;;  %v1602_v4 = vpack.c.bf16 (!%p163_p2), %v209_v1, %v208_v0  ;;  %v211_v5 = vld [vmem:[%s2017_s1 + $0x18] sm:$0xff] (!%p163_p2)  ;;  %1489 = vmatprep.mubr.msk.f32.mxu0 (!%p163_p2), %vm1696_vm0, %v1697_v6  ;;  %p188_p3 = scmp.lt.s32.totalorder (!%p163_p2), %s1339_s16, 1  ;;  %v212_v8 = vld [vmem:[%s2017_s1 + $0x20] sm:$0xff] (!%p163_p2)  ;;  %v213_v9 = vld [vmem:[%s2017_s1 + $0x28] sm:$0xff] (!%p163_p2)  ;;  %vm198_vm1 = vcmask (!%p163_p2), 523264  }
   0x7   : > { %1613 = vmatprep.subr.bf16.mxu1 (!%p163_p2), %v1695_v3  ;;  %1496 = vmatprep.mubr.msk.f32.mxu1 (!%p163_p2), %vm1696_vm0, %v1697_v6  ;;  %v1605_v7 = vpack.c.bf16 (!%p163_p2), %v211_v5, %v210_v2  ;;  %v1608_v10 = vpack.c.bf16 (!%p163_p2), %v213_v9, %v212_v8  ;;  %v214_v11 = vld [vmem:[%s2017_s1 + $0x30] sm:$0xff] (!%p163_p2)  ;;  %v215_v12 = vld [vmem:[%s2017_s1 + $0x38] sm:$0xff] (!%p163_p2)  ;;  %v291_v15 = vld [vmem:[%s2019_s3] sm:$0xff] (!%p163_p2)  ;;  %vm293_vm2 = vcmask (!%p163_p2), 130048   ;;  %v1698_v28 = vmov (!%p163_p2), 1983009808  }
   0x8   : > { %1603 = vmatpush3.bf16.msra.mxu0 (!%p163_p2), %v1602_v4  ;;  %v1611_v13 = vpack.c.bf16 (!%p163_p2), %v215_v12, %v214_v11  ;;  %v292_v16 = vld [vmem:[%s2019_s3 + $0x8] sm:$0xff] (!%p163_p2)  ;;  %v216_v18 = vld [vmem:[%s2018_s2] sm:$0x1] (!%p163_p2)  ;;  %v1353_v26 = vld [vmem:[%s2017_s1 + $0x50] sm:$0xff] (!%p163_p2)  ;;  %v390_v29 = vunpack.c.l.s4 (!%p163_p2), %v1698_v28  ;;  %v393_v35 = vshrl.u32 (!%p163_p2), %v392_v30, 7  ;;  %vm367_vm3 = vcmask (!%p163_p2), 516096  }
   0x9   : > { %1604 = vmatprep.subr.bf16.mxu0 (!%p163_p2), %v1695_v3  ;;  %v1614_v17 = vpack.c.bf16 (!%p163_p2), %v292_v16, %v291_v15  ;;  %v1351_v19 = vld [vmem:[%s2017_s1 + $0x40] sm:$0xff] (!%p163_p2)  ;;  %v1352_v20 = vld [vmem:[%s2017_s1 + $0x48] sm:$0xff] (!%p163_p2)  ;;  %v1354_v27 = vld [vmem:[%s2017_s1 + $0x58] sm:$0xff] (!%p163_p2)  ;;  %v1699_v49 = vmov (!%p163_p2), 1966171168   ;;  %vm545_vm4 = vcmask (!%p163_p2), 519168  }
   0xa   : > { %v1617_v24 = vpack.c.bf16 (!%p163_p2), %v1352_v20, %v1351_v19  ;;  %v1620_v31 = vpack.c.bf16 (!%p163_p2), %v1354_v27, %v1353_v26  ;;  %v1355_v32 = vld [vmem:[%s2017_s1 + $0x60] sm:$0xff] (!%p163_p2)  ;;  %v1356_v33 = vld [vmem:[%s2017_s1 + $0x68] sm:$0xff] (!%p163_p2)  ;;  %v391_v34 = vunpack.c.0.s8 (!%p163_p2), %v390_v29  ;;  %v1357_v37 = vld [vmem:[%s2017_s1 + $0x70] sm:$0xff] (!%p163_p2)  ;;  %v563_v50 = vunpack.c.l.s4 (!%p163_p2), %v1699_v49 }
   0xb   : > { %1615 = vmatpush3.bf16.msra.mxu1 (!%p163_p2), %v1614_v17  ;;  %v1623_v36 = vpack.c.bf16 (!%p163_p2), %v1356_v33, %v1355_v32  ;;  %v1358_v38 = vld [vmem:[%s2017_s1 + $0x78] sm:$0xff] (!%p163_p2)  ;;  %v1361_v43 = vld [vmem:[%s2019_s3 + $0x10] sm:$0xff] (!%p163_p2)  ;;  %v1370_v46 = vld [vmem:[%s2017_s1 + $0x80] sm:$0xff] (!%p163_p2) }
   0xc   : > { %1606 = vmatpush3.bf16.msra.mxu0 (!%p163_p2), %v1605_v7  ;;  %1616 = vmatprep.subr.bf16.mxu1 (!%p163_p2), %v1695_v3  ;;  %v1845_v40 = vsub.s32 (!%p163_p2), %v391_v34, %v393_v35  ;;  %v1626_v41 = vpack.c.bf16 (!%p163_p2), %v1358_v38, %v1357_v37  ;;  %v1362_v44 = vld [vmem:[%s2019_s3 + $0x18] sm:$0xff] (!%p163_p2)  ;;  %v1371_v47 = vld [vmem:[%s2017_s1 + $0x88] sm:$0xff] (!%p163_p2)  ;;  %v564_v51 = vunpack.c.0.s8 (!%p163_p2), %v563_v50  ;;  %v1359_v17 = vld [vmem:[%s2018_s2 + $0x1] ss:$0 sm:$0xff] (!%p163_p2) }
   0xd   : > { %s2022_s16 = smov (!%p188_p3, %s1339_s16), 1  ;;  %1607 = vmatprep.subr.bf16.mxu0 %v1695_v3  ;;  %v1629_v45 = vpack.c.bf16 %v1362_v44, %v1361_v43  ;;  %v1631_v48 = vpack.c.bf16 %v1371_v47, %v1370_v46  ;;  %v1374_v28 = vld [vmem:[%s2017_s1 + $0xa0] sm:$0xff]  ;;  %v1375_v29 = vld [vmem:[%s2017_s1 + $0xa8] sm:$0xff]  ;;  %v1377_v32 = vld [vmem:[%s2017_s1 + $0xb8] sm:$0xff] }
   0xe   : > { %s1666_s29 = smul.u32 192, %s2022_s16  ;;  %s1414_s30 = sshll.u32 %s2022_s16, 6  ;;  %v567_v53 = vsub.s32 %v564_v51, %v393_v35  ;;  %v1639_v30 = vpack.c.bf16 %v1375_v29, %v1374_v28  ;;  %v1381_v37 = vld [vmem:[%s2019_s3 + $0x20] sm:$0xff]  ;;  %v1382_v38 = vld [vmem:[%s2019_s3 + $0x28] sm:$0xff] }
   0xf   : > { %s1761_s7 = scalar_lea.vmem %s2020_s4, %s1414_s30  ;;  %v1378_v44 = vld [vmem:[%s2018_s2 + $0x2] ss:$0 sm:$0xff]  ;;  %v1392_v50 = vld [vmem:[%s2017_s1 + $0xc8] sm:$0xff] }
  0x10   : > { %s1769_s12 = scalar_lea.vmem %s2016_s0, %s1666_s29  ;;  %206 = vst.msk [vmem:[%s1761_s7 + $0x38] sm:$0xff] %vm198_vm1, %v1697_v6  ;;  %199 = vst.msk [vmem:[%s1761_s7] sm:$0xff] %vm198_vm1, %v1697_v6  ;;  %1609 = vmatpush3.bf16.msra.mxu0 %v1608_v10  ;;  %v1391_v49 = vld [vmem:[%s2017_s1 + $0xc0] sm:$0xff] }
  0x11   : > { %200 = vst.msk [vmem:[%s1761_s7 + $0x8] sm:$0xff] %vm198_vm1, %v1697_v6  ;;  %201 = vst.msk [vmem:[%s1761_s7 + $0x10] sm:$0xff] %vm198_vm1, %v1697_v6  ;;  %1610 = vmatprep.subr.bf16.mxu0 %v1695_v3  ;;  %v207_v14 = vld [vmem:[%s1769_s12] sm:$0x1]  ;;  %v1385_v43 = vld [vmem:[%s1769_s12 + $0x66] sm:$0x3f] }
  0x12   : > { %202 = vst.msk [vmem:[%s1761_s7 + $0x18] sm:$0xff] %vm198_vm1, %v1697_v6  ;;  %203 = vst.msk [vmem:[%s1761_s7 + $0x20] sm:$0xff] %vm198_vm1, %v1697_v6  ;;  %v1680_v39 = vld [vmem:[%s1769_s12 + $0x11] ss:$16 sps:$4 sm:$0x33]   ;;  %v880_v46 = vcombine.high %v1385_v43, %v1385_v43  ;;  %v887_v51 = vrot.slane %v1385_v43, %v1845_v40 }
  0x13   : > { %204 = vst.msk [vmem:[%s1761_s7 + $0x28] sm:$0xff] %vm198_vm1, %v1697_v6  ;;  %205 = vst.msk [vmem:[%s1761_s7 + $0x30] sm:$0xff] %vm198_vm1, %v1697_v6  ;;  %v395_v42 = vrot.slane %v1680_v39, %v1845_v40  ;;  %v1367_v52 = vld.sshfl [vmem:[%s1769_s12 + $0x33] sm:$0x13 pattern:$0x75316420]  ;;  %v1647_v39 = vpack.c.bf16 %v1382_v38, %v1381_v37 }
  0x14   : > { %1612 = vmatpush3.bf16.msra.mxu0 %v1611_v13  ;;  %v1368_v54 = vld.sshfl [vmem:[%s1769_s12 + $0x43] sm:$0x13 pattern:$0x75316420]  ;;  %v561_v56 = vcombine.high %v1367_v52, %v1367_v52  ;;  %v568_v57 = vrot.slane %v1367_v52, %v567_v53  ;;  %v1390_v29 = vld [vmem:[%s1769_s12 + $0xb6] sm:$0x3f] }
  0x15   : > { %1628 = vmatprep.subr.bf16.mxu0 %v1695_v3  ;;  %v1369_v55 = vld.sshfl [vmem:[%s1769_s12 + $0x53] sm:$0x13 pattern:$0x75316420]  ;;  %v584_v58 = vcombine.high %v1368_v54, %v1368_v54  ;;  %v591_v59 = vrot.slane %v1368_v54, %v567_v53  ;;  %v967_v37 = vrot.slane %v1390_v29, %v1845_v40  ;;  %v960_v43 = vcombine.high %v1390_v29, %v1390_v29 }
  0x16   : > { %v607_v60 = vcombine.high %v1369_v55, %v1369_v55  ;;  %v575_v61 = vrot.slane %v561_v56, %v567_v53  ;;  %v576_v62 = vcombine.high %v568_v57, %v568_v57  ;;  %v614_v1 = vrot.slane %v1369_v55, %v567_v53 }
  0x17   : > { %1490 = vmatmul.mubr.msk.f32.vlgmr.msra.gmra.mrb[0].mxu0 %vm198_vm1, %v207_v14  ;;  %v598_v63 = vrot.slane %v584_v58, %v567_v53  ;;  %v599_v0 = vcombine.high %v591_v59, %v591_v59  ;;  %v1652_v55 = vpack.c.bf16 %v1392_v50, %v1391_v49  ;;  %v894_v56 = vrot.slane %v880_v46, %v1845_v40 }
  0x18   : > { %1522 = vmatprep.mubr.msk.f32.mxu0 %vm1696_vm0, %v1697_v6  ;;  %1630 = vmatpush3.bf16.msra.mxu0 %v1629_v45  ;;  %v621_v2 = vrot.slane %v607_v60, %v567_v53  ;;  %v637_v7 = vcombine.low %v568_v57, %v575_v61  ;;  %v638_v8 = vcombine.low %v576_v62, %v591_v59  ;;  %v1387_v57 = vld [vmem:[%s1769_s12 + $0x86] sm:$0x3f]  ;;  %v1393_v59 = vld [vmem:[%s2017_s1 + $0xd0] sm:$0xff]  ;;  %v1394_v60 = vld [vmem:[%s2017_s1 + $0xd8] sm:$0xff] }
  0x19   : > { %1632 = vmatprep.subr.bf16.mxu0 %v1631_v48  ;;  %v639_v9 = vcombine.low %v598_v63, %v599_v0  ;;  %v622_v33 = vcombine.high %v614_v1, %v614_v1  ;;  %v895_v61 = vcombine.high %v887_v51, %v887_v51  ;;  %v919_v0 = vrot.slane %v1387_v57, %v1845_v40 }
  0x1a   : > { %v640_v10 = vcombine.low %v614_v1, %v621_v2  ;;  %v647_v11 = vrot.slane %v637_v7, %v567_v53  ;;  %v654_v12 = vrot.slane %v638_v8, %v567_v53  ;;  %v1388_v1 = vld [vmem:[%s1769_s12 + $0x96] sm:$0x3f]  ;;  %v1655_v2 = vpack.c.bf16 %v1394_v60, %v1393_v59 }
  0x1b   : > { %v661_v13 = vrot.slane %v639_v9, %v567_v53  ;;  %v692_v35 = vrot.slane %v622_v33, %v567_v53  ;;  %v990_v7 = vcombine.low %v887_v51, %v895_v61 }
  0x1c   : > { %v668_v14 = vrot.slane %v640_v10, %v567_v53  ;;  %v669_v15 = vcombine.low %v647_v11, %v654_v12  ;;  %v912_v11 = vcombine.high %v1387_v57, %v1387_v57  ;;  %v928_v12 = vcombine.high %v1388_v1, %v1388_v1 }
  0x1e   : > { %v670_v16 = vcombine.low %v661_v13, %v668_v14  ;;  %v935_v13 = vrot.slane %v1388_v1, %v1845_v40  ;;  %v927_v14 = vcombine.high %v919_v0, %v919_v0 }
  0x20   : > { %v684_v19 = vrot.slane %v670_v16, %v567_v53  ;;  %v1389_v16 = vld [vmem:[%s1769_s12 + $0xa6] sm:$0x3f] }
  0xea   : > { %v286_v21 = vpop.f32.mrb[0].mxu0 }
  0xeb   : > { %v287_v22 = vadd.f32 %v286_v21, %v216_v18  ;;  %v1491_v23 = vpop.f32.mrb[1].mxu0  ;;  %v677_v18 = vrot.slane %v669_v15, %v567_v53  ;;  %v1372_v21 = vld [vmem:[%s2017_s1 + $0x90] sm:$0xff] }
  0xed   : > { %v290_v25 = vmax.f32 %v287_v22, 0.0  ;;  %v1373_v22 = vld [vmem:[%s2017_s1 + $0x98] sm:$0xff] }
  0xee   : > { %v1635_v27 = vpack.c.bf16 %v1373_v22, %v1372_v21  ;;  %v926_v22 = vrot.slane %v912_v11, %v1845_v40 }
  0xef   : > { %1497 = vmatmul.mubr.msk.f32.vlgmr.msra.gmra.mrb[0].mxu1 %vm293_vm2, %v290_v25  ;;  %v685_v25 = vcombine.low %v677_v18, %v684_v19  ;;  %v1398_v18 = vld [vmem:[%s2017_s1 + $0xf8] sm:$0xff]  ;;  %v998_v19 = vrot.slane %v990_v7, %v1845_v40 }
  0xf0   : > { %1618 = vmatpush3.bf16.msra.mxu1 %v1617_v24  ;;  %1515 = vmatprep.mubr.msk.f32.mxu1 %vm1696_vm0, %v1697_v6 }
  0xf1   : > { %1619 = vmatprep.subr.bf16.mxu1 %v1695_v3 }
  0xf4   : > { %1621 = vmatpush3.bf16.msra.mxu1 %v1620_v31  ;;  %v1376_v31 = vld [vmem:[%s2017_s1 + $0xb0] sm:$0xff] }
  0xf5   : > { %1622 = vmatprep.subr.bf16.mxu1 %v1695_v3  ;;  %v1643_v34 = vpack.c.bf16 %v1377_v32, %v1376_v31  ;;  %v1024_v32 = vcombine.low %v926_v22, %v935_v13 }
  0xf7   : > { %v1032_v38 = vrot.slane %v1024_v32, %v1845_v40 }
  0xf8   : > { %1624 = vmatpush3.bf16.msra.mxu1 %v1623_v36  ;;  %v699_v36 = vrot.slane %v692_v35, %v567_v53  ;;  %v1386_v53 = vld [vmem:[%s1769_s12 + $0x76] sm:$0x3f] }
  0xf9   : > { %1625 = vmatprep.subr.bf16.mxu1 %v1695_v3  ;;  %v903_v62 = vrot.slane %v1386_v53, %v1845_v40  ;;  %v896_v63 = vcombine.high %v1386_v53, %v1386_v53  ;;  %v1406_v53 = vld [vmem:[%s2019_s3 + $0x38] sm:$0xff] }
  0xfb   : > { %v991_v8 = vcombine.low %v894_v56, %v903_v62  ;;  %v910_v9 = vrot.slane %v896_v63, %v1845_v40  ;;  %v911_v10 = vcombine.high %v903_v62, %v903_v62 }
  0xfc   : > { %1627 = vmatpush3.bf16.msra.mxu1 %v1626_v41 }
  0xfd   : > { %1648 = vmatprep.subr.bf16.mxu1 %v1647_v39  ;;  %v1007_v21 = vcombine.low %v911_v10, %v910_v9 }
  0xff   : > { %1516 = vmatmul.mubr.msk.f32.vlgmr.msra.gmra.mrb[2].mxu1 %vm198_vm1, %v395_v42  ;;  %v1015_v31 = vrot.slane %v1007_v21, %v1845_v40 }
 0x100   : > { %1650 = vmatpush3.bf16.msra.mxu1 %v1647_v39 }
 0x101   : > { %1651 = vmatprep.subr.bf16.mxu1 %v1695_v3 }
 0x1c2   : > { %v363_v4 = vpop.f32.mrb[0].mxu1 }
 0x1c3   : > { %368 = vst.msk [vmem:[%s1761_s7] sm:$0x1] %vm367_vm3, %v363_v4  ;;  %v1498_v5 = vpop.f32.mrb[1].mxu1  ;;  %v1395_v4 = vld [vmem:[%s2017_s1 + $0xe0] sm:$0xff] }
 0x1c4   : > { %v1396_v5 = vld [vmem:[%s2017_s1 + $0xe8] sm:$0xff] }
 0x1c5   : > { %v1658_v15 = vpack.c.bf16 %v1396_v5, %v1395_v4 }
 0x1d2   : > { %v464_v20 = vpop.f32.mrb[2].mxu1 }
 0x1d3   : > { %v465_v23 = vadd.f32 %v1359_v17, %v464_v20  ;;  %v1517_v24 = vpop.f32.mrb[3].mxu1  ;;  %v1397_v17 = vld [vmem:[%s2017_s1 + $0xf0] sm:$0xff]  ;;  %v1005_v20 = vrot.slane %v991_v8, %v1845_v40 }
 0x1d4   : > { %v943_v24 = vcombine.high %v935_v13, %v935_v13  ;;  %v1661_v28 = vpack.c.bf16 %v1398_v18, %v1397_v17 }
 0x1d5   : > { %v468_v26 = vmax.f32 %v465_v23, 0.0  ;;  %v942_v23 = vrot.slane %v928_v12, %v1845_v40 }
 0x1d7   : > { %1523 = vmatmul.mubr.msk.f32.vlgmr.msra.gmra.mrb[2].mxu0 %vm293_vm2, %v468_v26  ;;  %v944_v26 = vcombine.high %v1389_v16, %v1389_v16  ;;  %v1025_v33 = vcombine.low %v943_v24, %v942_v23 }
 0x1d8   : > { %1634 = vmatpush3.bf16.msra.mxu0 %v1631_v48  ;;  %1541 = vmatprep.mubr.msk.f32.mxu0 %vm198_vm1, %v685_v25  ;;  %v1008_v25 = vcombine.low %v919_v0, %v927_v14 }
 0x1d9   : > { %1636 = vmatprep.subr.bf16.mxu0 %v1635_v27  ;;  %v958_v35 = vrot.slane %v944_v26, %v1845_v40  ;;  %v1039_v39 = vrot.slane %v1025_v33, %v1845_v40 }
 0x1dc   : > { %1638 = vmatpush3.bf16.msra.mxu0 %v1635_v27  ;;  %v951_v27 = vrot.slane %v1389_v16, %v1845_v40 }
 0x1dd   : > { %1640 = vmatprep.subr.bf16.mxu0 %v1639_v30 }
 0x1e0   : > { %1642 = vmatpush3.bf16.msra.mxu0 %v1639_v30  ;;  %v1006_v30 = vcombine.low %v998_v19, %v1005_v20 }
 0x1e1   : > { %1644 = vmatprep.subr.bf16.mxu0 %v1643_v34 }
 0x1e4   : > { %1646 = vmatpush3.bf16.msra.mxu0 %v1643_v34  ;;  %v1022_v34 = vrot.slane %v1008_v25, %v1845_v40 }
 0x1e5   : > { %1663 = vmatprep.subr.bf16.mxu0 %v1695_v3 }
 0x1e7   : > { %1542 = vmatmul.mubr.msk.f32.vlgmr.msra.gmra.mrb[4].mxu0 %vm198_vm1, %v699_v36  ;;  %v959_v36 = vcombine.high %v951_v27, %v951_v27 }
 0x1e8   : > { %1586 = vmatprep.mubr.msk.f32.mxu0 %vm1696_vm0, %v1697_v6 }
 0x2aa   : > { %v541_v41 = vpop.f32.mrb[2].mxu0 }
 0x2ab   : > { %546 = vst.msk [vmem:[%s1761_s7 + $0x1] sm:$0xf] %vm545_vm4, %v541_v41  ;;  %v1524_v42 = vpop.f32.mrb[3].mxu0  ;;  %v1041_v41 = vcombine.low %v951_v27, %v959_v36 }
 0x2ac   : > { %v1042_v42 = vcombine.low %v958_v35, %v967_v37 }
 0x2ae   : > { %v1056_v46 = vrot.slane %v1042_v42, %v1845_v40 }
 0x2ba   : > { %v1543_v45 = vpop.f32.mrb[4].mxu0 }
 0x2bb   : > { %v776_v47 = vadd.f32 %v1543_v45, %v1378_v44  ;;  %v770_v48 = vpop.f32.mrb[5].mxu0  ;;  %v1049_v45 = vrot.slane %v1041_v41, %v1845_v40 }
 0x2bc   : > { %v771_v52 = vadd.f32 %v1378_v44, %v770_v48  ;;  %v1040_v44 = vcombine.low %v1032_v38, %v1039_v39  ;;  %v975_v48 = vcombine.high %v967_v37, %v967_v37 }
 0x2bd   : > { %v780_v58 = vmax.f32 %v776_v47, 0.0  ;;  %v974_v47 = vrot.slane %v960_v43, %v1845_v40  ;;  %v1057_v49 = vcombine.low %v1049_v45, %v1056_v46 }
 0x2be   : > { %v779_v54 = vmax.f32 %v771_v52, 0.0  ;;  %v1405_v52 = vld [vmem:[%s2019_s3 + $0x30] sm:$0xff] }
 0x2bf   : > { %v1058_v50 = vcombine.low %v975_v48, %v974_v47 }
 0x2c0   : > { %1548 = vmatprep.mubr.msk.f32.mxu1 %vm293_vm2, %v779_v54  ;;  %v1664_v54 = vpack.c.bf16 %v1406_v53, %v1405_v52 }
 0x2c1   : > { %1549 = vmatmul.mubr.msk.f32.vlgmr.msra.gmra.mrb[4].mxu1 %vm293_vm2, %v780_v58  ;;  %v1065_v51 = vrot.slane %v1058_v50, %v1845_v40  ;;  %v1399_v40 = vld [vmem:[%s2018_s2 + $0x3] ss:$0 sm:$0xff] }
 0x2c2   : > { %1653 = vmatpush3.bf16.msra.mxu1 %v1652_v55  ;;  %1567 = vmatprep.mubr.msk.f32.mxu1 %vm1696_vm0, %v1697_v6 }
 0x2c3   : > { %1654 = vmatprep.subr.bf16.mxu1 %v1695_v3  ;;  %1665 = vmatpush3.bf16.msra.mxu0 %v1664_v54 }
 0x2c6   : > { %1656 = vmatpush3.bf16.msra.mxu1 %v1655_v2 }
 0x2c7   : > { %1657 = vmatprep.subr.bf16.mxu1 %v1695_v3 }
 0x2ca   : > { %1659 = vmatpush3.bf16.msra.mxu1 %v1658_v15 }
 0x2cb   : > { %1660 = vmatprep.subr.bf16.mxu1 %v1695_v3  ;;  %v1023_v3 = vcombine.low %v1015_v31, %v1022_v34 }
 0x2ce   : > { %1662 = vmatpush3.bf16.msra.mxu1 %v1661_v28 }
 0x2d1   : > { %1568 = vmatmul.mubr.msk.f32.vlgmr.msra.gmra.mrb[6].mxu1 %vm198_vm1, %v1006_v30 }
 0x2d2   : > { %1570 = vmatprep.mubr.msk.f32.mxu1 %vm1696_vm0, %v1697_v6 }
 0x2d5   : > { %1571 = vmatmul.mubr.msk.f32.gmra.mrb[8].mxu1 %vm198_vm1, %v1023_v3 }
 0x2d6   : > { %1573 = vmatprep.mubr.msk.f32.mxu1 %vm1696_vm0, %v1697_v6 }
 0x2d9   : > { %1574 = vmatmul.mubr.msk.f32.gmra.mrb[10].mxu1 %vm198_vm1, %v1040_v44 }
 0x2da   : > { %1576 = vmatprep.mubr.msk.f32.mxu1 %vm1696_vm0, %v1697_v6 }
 0x2dd   : > { %1577 = vmatmul.mubr.msk.f32.gmra.mrb[12].mxu1 %vm198_vm1, %v1057_v49 }
 0x2de   : > { %1579 = vmatprep.mubr.msk.f32.mxu1 %vm1696_vm0, %v1697_v6 }
 0x2e1   : > { %1580 = vmatmul.mubr.msk.f32.gmra.mrb[14].mxu1 %vm198_vm1, %v1065_v51 }
 0x394   : > { %v1550_v55 = vpop.f32.mrb[4].mxu1 }
 0x395   : > { %866 = vst.msk [vmem:[%s1761_s7 + $0xd] sm:$0x1] %vm367_vm3, %v1550_v55  ;;  %v856_v56 = vpop.f32.mrb[5].mxu1 }
 0x396   : > { %865 = vst.msk [vmem:[%s1761_s7 + $0x5] sm:$0xff] %vm198_vm1, %v856_v56 }
 0x3a4   : > { %v1142_v57 = vpop.f32.mrb[6].mxu1 }
 0x3a5   : > { %v1143_v58 = vadd.f32 %v1399_v40, %v1142_v57  ;;  %v1569_v59 = vpop.f32.mrb[7].mxu1 }
 0x3a7   : > { %v1166_v60 = vmax.f32 %v1143_v58, 0.0 }
 0x3a8   : > { %v1147_v61 = vpop.f32.mrb[8].mxu1 }
 0x3a9   : > { %v1148_v62 = vadd.f32 %v1399_v40, %v1147_v61  ;;  %v1572_v63 = vpop.f32.mrb[9].mxu1  ;;  %1587 = vmatmul.mubr.msk.f32.vlgmr.msra.gmra.mrb[6].mxu0 %vm293_vm2, %v1166_v60 }
 0x3aa   : > { %1589 = vmatprep.mubr.msk.f32.mxu0 %vm1696_vm0, %v1697_v6 }
 0x3ab   : > { %v1167_v0 = vmax.f32 %v1148_v62, 0.0 }
 0x3ac   : > { %v1152_v1 = vpop.f32.mrb[10].mxu1 }
 0x3ad   : > { %v1153_v2 = vadd.f32 %v1399_v40, %v1152_v1  ;;  %v1575_v4 = vpop.f32.mrb[11].mxu1  ;;  %1590 = vmatmul.mubr.msk.f32.gmra.mrb[8].mxu0 %vm293_vm2, %v1167_v0 }
 0x3ae   : > { %1592 = vmatprep.mubr.msk.f32.mxu0 %vm1696_vm0, %v1697_v6 }
 0x3af   : > { %v1168_v5 = vmax.f32 %v1153_v2, 0.0 }
 0x3b0   : > { %v1157_v7 = vpop.f32.mrb[12].mxu1 }
 0x3b1   : > { %v1158_v8 = vadd.f32 %v1399_v40, %v1157_v7  ;;  %v1578_v9 = vpop.f32.mrb[13].mxu1  ;;  %1593 = vmatmul.mubr.msk.f32.gmra.mrb[10].mxu0 %vm293_vm2, %v1168_v5 }
 0x3b2   : > { %1595 = vmatprep.mubr.msk.f32.mxu0 %vm1696_vm0, %v1697_v6 }
 0x3b3   : > { %v1169_v10 = vmax.f32 %v1158_v8, 0.0 }
 0x3b4   : > { %v1162_v11 = vpop.f32.mrb[14].mxu1 }
 0x3b5   : > { %v1163_v12 = vadd.f32 %v1399_v40, %v1162_v11  ;;  %v1581_v13 = vpop.f32.mrb[15].mxu1  ;;  %1596 = vmatmul.mubr.msk.f32.gmra.mrb[12].mxu0 %vm293_vm2, %v1169_v10 }
 0x3b6   : > { %1598 = vmatprep.mubr.msk.f32.mxu0 %vm1696_vm0, %v1697_v6 }
 0x3b7   : > { %v1170_v14 = vmax.f32 %v1163_v12, 0.0 }
 0x3b9   : > { %1599 = vmatmul.mubr.msk.f32.gmra.mrb[14].mxu0 %vm293_vm2, %v1170_v14 }
 0x47c   : > { %v1255_v15 = vpop.f32.mrb[6].mxu0 }
 0x47d   : > { %1279 = vst.msk [vmem:[%s1761_s7 + $0xe] sm:$0xff] %vm198_vm1, %v1255_v15  ;;  %v1588_v16 = vpop.f32.mrb[7].mxu0 }
 0x480   : > { %v1260_v17 = vpop.f32.mrb[8].mxu0 }
 0x481   : > { %1280 = vst.msk [vmem:[%s1761_s7 + $0x16] sm:$0xff] %vm198_vm1, %v1260_v17  ;;  %v1591_v18 = vpop.f32.mrb[9].mxu0 }
 0x484   : > { %v1265_v19 = vpop.f32.mrb[10].mxu0 }
 0x485   : > { %1281 = vst.msk [vmem:[%s1761_s7 + $0x1e] sm:$0xff] %vm198_vm1, %v1265_v19  ;;  %v1594_v20 = vpop.f32.mrb[11].mxu0 }
 0x488   : > { %v1270_v21 = vpop.f32.mrb[12].mxu0 }
 0x489   : > { %1282 = vst.msk [vmem:[%s1761_s7 + $0x26] sm:$0xff] %vm198_vm1, %v1270_v21  ;;  %v1597_v6 = vpop.f32.mrb[13].mxu0 }
 0x48c   : > { %v1275_v22 = vpop.f32.mrb[14].mxu0 }
 0x48d   : > { %1283 = vst.msk [vmem:[%s1761_s7 + $0x2e] sm:$0xf] %vm545_vm4, %v1275_v22  ;;  %v1600_v23 = vpop.f32.mrb[15].mxu0 }
 0x48e PF: > { %s14_s15 = sadd.s32 1, %s1693_s15  }
 0x48f   : > { %p11_p4 = scmp.ge.s32.totalorder %s14_s15, 4  }
 0x491   :  { %13 = sbr.rel (!%p11_p4) target bundleno = 1 (0x1), region = 75 }

// kernel: pyramid_pooling_forward.3
= control target key start
LH: loop header
LB: loop body
LE: loop exit
PB: predicated region body
PF: predicated region fallthrough
CT: control target
= control target key end

     0   :  { %s5165_s12 = smov 0   ;;  %s5167_s13 = smov 0   ;;  %s7100_s0 = inlined_call_operand.vmem [shape: f32[2,16,16,64], index: 0, kind: input, shape index: {}]   ;;  %s7101_s1 = inlined_call_operand.vmem [shape: f32[12,16], index: 1, kind: input, shape index: {}]   ;;  %s7102_s2 = inlined_call_operand.vmem [shape: f32[16,12], index: 2, kind: input, shape index: {}]   ;;  %s7103_s3 = inlined_call_operand.vmem [shape: f32[2,12,12,64], index: 3, kind: output, shape index: {}]  }
   0x1   :  { %s5169_s14 = smov 0  }
   0x2 LB: > { %s25_s15 = sadd.s32 1, %s5137_s13  ;;  %p4783_p0 = scmp.ge.s32.totalorder %s5141_s14, 1  ;;  %s5141_s14 = sphi %s5169_s14, %s13_s14   ;;  %s5137_s13 = sphi %s5167_s13, %s7209_s13   ;;  %s5133_s12 = sphi %s5165_s12, %s7208_s12  }
   0x3   : > { %p27_p1 = scmp.ge.s32.totalorder %s25_s15, 2  ;;  %p168_p2 = scmp.lt.s32.totalorder %s5141_s14, 3 }
   0x5   : > { %s7211_s15 = smov (%p27_p1, %s25_s15), 0  ;;  %p169_p3 = pnand %p4783_p0, %p168_p2 }
   0x7   : > { %172 = sbr.rel (%p169_p3) target bundleno = 568 (0x238), region = 32 }
   0xe   : > { %p203_p4 = scmp.lt.s32.totalorder %s5133_s12, 1  ;;  %v5186_v0 = vld [vmem:[%s7101_s1] sm:$0xff]  ;;  %vm260_vm0 = vcmask 130048   ;;  %v348_v1 = vlaneseq  ;;  %v5229_v22 = vld [vmem:[%s7101_s1 + $0x8] sm:$0xf]  ;;  %vm230_vm1 = vcmask 519168  }
   0xf   : > { %4920 = vmatprep.mubr.msk.f32.mxu0 %vm260_vm0, %v5186_v0  ;;  %4927 = vmatprep.mubr.msk.f32.mxu1 %vm260_vm0, %v5186_v0  ;;  %v5199_v3 = vld [vmem:[%s7102_s2] sm:$0xff]  ;;  %vm228_vm2 = vcmask 523264  }
  0x10   : > { %s7213_s12 = smov (!%p203_p4, %s5133_s12), 1  ;;  %v5194_v2 = vshrl.u32 %v348_v1, 7 }
  0x11   : > { %s4851_s20 = sshll.u32 %s7213_s12, 8  ;;  %s5092_s28 = smul.u32 192, %s7213_s12 }
  0x12   : > { %v5203_v4 = vsub.s32 0, %v5194_v2  ;;  %v691_v5 = vsub.s32 1, %v5194_v2  ;;  %s5209_s23 = scalar_lea.vmem %s7100_s0, %s4851_s20  ;;  %v963_v56 = vsub.s32 2, %v5194_v2  ;;  %v1235_v59 = vsub.s32 3, %v5194_v2 }
  0x13   : > { %v258_v6 = vld [vmem:[%s5209_s23] sm:$0xff]  ;;  %v259_v7 = vld [vmem:[%s5209_s23 + $0x8] sm:$0xff]  ;;  %v4789_v8 = vld [vmem:[%s5209_s23 + $0x10] sm:$0xff]  ;;  %v1507_v61 = vsub.s32 4, %v5194_v2  ;;  %v1779_v63 = vsub.s32 5, %v5194_v2  ;;  %v2051_v1 = vsub.s32 6, %v5194_v2  ;;  %s6791_s4 = scalar_lea.vmem %s7103_s3, %s5092_s28 }
  0x14   : > { %v692_v9 = vrot.slane %v5199_v3, %v691_v5  ;;  %v420_v10 = vrot.slane %v5199_v3, %v5203_v4  ;;  %v5028_v11 = vpack.c.bf16 %v259_v7, %v258_v6  ;;  %v4790_v12 = vld [vmem:[%s5209_s23 + $0x18] sm:$0xff]  ;;  %v4793_v13 = vld [vmem:[%s5209_s23 + $0x20] sm:$0xff]  ;;  %v4794_v14 = vld [vmem:[%s5209_s23 + $0x28] sm:$0xff]  ;;  %v964_v58 = vrot.slane %v5199_v3, %v963_v56 }
  0x15   : > { %v5032_v15 = vpack.c.bf16 %v4790_v12, %v4789_v8  ;;  %v5036_v16 = vpack.c.bf16 %v4794_v14, %v4793_v13  ;;  %v4797_v17 = vld [vmem:[%s5209_s23 + $0x30] sm:$0xff]  ;;  %v4798_v18 = vld [vmem:[%s5209_s23 + $0x38] sm:$0xff]  ;;  %v4801_v20 = vld [vmem:[%s5209_s23 + $0x40] sm:$0xff]  ;;  %v1236_v60 = vrot.slane %v5199_v3, %v1235_v59  ;;  %v1508_v62 = vrot.slane %v5199_v3, %v1507_v61 }
  0x16   : > { %694 = vbcast.lane.b32.xlu1 %v692_v9, 256  ;;  %422 = vbcast.lane.b32.xlu0 %v420_v10, 256  ;;  %v5040_v19 = vpack.c.bf16 %v4798_v18, %v4797_v17  ;;  %v4802_v21 = vld [vmem:[%s5209_s23 + $0x48] sm:$0xff]  ;;  %v4805_v23 = vld [vmem:[%s5209_s23 + $0x50] sm:$0xff]  ;;  %v4806_v24 = vld [vmem:[%s5209_s23 + $0x58] sm:$0xff]  ;;  %v2052_v6 = vrot.slane %v5199_v3, %v2051_v1  ;;  %v2323_v7 = vsub.s32 7, %v5194_v2 }
  0x17   : > { %5029 = vmatprep.subr.bf16.mxu0 %v5028_v11  ;;  %5033 = vmatprep.subr.bf16.mxu1 %v5032_v15  ;;  %v5044_v25 = vpack.c.bf16 %v4802_v21, %v4801_v20  ;;  %v5048_v26 = vpack.c.bf16 %v4806_v24, %v4805_v23  ;;  %v4809_v27 = vld [vmem:[%s5209_s23 + $0x60] sm:$0xff]  ;;  %v4810_v28 = vld [vmem:[%s5209_s23 + $0x68] sm:$0xff]  ;;  %v4813_v29 = vld [vmem:[%s5209_s23 + $0x70] sm:$0xff] }
  0x18   : > { %5031 = vmatpush3.bf16.msra.mxu0 %v5028_v11  ;;  %5035 = vmatpush3.bf16.msra.mxu1 %v5032_v15  ;;  %v4814_v30 = vld [vmem:[%s5209_s23 + $0x78] sm:$0xff]  ;;  %v5052_v31 = vpack.c.bf16 %v4810_v28, %v4809_v27  ;;  %v4817_v33 = vld [vmem:[%s5209_s23 + $0x80] sm:$0xff]  ;;  %v4818_v34 = vld [vmem:[%s5209_s23 + $0x88] sm:$0xff]  ;;  %v2324_v8 = vrot.slane %v5199_v3, %v2323_v7 }
  0x19   : > { %5037 = vmatprep.subr.bf16.mxu0 %v5036_v16  ;;  %5041 = vmatprep.subr.bf16.mxu1 %v5040_v19  ;;  %v5056_v32 = vpack.c.bf16 %v4814_v30, %v4813_v29  ;;  %v4821_v35 = vld [vmem:[%s5209_s23 + $0x90] sm:$0xff]  ;;  %v4822_v36 = vld [vmem:[%s5209_s23 + $0x98] sm:$0xff]  ;;  %v5060_v37 = vpack.c.bf16 %v4818_v34, %v4817_v33  ;;  %v4825_v39 = vld [vmem:[%s5209_s23 + $0xa0] sm:$0xff] }
  0x1a   : > { %698 = vbcast.lane.b32.xlu1 %v692_v9, 264  ;;  %426 = vbcast.lane.b32.xlu0 %v420_v10, 264  ;;  %v5064_v38 = vpack.c.bf16 %v4822_v36, %v4821_v35  ;;  %v4826_v40 = vld [vmem:[%s5209_s23 + $0xa8] sm:$0xff]  ;;  %v4829_v41 = vld [vmem:[%s5209_s23 + $0xb0] sm:$0xff]  ;;  %v4830_v42 = vld [vmem:[%s5209_s23 + $0xb8] sm:$0xff] }
  0x1b   : > { %4921 = vmatmul.mubr.msk.f32.vlgmr.msra.gmra.mrb[0].mxu0 %vm260_vm0, %v5229_v22  ;;  %4928 = vmatmul.mubr.msk.f32.vlgmr.msra.gmra.mrb[0].mxu1 %vm260_vm0, %v5229_v22  ;;  %v5068_v43 = vpack.c.bf16 %v4826_v40, %v4825_v39  ;;  %v5072_v44 = vpack.c.bf16 %v4830_v42, %v4829_v41  ;;  %v4833_v45 = vld [vmem:[%s5209_s23 + $0xc0] sm:$0xff]  ;;  %v4834_v46 = vld [vmem:[%s5209_s23 + $0xc8] sm:$0xff]  ;;  %v4837_v47 = vld [vmem:[%s5209_s23 + $0xd0] sm:$0xff] }
  0x1c   : > { %5039 = vmatpush3.bf16.msra.mxu0 %v5036_v16  ;;  %5043 = vmatpush3.bf16.msra.mxu1 %v5040_v19  ;;  %v4838_v48 = vld [vmem:[%s5209_s23 + $0xd8] sm:$0xff]  ;;  %v5076_v49 = vpack.c.bf16 %v4834_v46, %v4833_v45  ;;  %v4841_v51 = vld [vmem:[%s5209_s23 + $0xe0] sm:$0xff]  ;;  %v4842_v52 = vld [vmem:[%s5209_s23 + $0xe8] sm:$0xff] }
  0x1d   : > { %4934 = vmatprep.mubr.msk.f32.mxu0 %vm260_vm0, %v5186_v0  ;;  %4941 = vmatprep.mubr.msk.f32.mxu1 %vm260_vm0, %v5186_v0  ;;  %v5080_v50 = vpack.c.bf16 %v4838_v48, %v4837_v47  ;;  %v4845_v53 = vld [vmem:[%s5209_s23 + $0xf0] sm:$0xff]  ;;  %v4846_v54 = vld [vmem:[%s5209_s23 + $0xf8] sm:$0xff]  ;;  %v5084_v55 = vpack.c.bf16 %v4842_v52, %v4841_v51  ;;  %v255_v9 = vld [vmem:[%s7102_s2 + $0x8] sm:$0xff] }
  0x1e   : > { %5045 = vmatprep.subr.bf16.mxu0 %v5044_v25  ;;  %5049 = vmatprep.subr.bf16.mxu1 %v5048_v26  ;;  %v5088_v57 = vpack.c.bf16 %v4846_v54, %v4845_v53  ;;  %v2596_v10 = vrot.slane %v255_v9, %v5203_v4  ;;  %v2868_v11 = vrot.slane %v255_v9, %v691_v5  ;;  %v5143_v5 = vmov 1966171168  }
  0x1f   : > { %4935 = vmatmul.mubr.msk.f32.vlgmr.msra.gmra.mrb[2].mxu0 %vm260_vm0, %v5229_v22  ;;  %4942 = vmatmul.mubr.msk.f32.vlgmr.msra.gmra.mrb[2].mxu1 %vm260_vm0, %v5229_v22  ;;  %v3140_v12 = vrot.slane %v255_v9, %v963_v56  ;;  %v3412_v13 = vrot.slane %v255_v9, %v1235_v59  ;;  %v3956_v14 = vrot.slane %v255_v9, %v1779_v63  ;;  %v346_v17 = vunpack.c.l.s4 %v5143_v5 }
  0x20   : > { %5047 = vmatpush3.bf16.msra.mxu0 %v5044_v25  ;;  %5051 = vmatpush3.bf16.msra.mxu1 %v5048_v26  ;;  %v4228_v15 = vrot.slane %v255_v9, %v2051_v1  ;;  %v4500_v16 = vrot.slane %v255_v9, %v2323_v7 }
  0x21   : > { %4948 = vmatprep.mubr.msk.f32.mxu0 %vm260_vm0, %v5186_v0  ;;  %4955 = vmatprep.mubr.msk.f32.mxu1 %vm260_vm0, %v5186_v0  ;;  %v347_v18 = vunpack.c.0.s8 %v346_v17 }
  0x22   : > { %5053 = vmatprep.subr.bf16.mxu0 %v5052_v31  ;;  %5057 = vmatprep.subr.bf16.mxu1 %v5056_v32 }
  0x23   : > { %4949 = vmatmul.mubr.msk.f32.vlgmr.msra.gmra.mrb[4].mxu0 %vm260_vm0, %v5229_v22  ;;  %4956 = vmatmul.mubr.msk.f32.vlgmr.msra.gmra.mrb[4].mxu1 %vm260_vm0, %v5229_v22  ;;  %v5332_v19 = vsub.s32 %v347_v18, %v5194_v2 }
  0x24   : > { %5055 = vmatpush3.bf16.msra.mxu0 %v5052_v31  ;;  %5059 = vmatpush3.bf16.msra.mxu1 %v5056_v32 }
  0x25   : > { %4962 = vmatprep.mubr.msk.f32.mxu0 %vm260_vm0, %v5186_v0  ;;  %4969 = vmatprep.mubr.msk.f32.mxu1 %vm260_vm0, %v5186_v0 }
  0x26   : > { %5061 = vmatprep.subr.bf16.mxu0 %v5060_v37  ;;  %5065 = vmatprep.subr.bf16.mxu1 %v5064_v38 }
  0x27   : > { %4963 = vmatmul.mubr.msk.f32.vlgmr.msra.gmra.mrb[6].mxu0 %vm260_vm0, %v5229_v22  ;;  %4970 = vmatmul.mubr.msk.f32.vlgmr.msra.gmra.mrb[6].mxu1 %vm260_vm0, %v5229_v22 }
  0x28   : > { %5063 = vmatpush3.bf16.msra.mxu0 %v5060_v37  ;;  %5067 = vmatpush3.bf16.msra.mxu1 %v5064_v38 }
  0x29   : > { %4976 = vmatprep.mubr.msk.f32.mxu0 %vm260_vm0, %v5186_v0  ;;  %4983 = vmatprep.mubr.msk.f32.mxu1 %vm260_vm0, %v5186_v0 }
  0x2a   : > { %5069 = vmatprep.subr.bf16.mxu0 %v5068_v43  ;;  %5073 = vmatprep.subr.bf16.mxu1 %v5072_v44 }
  0x2b   : > { %4977 = vmatmul.mubr.msk.f32.vlgmr.msra.gmra.mrb[8].mxu0 %vm260_vm0, %v5229_v22  ;;  %4984 = vmatmul.mubr.msk.f32.vlgmr.msra.gmra.mrb[8].mxu1 %vm260_vm0, %v5229_v22 }
  0x2c   : > { %5071 = vmatpush3.bf16.msra.mxu0 %v5068_v43  ;;  %5075 = vmatpush3.bf16.msra.mxu1 %v5072_v44 }
  0x2d   : > { %4990 = vmatprep.mubr.msk.f32.mxu0 %vm260_vm0, %v5186_v0  ;;  %4997 = vmatprep.mubr.msk.f32.mxu1 %vm260_vm0, %v5186_v0 }
  0x2e   : > { %5077 = vmatprep.subr.bf16.mxu0 %v5076_v49  ;;  %5081 = vmatprep.subr.bf16.mxu1 %v5080_v50 }
  0x2f   : > { %4991 = vmatmul.mubr.msk.f32.vlgmr.msra.gmra.mrb[10].mxu0 %vm260_vm0, %v5229_v22  ;;  %4998 = vmatmul.mubr.msk.f32.vlgmr.msra.gmra.mrb[10].mxu1 %vm260_vm0, %v5229_v22 }
  0x30   : > { %5079 = vmatpush3.bf16.msra.mxu0 %v5076_v49  ;;  %5083 = vmatpush3.bf16.msra.mxu1 %v5080_v50 }
  0x31   : > { %5004 = vmatprep.mubr.msk.f32.mxu0 %vm260_vm0, %v5186_v0  ;;  %5011 = vmatprep.mubr.msk.f32.mxu1 %vm260_vm0, %v5186_v0 }
  0x32   : > { %5085 = vmatprep.subr.bf16.mxu0 %v5084_v55  ;;  %5089 = vmatprep.subr.bf16.mxu1 %v5088_v57 }
  0x33   : > { %5005 = vmatmul.mubr.msk.f32.vlgmr.msra.gmra.mrb[12].mxu0 %vm260_vm0, %v5229_v22  ;;  %5012 = vmatmul.mubr.msk.f32.vlgmr.msra.gmra.mrb[12].mxu1 %vm260_vm0, %v5229_v22 }
  0x34   : > { %5087 = vmatpush3.bf16.msra.mxu0 %v5084_v55  ;;  %5018 = vmatprep.mubr.msk.f32.mxu0 %vm260_vm0, %v5186_v0 }
  0x35   : > { %5091 = vmatpush3.bf16.msra.mxu1 %v5088_v57  ;;  %5025 = vmatprep.mubr.msk.f32.mxu1 %vm260_vm0, %v5186_v0  ;;  %v1780_v0 = vrot.slane %v5199_v3, %v1779_v63  ;;  %v3684_v3 = vrot.slane %v255_v9, %v1507_v61 }
  0x36   : > { %970 = vbcast.lane.b32.xlu1 %v964_v58, 264  ;;  %966 = vbcast.lane.b32.xlu0 %v964_v58, 256 }
  0x37   : > { %5019 = vmatmul.mubr.msk.f32.vlgmr.msra.gmra.mrb[14].mxu0 %vm260_vm0, %v5229_v22 }
  0x38   : > { %5026 = vmatmul.mubr.msk.f32.vlgmr.msra.gmra.mrb[14].mxu1 %vm260_vm0, %v5229_v22 }
  0x3a   : > { %1242 = vbcast.lane.b32.xlu1 %v1236_v60, 264  ;;  %1238 = vbcast.lane.b32.xlu0 %v1236_v60, 256 }
  0x3e   : > { %1514 = vbcast.lane.b32.xlu1 %v1508_v62, 264  ;;  %1510 = vbcast.lane.b32.xlu0 %v1508_v62, 256 }
  0x42   : > { %1786 = vbcast.lane.b32.xlu1 %v1780_v0, 264  ;;  %1782 = vbcast.lane.b32.xlu0 %v1780_v0, 256 }
  0x46   : > { %2058 = vbcast.lane.b32.xlu1 %v2052_v6, 264  ;;  %2054 = vbcast.lane.b32.xlu0 %v2052_v6, 256 }
  0x4a   : > { %2330 = vbcast.lane.b32.xlu1 %v2324_v8, 264  ;;  %2326 = vbcast.lane.b32.xlu0 %v2324_v8, 256 }
  0x4e   : > { %2602 = vbcast.lane.b32.xlu1 %v2596_v10, 264  ;;  %2598 = vbcast.lane.b32.xlu0 %v2596_v10, 256 }
  0x52   : > { %2874 = vbcast.lane.b32.xlu1 %v2868_v11, 264  ;;  %2870 = vbcast.lane.b32.xlu0 %v2868_v11, 256 }
  0x56   : > { %3146 = vbcast.lane.b32.xlu1 %v3140_v12, 264  ;;  %3142 = vbcast.lane.b32.xlu0 %v3140_v12, 256 }
  0x5a   : > { %3418 = vbcast.lane.b32.xlu1 %v3412_v13, 264  ;;  %3414 = vbcast.lane.b32.xlu0 %v3412_v13, 256 }
  0x5e   : > { %3690 = vbcast.lane.b32.xlu1 %v3684_v3, 264  ;;  %3686 = vbcast.lane.b32.xlu0 %v3684_v3, 256 }
  0x62   : > { %3962 = vbcast.lane.b32.xlu1 %v3956_v14, 264  ;;  %3958 = vbcast.lane.b32.xlu0 %v3956_v14, 256 }
  0x66   : > { %4234 = vbcast.lane.b32.xlu1 %v4228_v15, 264  ;;  %4230 = vbcast.lane.b32.xlu0 %v4228_v15, 256 }
  0x6a   : > { %4506 = vbcast.lane.b32.xlu1 %v4500_v16, 264  ;;  %4502 = vbcast.lane.b32.xlu0 %v4500_v16, 256 }
  0x88   : > { %v5334_v20 = vpop.permute.xlu0 %422  ;;  %v5337_v25 = vpop.permute.xlu1 %694 }
  0x8c   : > { %v5372_v49 = vpop.permute.xlu0 %426  ;;  %v5377_v54 = vpop.permute.xlu1 %698 }
  0xee   : > { %v4922_v21 = vpop.f32.mrb[0].mxu0  ;;  %v4929_v23 = vpop.f32.mrb[0].mxu1 }
  0xef   : > { %v399_v22 = vrot.slane %v4922_v21, %v5332_v19  ;;  %v333_v24 = vpop.f32.mrb[1].mxu0  ;;  %v671_v26 = vrot.slane %v4929_v23, %v5332_v19  ;;  %v5343_v29 = vpop.f32.mrb[1].mxu1 }
  0xf0   : > { %v344_v27 = vcombine.high %v333_v24, %v333_v24  ;;  %v5341_v28 = vrot.slane %v333_v24, %v5332_v19  ;;  %v616_v31 = vcombine.high %v5343_v29, %v5343_v29  ;;  %v5350_v32 = vrot.slane %v5343_v29, %v5332_v19 }
  0xf1   : > { %v400_v30 = vcombine.high %v399_v22, %v399_v22  ;;  %v407_v2 = vrot.slane %v399_v22, %v5332_v19  ;;  %v672_v33 = vcombine.high %v671_v26, %v671_v26  ;;  %v679_v34 = vrot.slane %v671_v26, %v5332_v19 }
  0xf2   : > { %v358_v35 = vrot.slane %v344_v27, %v5332_v19  ;;  %v359_v36 = vcombine.high %v5341_v28, %v5341_v28  ;;  %v5356_v37 = vpop.f32.mrb[2].mxu0  ;;  %v5362_v41 = vrot.slane %v5341_v28, %v5332_v19  ;;  %v5364_v42 = vpop.f32.mrb[2].mxu1 }
  0xf3   : > { %v414_v38 = vrot.slane %v400_v30, %v5332_v19  ;;  %v415_v39 = vcombine.high %v407_v2, %v407_v2  ;;  %v463_v40 = vrot.slane %v407_v2, %v5203_v4  ;;  %v5366_v43 = vpop.f32.mrb[3].mxu0  ;;  %v686_v44 = vrot.slane %v672_v33, %v5332_v19  ;;  %v5370_v48 = vpop.f32.mrb[3].mxu1 }
  0xf4   : > { %v687_v45 = vcombine.high %v679_v34, %v679_v34  ;;  %v735_v46 = vrot.slane %v679_v34, %v5203_v4  ;;  %v360_v47 = vcombine.high %v358_v35, %v358_v35  ;;  %v374_v34 = vrot.slane %v358_v35, %v5332_v19 }
  0xf5   : > { %v416_v50 = vcombine.high %v414_v38, %v414_v38  ;;  %v467_v51 = vrot.slane %v414_v38, %v5203_v4  ;;  %v471_v52 = vrot.slane %v415_v39, %v5203_v4  ;;  %v504_v53 = vmul.f32 %v463_v40, %v5334_v20 }
  0xf6   : > { %v505_v55 = vmul.f32 %v463_v40, %v5372_v49  ;;  %v688_v56 = vcombine.high %v686_v44, %v686_v44  ;;  %v739_v57 = vrot.slane %v686_v44, %v5203_v4  ;;  %v743_v58 = vrot.slane %v687_v45, %v5203_v4  ;;  %v5382_v59 = vpop.f32.mrb[4].mxu0  ;;  %v5388_v0 = vpop.f32.mrb[4].mxu1 }
  0xf7   : > { %v475_v60 = vrot.slane %v416_v50, %v5203_v4  ;;  %v506_v61 = vmul.f32 %v467_v51, %v5334_v20  ;;  %v507_v62 = vmul.f32 %v467_v51, %v5372_v49  ;;  %v508_v63 = vmul.f32 %v471_v52, %v5334_v20  ;;  %v5390_v1 = vpop.f32.mrb[5].mxu0  ;;  %v5396_v10 = vpop.f32.mrb[5].mxu1 }
  0xf8   : > { %v509_v6 = vmul.f32 %v471_v52, %v5372_v49  ;;  %v747_v7 = vrot.slane %v688_v56, %v5203_v4  ;;  %v776_v8 = vmul.f32 %v735_v46, %v5337_v25  ;;  %v777_v9 = vmul.f32 %v735_v46, %v5377_v54 }
  0xf9   : > { %v510_v11 = vmul.f32 %v475_v60, %v5334_v20  ;;  %v511_v12 = vmul.f32 %v475_v60, %v5372_v49  ;;  %v778_v13 = vmul.f32 %v739_v57, %v5337_v25  ;;  %v779_v3 = vmul.f32 %v739_v57, %v5377_v54 }
  0xfa   : > { %v780_v14 = vmul.f32 %v743_v58, %v5337_v25  ;;  %v781_v15 = vmul.f32 %v743_v58, %v5377_v54  ;;  %v782_v16 = vmul.f32 %v747_v7, %v5337_v25  ;;  %v783_v5 = vmul.f32 %v747_v7, %v5377_v54  ;;  %v5406_v17 = vpop.f32.mrb[6].mxu0  ;;  %v5416_v24 = vpop.f32.mrb[6].mxu1 }
  0xfb   : > { %v5408_v18 = vadd.f32 %v776_v8, %v504_v53  ;;  %v5410_v21 = vadd.f32 %v777_v9, %v505_v55  ;;  %v5412_v22 = vadd.f32 %v778_v13, %v506_v61  ;;  %v5414_v23 = vadd.f32 %v779_v3, %v507_v62  ;;  %7124 = vst [vmem:[#allocation2_spill] sm:$0xff] %v5416_v24  ;;  %v5418_v26 = vpop.f32.mrb[7].mxu0  ;;  %v5428_v33 = vpop.f32.mrb[7].mxu1 }
  0xfc   : > { %7125 = vst [vmem:[#allocation3_spill] sm:$0xff] %v5418_v26  ;;  %v5420_v27 = vadd.f32 %v780_v14, %v508_v63  ;;  %v5422_v28 = vadd.f32 %v781_v15, %v509_v6  ;;  %v5424_v30 = vadd.f32 %v782_v16, %v510_v11  ;;  %v5426_v2 = vadd.f32 %v783_v5, %v511_v12 }
  0xfd   : > { %7126 = vst [vmem:[#allocation4_spill] sm:$0xff] %v5428_v33  ;;  %v381_v38 = vrot.slane %v359_v36, %v5332_v19  ;;  %v388_v39 = vrot.slane %v360_v47, %v5332_v19  ;;  %v389_v40 = vcombine.high %v5362_v41, %v5362_v41  ;;  %v431_v44 = vrot.slane %v5362_v41, %v5203_v4 }
  0xfe   : > { %v630_v45 = vrot.slane %v616_v31, %v5332_v19  ;;  %v631_v46 = vcombine.high %v5350_v32, %v5350_v32  ;;  %v639_v35 = vrot.slane %v5350_v32, %v5332_v19  ;;  %v390_v36 = vcombine.high %v374_v34, %v374_v34  ;;  %v5446_v52 = vpop.f32.mrb[8].mxu0  ;;  %v5471_v5 = vpop.f32.mrb[8].mxu1 }
  0xff   : > { %v391_v50 = vcombine.high %v381_v38, %v381_v38  ;;  %v392_v47 = vcombine.high %v388_v39, %v388_v39  ;;  %v435_v51 = vrot.slane %v381_v38, %v5203_v4  ;;  %7127 = vst [vmem:[#allocation5_spill] sm:$0xff] %v5446_v52  ;;  %v439_v41 = vrot.slane %v389_v40, %v5203_v4 }
 0x100   : > { %v447_v53 = vrot.slane %v374_v34, %v5203_v4  ;;  %v451_v29 = vrot.slane %v388_v39, %v5203_v4  ;;  %v488_v31 = vmul.f32 %v431_v44, %v5334_v20  ;;  %v455_v56 = vrot.slane %v390_v36, %v5203_v4  ;;  %7128 = vst [vmem:[#allocation6_spill] sm:$0xff] %v5471_v5 }
 0x101   : > { %v443_v55 = vrot.slane %v391_v50, %v5203_v4  ;;  %v459_v32 = vrot.slane %v392_v47, %v5203_v4  ;;  %v489_v57 = vmul.f32 %v431_v44, %v5372_v49  ;;  %v490_v58 = vmul.f32 %v435_v51, %v5334_v20 }
 0x102   : > { %v491_v60 = vmul.f32 %v435_v51, %v5372_v49  ;;  %v492_v61 = vmul.f32 %v439_v41, %v5334_v20  ;;  %v493_v62 = vmul.f32 %v439_v41, %v5372_v49  ;;  %v496_v7 = vmul.f32 %v447_v53, %v5334_v20 }
 0x103   : > { %v494_v63 = vmul.f32 %v443_v55, %v5334_v20  ;;  %v495_v6 = vmul.f32 %v443_v55, %v5372_v49  ;;  %v497_v8 = vmul.f32 %v447_v53, %v5372_v49  ;;  %v498_v9 = vmul.f32 %v451_v29, %v5334_v20 }
 0x104   : > { %v499_v11 = vmul.f32 %v451_v29, %v5372_v49  ;;  %v500_v12 = vmul.f32 %v455_v56, %v5334_v20  ;;  %v501_v13 = vmul.f32 %v455_v56, %v5372_v49  ;;  %v502_v3 = vmul.f32 %v459_v32, %v5334_v20 }
 0x105   : > { %v503_v14 = vmul.f32 %v459_v32, %v5372_v49  ;;  %v632_v15 = vcombine.high %v630_v45, %v630_v45  ;;  %v646_v16 = vrot.slane %v630_v45, %v5332_v19  ;;  %v653_v34 = vrot.slane %v631_v46, %v5332_v19 }
 0x106   : > { %v661_v38 = vcombine.high %v639_v35, %v639_v35  ;;  %v703_v39 = vrot.slane %v639_v35, %v5203_v4  ;;  %v943_v40 = vrot.slane %v5356_v37, %v5332_v19  ;;  %v1215_v49 = vrot.slane %v5364_v42, %v5332_v19 }
 0x107   : > { %v660_v44 = vrot.slane %v632_v15, %v5332_v19  ;;  %v662_v36 = vcombine.high %v646_v16, %v646_v16  ;;  %v719_v20 = vrot.slane %v646_v16, %v5203_v4  ;;  %v663_v50 = vcombine.high %v653_v34, %v653_v34 }
 0x108   : > { %v707_v45 = vrot.slane %v653_v34, %v5203_v4  ;;  %v711_v47 = vrot.slane %v661_v38, %v5203_v4  ;;  %v760_v46 = vmul.f32 %v703_v39, %v5337_v25  ;;  %v761_v41 = vmul.f32 %v703_v39, %v5377_v54 }
 0x109   : > { %v664_v51 = vcombine.high %v660_v44, %v660_v44  ;;  %v723_v35 = vrot.slane %v660_v44, %v5203_v4  ;;  %v727_v37 = vrot.slane %v662_v36, %v5203_v4  ;;  %v715_v53 = vrot.slane %v663_v50, %v5203_v4 }
 0x10a   : > { %v762_v29 = vmul.f32 %v707_v45, %v5337_v25  ;;  %v763_v42 = vmul.f32 %v707_v45, %v5377_v54  ;;  %v764_v55 = vmul.f32 %v711_v47, %v5337_v25  ;;  %v765_v32 = vmul.f32 %v711_v47, %v5377_v54 }
 0x10b   : > { %v731_v56 = vrot.slane %v664_v51, %v5203_v4  ;;  %v768_v15 = vmul.f32 %v719_v20, %v5337_v25  ;;  %v769_v16 = vmul.f32 %v719_v20, %v5377_v54  ;;  %v766_v34 = vmul.f32 %v715_v53, %v5337_v25  ;;  %v5503_v51 = vpop.f32.mrb[9].mxu0 }
 0x10c   : > { %v767_v38 = vmul.f32 %v715_v53, %v5377_v54  ;;  %v770_v39 = vmul.f32 %v723_v35, %v5337_v25  ;;  %v771_v44 = vmul.f32 %v723_v35, %v5377_v54  ;;  %v772_v36 = vmul.f32 %v727_v37, %v5337_v25  ;;  %7129 = vst [vmem:[#allocation7_spill] sm:$0xff] %v5503_v51 }
 0x10d   : > { %v773_v50 = vmul.f32 %v727_v37, %v5377_v54  ;;  %v774_v45 = vmul.f32 %v731_v56, %v5337_v25  ;;  %v775_v47 = vmul.f32 %v731_v56, %v5377_v54  ;;  %v5505_v5 = vadd.f32 %v760_v46, %v488_v31  ;;  %v5558_v56 = vpop.f32.mrb[9].mxu1 }
 0x10e   : > { %v5507_v20 = vadd.f32 %v761_v41, %v489_v57  ;;  %v5509_v52 = vadd.f32 %v762_v29, %v490_v58  ;;  %v5511_v53 = vadd.f32 %v763_v42, %v491_v60  ;;  %v5513_v33 = vadd.f32 %v764_v55, %v492_v61  ;;  %7130 = vst [vmem:[#allocation8_spill] sm:$0xff] %v5558_v56 }
 0x10f   : > { %v5515_v35 = vadd.f32 %v765_v32, %v493_v62  ;;  %v5517_v26 = vadd.f32 %v766_v34, %v494_v63  ;;  %v5519_v37 = vadd.f32 %v767_v38, %v495_v6  ;;  %v5521_v25 = vadd.f32 %v768_v15, %v496_v7 }
 0x110   : > { %v5523_v54 = vadd.f32 %v769_v16, %v497_v8  ;;  %v5525_v31 = vadd.f32 %v770_v39, %v498_v9  ;;  %v5527_v57 = vadd.f32 %v771_v44, %v499_v11  ;;  %v5529_v58 = vadd.f32 %v772_v36, %v500_v12 }
 0x111   : > { %v5531_v60 = vadd.f32 %v773_v50, %v501_v13  ;;  %v5533_v61 = vadd.f32 %v774_v45, %v502_v3  ;;  %v5535_v62 = vadd.f32 %v775_v47, %v503_v14  ;;  %v944_v63 = vcombine.high %v943_v40, %v943_v40  ;;  %v5549_v13 = vpop.permute.xlu1 %970  ;;  %v5551_v3 = vpop.permute.xlu0 %966 }
 0x112   : > { %v951_v6 = vrot.slane %v943_v40, %v5332_v19  ;;  %v1216_v46 = vcombine.high %v1215_v49, %v1215_v49  ;;  %v1223_v7 = vrot.slane %v1215_v49, %v5332_v19  ;;  %v888_v8 = vcombine.high %v5366_v43, %v5366_v43 }
 0x113   : > { %v895_v9 = vrot.slane %v5366_v43, %v5332_v19  ;;  %v1160_v11 = vcombine.high %v5370_v48, %v5370_v48  ;;  %v5547_v12 = vrot.slane %v5370_v48, %v5332_v19  ;;  %v958_v14 = vrot.slane %v944_v63, %v5332_v19 }
 0x114   : > { %v959_v40 = vcombine.high %v951_v6, %v951_v6  ;;  %v1007_v49 = vrot.slane %v951_v6, %v5203_v4  ;;  %v1230_v41 = vrot.slane %v1216_v46, %v5332_v19  ;;  %v1231_v29 = vcombine.high %v1223_v7, %v1223_v7 }
 0x115   : > { %v1279_v43 = vrot.slane %v1223_v7, %v5203_v4  ;;  %v902_v42 = vrot.slane %v888_v8, %v5332_v19  ;;  %v903_v55 = vcombine.high %v895_v9, %v895_v9  ;;  %v960_v48 = vcombine.high %v958_v14, %v958_v14  ;;  %v5574_v8 = vpop.permute.xlu1 %1242 }
 0x116   : > { %v1011_v32 = vrot.slane %v958_v14, %v5203_v4  ;;  %v1015_v15 = vrot.slane %v959_v40, %v5203_v4  ;;  %v1048_v16 = vmul.f32 %v1007_v49, %v5551_v3  ;;  %v1049_v34 = vmul.f32 %v1007_v49, %v5549_v13  ;;  %v5576_v14 = vpop.permute.xlu0 %1238 }
 0x117   : > { %v1232_v38 = vcombine.high %v1230_v41, %v1230_v41  ;;  %v1283_v39 = vrot.slane %v1230_v41, %v5203_v4  ;;  %v1287_v44 = vrot.slane %v1231_v29, %v5203_v4  ;;  %v1019_v36 = vrot.slane %v960_v48, %v5203_v4 }
 0x118   : > { %v1050_v50 = vmul.f32 %v1011_v32, %v5551_v3  ;;  %v1051_v45 = vmul.f32 %v1011_v32, %v5549_v13  ;;  %v1052_v47 = vmul.f32 %v1015_v15, %v5551_v3  ;;  %v1053_v63 = vmul.f32 %v1015_v15, %v5549_v13 }
 0x119   : > { %v1072_v6 = vadd.f32 %v1048_v16, %v5408_v18  ;;  %v1073_v46 = vadd.f32 %v1049_v34, %v5410_v21  ;;  %v1291_v7 = vrot.slane %v1232_v38, %v5203_v4  ;;  %v1054_v40 = vmul.f32 %v1019_v36, %v5551_v3 }
 0x11a   : > { %v1055_v49 = vmul.f32 %v1019_v36, %v5549_v13  ;;  %v1074_v41 = vadd.f32 %v1050_v50, %v5412_v22  ;;  %v1075_v29 = vadd.f32 %v1051_v45, %v5414_v23  ;;  %v1076_v48 = vadd.f32 %v1052_v47, %v5420_v27 }
 0x11b   : > { %v1077_v18 = vadd.f32 %v1053_v63, %v5422_v28  ;;  %v1320_v21 = vmul.f32 %v1279_v43, %v5576_v14  ;;  %v1321_v32 = vmul.f32 %v1279_v43, %v5574_v8  ;;  %v1078_v15 = vadd.f32 %v1054_v40, %v5424_v30 }
 0x11c   : > { %v1079_v16 = vadd.f32 %v1055_v49, %v5426_v2  ;;  %v1322_v34 = vmul.f32 %v1283_v39, %v5576_v14  ;;  %v1323_v38 = vmul.f32 %v1283_v39, %v5574_v8  ;;  %v1324_v22 = vmul.f32 %v1287_v44, %v5576_v14 }
 0x11d   : > { %v1325_v23 = vmul.f32 %v1287_v44, %v5574_v8  ;;  %v1326_v27 = vmul.f32 %v1291_v7, %v5576_v14  ;;  %v1327_v28 = vmul.f32 %v1291_v7, %v5574_v8  ;;  %v5594_v36 = vadd.f32 %v1320_v21, %v1072_v6 }
 0x11e   : > { %v5596_v50 = vadd.f32 %v1321_v32, %v1073_v46  ;;  %v5598_v43 = vadd.f32 %v1322_v34, %v1074_v41  ;;  %v5600_v30 = vadd.f32 %v1323_v38, %v1075_v29  ;;  %v5602_v2 = vadd.f32 %v1324_v22, %v1076_v48 }
 0x11f   : > { %v5604_v45 = vadd.f32 %v1325_v23, %v1077_v18  ;;  %v5606_v39 = vadd.f32 %v1326_v27, %v1078_v15  ;;  %v5608_v47 = vadd.f32 %v1327_v28, %v1079_v16  ;;  %v904_v44 = vcombine.high %v902_v42, %v902_v42 }
 0x120   : > { %v911_v63 = vrot.slane %v895_v9, %v5332_v19  ;;  %v918_v6 = vrot.slane %v902_v42, %v5332_v19  ;;  %v925_v46 = vrot.slane %v903_v55, %v5332_v19  ;;  %v1174_v7 = vrot.slane %v1160_v11, %v5332_v19 }
 0x121   : > { %v1175_v40 = vcombine.high %v5547_v12, %v5547_v12  ;;  %v1183_v49 = vrot.slane %v5547_v12, %v5332_v19  ;;  %v5620_v41 = vrot.slane %v5382_v59, %v5332_v19  ;;  %v932_v29 = vrot.slane %v904_v44, %v5332_v19 }
 0x122   : > { %v933_v48 = vcombine.high %v911_v63, %v911_v63  ;;  %v934_v9 = vcombine.high %v918_v6, %v918_v6  ;;  %v935_v18 = vcombine.high %v925_v46, %v925_v46  ;;  %v975_v42 = vrot.slane %v911_v63, %v5203_v4 }
 0x123   : > { %v979_v55 = vrot.slane %v925_v46, %v5203_v4  ;;  %v991_v11 = vrot.slane %v918_v6, %v5203_v4  ;;  %v1176_v21 = vcombine.high %v1174_v7, %v1174_v7  ;;  %v936_v32 = vcombine.high %v932_v29, %v932_v29 }
 0x124   : > { %v983_v15 = vrot.slane %v933_v48, %v5203_v4  ;;  %v987_v12 = vrot.slane %v935_v18, %v5203_v4  ;;  %v995_v59 = vrot.slane %v932_v29, %v5203_v4  ;;  %v999_v16 = vrot.slane %v934_v9, %v5203_v4  ;;  %v5641_v48 = vpop.f32.mrb[10].mxu0 }
 0x125   : > { %v1032_v34 = vmul.f32 %v975_v42, %v5551_v3  ;;  %v1033_v38 = vmul.f32 %v975_v42, %v5549_v13  ;;  %v1034_v22 = vmul.f32 %v979_v55, %v5551_v3  ;;  %v1003_v23 = vrot.slane %v936_v32, %v5203_v4  ;;  %7131 = vst [vmem:[#allocation9_spill] sm:$0xff] %v5641_v48 }
 0x126   : > { %v1035_v27 = vmul.f32 %v979_v55, %v5549_v13  ;;  %v1036_v28 = vmul.f32 %v983_v15, %v5551_v3  ;;  %v1037_v44 = vmul.f32 %v983_v15, %v5549_v13  ;;  %v1038_v63 = vmul.f32 %v987_v12, %v5551_v3 }
 0x127   : > { %v1039_v6 = vmul.f32 %v987_v12, %v5549_v13  ;;  %v1040_v46 = vmul.f32 %v991_v11, %v5551_v3  ;;  %v1041_v29 = vmul.f32 %v991_v11, %v5549_v13  ;;  %v1042_v9 = vmul.f32 %v995_v59, %v5551_v3 }
 0x128   : > { %v1043_v18 = vmul.f32 %v995_v59, %v5549_v13  ;;  %v1044_v42 = vmul.f32 %v999_v16, %v5551_v3  ;;  %v1045_v55 = vmul.f32 %v999_v16, %v5549_v13  ;;  %v1046_v32 = vmul.f32 %v1003_v23, %v5551_v3 }
 0x129   : > { %v1047_v15 = vmul.f32 %v1003_v23, %v5549_v13  ;;  %v1056_v12 = vadd.f32 %v1032_v34, %v5505_v5  ;;  %v1057_v56 = vadd.f32 %v1033_v38, %v5507_v20  ;;  %v1058_v11 = vadd.f32 %v1034_v22, %v5509_v52  ;;  %v5667_v34 = vpop.f32.mrb[10].mxu1 }
 0x12a   : > { %v1059_v48 = vadd.f32 %v1035_v27, %v5511_v53  ;;  %v1060_v51 = vadd.f32 %v1036_v28, %v5513_v33  ;;  %v1061_v59 = vadd.f32 %v1037_v44, %v5515_v35  ;;  %v1062_v24 = vadd.f32 %v1038_v63, %v5517_v26 }
 0x12b   : > { %v1063_v16 = vadd.f32 %v1039_v6, %v5519_v37  ;;  %v1064_v3 = vadd.f32 %v1040_v46, %v5521_v25  ;;  %v1065_v13 = vadd.f32 %v1041_v29, %v5523_v54  ;;  %v1066_v5 = vadd.f32 %v1042_v9, %v5525_v31  ;;  %v5686_v46 = vpop.f32.mrb[11].mxu0 }
 0x12c   : > { %v1067_v20 = vadd.f32 %v1043_v18, %v5527_v57  ;;  %v1068_v52 = vadd.f32 %v1044_v42, %v5529_v58  ;;  %v1069_v53 = vadd.f32 %v1045_v55, %v5531_v60  ;;  %v1070_v33 = vadd.f32 %v1046_v32, %v5533_v61 }
 0x12d   : > { %v1071_v35 = vadd.f32 %v1047_v15, %v5535_v62  ;;  %v1190_v26 = vrot.slane %v1174_v7, %v5332_v19  ;;  %v1197_v37 = vrot.slane %v1175_v40, %v5332_v19  ;;  %v1204_v25 = vrot.slane %v1176_v21, %v5332_v19 }
 0x12e   : > { %v1205_v54 = vcombine.high %v1183_v49, %v1183_v49  ;;  %v1247_v31 = vrot.slane %v1183_v49, %v5203_v4  ;;  %v1488_v57 = vcombine.high %v5620_v41, %v5620_v41 }
 0x12f   : > { %v1206_v58 = vcombine.high %v1190_v26, %v1190_v26  ;;  %v1207_v60 = vcombine.high %v1197_v37, %v1197_v37  ;;  %v1251_v61 = vrot.slane %v1197_v37, %v5203_v4  ;;  %v1263_v62 = vrot.slane %v1190_v26, %v5203_v4 }
 0x130   : > { %v1208_v38 = vcombine.high %v1204_v25, %v1204_v25  ;;  %v1255_v7 = vrot.slane %v1205_v54, %v5203_v4  ;;  %v1267_v40 = vrot.slane %v1204_v25, %v5203_v4  ;;  %v1304_v22 = vmul.f32 %v1247_v31, %v5576_v14 }
 0x131   : > { %v1259_v21 = vrot.slane %v1207_v60, %v5203_v4  ;;  %v1271_v49 = vrot.slane %v1206_v58, %v5203_v4  ;;  %v1305_v23 = vmul.f32 %v1247_v31, %v5574_v8  ;;  %v1306_v27 = vmul.f32 %v1251_v61, %v5576_v14 }
 0x132   : > { %v1275_v28 = vrot.slane %v1208_v38, %v5203_v4  ;;  %v1307_v44 = vmul.f32 %v1251_v61, %v5574_v8  ;;  %v1308_v63 = vmul.f32 %v1255_v7, %v5576_v14  ;;  %v1309_v6 = vmul.f32 %v1255_v7, %v5574_v8 }
 0x133   : > { %v1310_v29 = vmul.f32 %v1259_v21, %v5576_v14  ;;  %v1311_v9 = vmul.f32 %v1259_v21, %v5574_v8  ;;  %v1312_v18 = vmul.f32 %v1263_v62, %v5576_v14  ;;  %v1313_v42 = vmul.f32 %v1263_v62, %v5574_v8 }
 0x134   : > { %v1314_v55 = vmul.f32 %v1267_v40, %v5576_v14  ;;  %v1315_v32 = vmul.f32 %v1267_v40, %v5574_v8  ;;  %v1316_v15 = vmul.f32 %v1271_v49, %v5576_v14  ;;  %v1317_v26 = vmul.f32 %v1271_v49, %v5574_v8 }
 0x135   : > { %v1318_v37 = vmul.f32 %v1275_v28, %v5576_v14  ;;  %v1319_v25 = vmul.f32 %v1275_v28, %v5574_v8  ;;  %v5698_v54 = vadd.f32 %v1304_v22, %v1056_v12  ;;  %v5700_v31 = vadd.f32 %v1305_v23, %v1057_v56  ;;  %v5753_v28 = vpop.f32.mrb[11].mxu1 }
 0x136   : > { %v5702_v58 = vadd.f32 %v1306_v27, %v1058_v11  ;;  %v5704_v60 = vadd.f32 %v1307_v44, %v1059_v48  ;;  %v5706_v61 = vadd.f32 %v1308_v63, %v1060_v51  ;;  %v5708_v62 = vadd.f32 %v1309_v6, %v1061_v59 }
 0x137   : > { %v5710_v38 = vadd.f32 %v1310_v29, %v1062_v24  ;;  %v5712_v7 = vadd.f32 %v1311_v9, %v1063_v16  ;;  %v5714_v40 = vadd.f32 %v1312_v18, %v1064_v3  ;;  %v5716_v14 = vadd.f32 %v1313_v42, %v1065_v13 }
 0x138   : > { %v5718_v8 = vadd.f32 %v1314_v55, %v1066_v5  ;;  %v5720_v56 = vadd.f32 %v1315_v32, %v1067_v20  ;;  %v5722_v12 = vadd.f32 %v1316_v15, %v1068_v52  ;;  %v5724_v48 = vadd.f32 %v1317_v26, %v1069_v53 }
 0x139   : > { %v5726_v51 = vadd.f32 %v1318_v37, %v1070_v33  ;;  %v5728_v11 = vadd.f32 %v1319_v25, %v1071_v35  ;;  %v1495_v24 = vrot.slane %v5620_v41, %v5332_v19  ;;  %v1502_v59 = vrot.slane %v1488_v57, %v5332_v19  ;;  %v5743_v33 = vpop.permute.xlu1 %1514  ;;  %v5745_v35 = vpop.permute.xlu0 %1510 }
 0x13a   : > { %v1759_v16 = vrot.slane %v5388_v0, %v5332_v19  ;;  %v1432_v3 = vcombine.high %v5390_v1, %v5390_v1  ;;  %v1439_v13 = vrot.slane %v5390_v1, %v5332_v19  ;;  %v1704_v5 = vcombine.high %v5396_v10, %v5396_v10 }
 0x13b   : > { %v1503_v20 = vcombine.high %v1495_v24, %v1495_v24  ;;  %v1504_v52 = vcombine.high %v1502_v59, %v1502_v59  ;;  %v1551_v53 = vrot.slane %v1495_v24, %v5203_v4  ;;  %v1555_v41 = vrot.slane %v1502_v59, %v5203_v4 }
 0x13c   : > { %v1760_v0 = vcombine.high %v1759_v16, %v1759_v16  ;;  %v1767_v57 = vrot.slane %v1759_v16, %v5332_v19  ;;  %v1446_v22 = vrot.slane %v1432_v3, %v5332_v19  ;;  %v1447_v21 = vcombine.high %v1439_v13, %v1439_v13 }
 0x13d   : > { %v1559_v1 = vrot.slane %v1503_v20, %v5203_v4  ;;  %v1563_v49 = vrot.slane %v1504_v52, %v5203_v4  ;;  %v1592_v23 = vmul.f32 %v1551_v53, %v5745_v35  ;;  %v1593_v27 = vmul.f32 %v1551_v53, %v5743_v33 }
 0x13e   : > { %v1594_v44 = vmul.f32 %v1555_v41, %v5745_v35  ;;  %v1595_v63 = vmul.f32 %v1555_v41, %v5743_v33  ;;  %v1774_v6 = vrot.slane %v1760_v0, %v5332_v19  ;;  %v1775_v29 = vcombine.high %v1767_v57, %v1767_v57 }
 0x13f   : > { %v1596_v9 = vmul.f32 %v1559_v1, %v5745_v35  ;;  %v1597_v18 = vmul.f32 %v1559_v1, %v5743_v33  ;;  %v1598_v42 = vmul.f32 %v1563_v49, %v5745_v35  ;;  %v1599_v55 = vmul.f32 %v1563_v49, %v5743_v33 }
 0x140   : > { %v1616_v32 = vadd.f32 %v1592_v23, %v5594_v36  ;;  %v1617_v15 = vadd.f32 %v1593_v27, %v5596_v50  ;;  %v1618_v26 = vadd.f32 %v1594_v44, %v5598_v43  ;;  %v1619_v37 = vadd.f32 %v1595_v63, %v5600_v30  ;;  %v5773_v50 = vpop.permute.xlu1 %1786  ;;  %v5775_v43 = vpop.permute.xlu0 %1782 }
 0x141   : > { %v1620_v25 = vadd.f32 %v1596_v9, %v5602_v2  ;;  %v1621_v24 = vadd.f32 %v1597_v18, %v5604_v45  ;;  %v1622_v59 = vadd.f32 %v1598_v42, %v5606_v39  ;;  %v1623_v16 = vadd.f32 %v1599_v55, %v5608_v47 }
 0x142   : > { %v1776_v3 = vcombine.high %v1774_v6, %v1774_v6  ;;  %v1823_v20 = vrot.slane %v1767_v57, %v5203_v4  ;;  %v1827_v52 = vrot.slane %v1774_v6, %v5203_v4  ;;  %v1831_v36 = vrot.slane %v1775_v29, %v5203_v4 }
 0x143   : > { %v1448_v30 = vcombine.high %v1446_v22, %v1446_v22  ;;  %v1455_v2 = vrot.slane %v1439_v13, %v5332_v19  ;;  %v1462_v45 = vrot.slane %v1446_v22, %v5332_v19  ;;  %v1469_v39 = vrot.slane %v1447_v21, %v5332_v19 }
 0x144   : > { %v1835_v47 = vrot.slane %v1776_v3, %v5203_v4  ;;  %v1864_v53 = vmul.f32 %v1823_v20, %v5775_v43  ;;  %v1865_v41 = vmul.f32 %v1823_v20, %v5773_v50  ;;  %v1866_v0 = vmul.f32 %v1827_v52, %v5775_v43 }
 0x145   : > { %v1867_v57 = vmul.f32 %v1827_v52, %v5773_v50  ;;  %v1868_v1 = vmul.f32 %v1831_v36, %v5775_v43  ;;  %v1869_v49 = vmul.f32 %v1831_v36, %v5773_v50  ;;  %v1476_v13 = vrot.slane %v1448_v30, %v5332_v19 }
 0x146   : > { %v1870_v22 = vmul.f32 %v1835_v47, %v5775_v43  ;;  %v1871_v21 = vmul.f32 %v1835_v47, %v5773_v50  ;;  %v5790_v23 = vadd.f32 %v1864_v53, %v1616_v32  ;;  %v5792_v27 = vadd.f32 %v1865_v41, %v1617_v15 }
 0x147   : > { %v5794_v44 = vadd.f32 %v1866_v0, %v1618_v26  ;;  %v5796_v63 = vadd.f32 %v1867_v57, %v1619_v37  ;;  %v5798_v6 = vadd.f32 %v1868_v1, %v1620_v25  ;;  %v5800_v29 = vadd.f32 %v1869_v49, %v1621_v24 }
 0x148   : > { %v5802_v9 = vadd.f32 %v1870_v22, %v1622_v59  ;;  %v5804_v18 = vadd.f32 %v1871_v21, %v1623_v16  ;;  %v1477_v42 = vcombine.high %v1455_v2, %v1455_v2  ;;  %v1478_v55 = vcombine.high %v1462_v45, %v1462_v45  ;;  %v5828_v22 = vpop.f32.mrb[12].mxu0 }
 0x149   : > { %v1479_v3 = vcombine.high %v1469_v39, %v1469_v39  ;;  %v1480_v20 = vcombine.high %v1476_v13, %v1476_v13  ;;  %v1519_v32 = vrot.slane %v1455_v2, %v5203_v4  ;;  %v1523_v15 = vrot.slane %v1469_v39, %v5203_v4 }
 0x14a   : > { %v1527_v26 = vrot.slane %v1477_v42, %v5203_v4  ;;  %v1535_v37 = vrot.slane %v1462_v45, %v5203_v4  ;;  %v1539_v25 = vrot.slane %v1476_v13, %v5203_v4  ;;  %v1543_v24 = vrot.slane %v1478_v55, %v5203_v4 }
 0x14b   : > { %v1531_v59 = vrot.slane %v1479_v3, %v5203_v4  ;;  %v1547_v16 = vrot.slane %v1480_v20, %v5203_v4  ;;  %v1576_v52 = vmul.f32 %v1519_v32, %v5745_v35  ;;  %v1577_v36 = vmul.f32 %v1519_v32, %v5743_v33 }
 0x14c   : > { %v1578_v30 = vmul.f32 %v1523_v15, %v5745_v35  ;;  %v1579_v2 = vmul.f32 %v1523_v15, %v5743_v33  ;;  %v1580_v39 = vmul.f32 %v1527_v26, %v5745_v35  ;;  %v1581_v45 = vmul.f32 %v1527_v26, %v5743_v33 }
 0x14d   : > { %v1582_v47 = vmul.f32 %v1531_v59, %v5745_v35  ;;  %v1583_v53 = vmul.f32 %v1531_v59, %v5743_v33  ;;  %v1584_v41 = vmul.f32 %v1535_v37, %v5745_v35  ;;  %v1585_v0 = vmul.f32 %v1535_v37, %v5743_v33  ;;  %v5898_v37 = vpop.f32.mrb[12].mxu1 }
 0x14e   : > { %v1586_v57 = vmul.f32 %v1539_v25, %v5745_v35  ;;  %v1587_v1 = vmul.f32 %v1539_v25, %v5743_v33  ;;  %v1588_v49 = vmul.f32 %v1543_v24, %v5745_v35  ;;  %v1589_v13 = vmul.f32 %v1543_v24, %v5743_v33 }
 0x14f   : > { %v1590_v21 = vmul.f32 %v1547_v16, %v5745_v35  ;;  %v1591_v42 = vmul.f32 %v1547_v16, %v5743_v33  ;;  %v5833_v55 = vadd.f32 %v1576_v52, %v5698_v54  ;;  %v5836_v3 = vadd.f32 %v1577_v36, %v5700_v31 }
 0x150   : > { %v5839_v20 = vadd.f32 %v1578_v30, %v5702_v58  ;;  %v5842_v32 = vadd.f32 %v1579_v2, %v5704_v60  ;;  %v5845_v15 = vadd.f32 %v1580_v39, %v5706_v61  ;;  %v5848_v26 = vadd.f32 %v1581_v45, %v5708_v62 }
 0x151   : > { %v5851_v33 = vadd.f32 %v1582_v47, %v5710_v38  ;;  %v5854_v54 = vadd.f32 %v1583_v53, %v5712_v7  ;;  %v5857_v31 = vadd.f32 %v1584_v41, %v5714_v40  ;;  %v5860_v58 = vadd.f32 %v1585_v0, %v5716_v14 }
 0x152   : > { %v5863_v60 = vadd.f32 %v1586_v57, %v5718_v8  ;;  %v5866_v61 = vadd.f32 %v1587_v1, %v5720_v56  ;;  %v5869_v62 = vadd.f32 %v1588_v49, %v5722_v12  ;;  %v5872_v38 = vadd.f32 %v1589_v13, %v5724_v48  ;;  %v7132_v12 = vld [vmem:[#allocation2_spill] sm:$0xff] }
 0x153   : > { %v5875_v7 = vadd.f32 %v1590_v21, %v5726_v51  ;;  %v5878_v40 = vadd.f32 %v1591_v42, %v5728_v11  ;;  %v1711_v14 = vrot.slane %v5396_v10, %v5332_v19  ;;  %v1718_v8 = vrot.slane %v1704_v5, %v5332_v19  ;;  %v7133_v51 = vld [vmem:[#allocation3_spill] sm:$0xff]  ;;  %7134 = vst [vmem:[#allocation2_spill] sm:$0xff] %v5898_v37 }
 0x154   : > { %v2031_v56 = vrot.slane %v5406_v17, %v5332_v19  ;;  %v5890_v48 = vrot.slane %v7132_v12, %v5332_v19  ;;  %v5896_v11 = vrot.slane %v7133_v51, %v5332_v19 }
 0x155   : > { %v1719_v25 = vcombine.high %v1711_v14, %v1711_v14  ;;  %v1720_v24 = vcombine.high %v1718_v8, %v1718_v8  ;;  %v1727_v10 = vrot.slane %v1711_v14, %v5332_v19  ;;  %v1734_v5 = vrot.slane %v1718_v8, %v5332_v19  ;;  %v5920_v8 = vpop.f32.mrb[13].mxu0 }
 0x156   : > { %v2032_v17 = vcombine.high %v2031_v56, %v2031_v56  ;;  %v2039_v59 = vrot.slane %v2031_v56, %v5332_v19  ;;  %v2304_v16 = vcombine.high %v5890_v48, %v5890_v48  ;;  %v5907_v52 = vrot.slane %v5890_v48, %v5332_v19  ;;  %7135 = vst [vmem:[#allocation3_spill] sm:$0xff] %v5920_v8 }
 0x157   : > { %v1741_v36 = vrot.slane %v1719_v25, %v5332_v19  ;;  %v1748_v30 = vrot.slane %v1720_v24, %v5332_v19  ;;  %v1749_v2 = vcombine.high %v1727_v10, %v1727_v10  ;;  %v1750_v39 = vcombine.high %v1734_v5, %v1734_v5 }
 0x158   : > { %v1791_v45 = vrot.slane %v1727_v10, %v5203_v4  ;;  %v1807_v47 = vrot.slane %v1734_v5, %v5203_v4  ;;  %v2046_v53 = vrot.slane %v2032_v17, %v5332_v19  ;;  %v2047_v41 = vcombine.high %v2039_v59, %v2039_v59 }
 0x159   : > { %v1751_v0 = vcombine.high %v1741_v36, %v1741_v36  ;;  %v1752_v57 = vcombine.high %v1748_v30, %v1748_v30  ;;  %v1795_v1 = vrot.slane %v1741_v36, %v5203_v4  ;;  %v1799_v49 = vrot.slane %v1749_v2, %v5203_v4 }
 0x15a   : > { %v1811_v13 = vrot.slane %v1748_v30, %v5203_v4  ;;  %v1815_v21 = vrot.slane %v1750_v39, %v5203_v4  ;;  %v1848_v42 = vmul.f32 %v1791_v45, %v5775_v43  ;;  %v1849_v14 = vmul.f32 %v1791_v45, %v5773_v50 }
 0x15b   : > { %v1803_v56 = vrot.slane %v1751_v0, %v5203_v4  ;;  %v1819_v12 = vrot.slane %v1752_v57, %v5203_v4  ;;  %v1850_v48 = vmul.f32 %v1795_v1, %v5775_v43  ;;  %v1851_v25 = vmul.f32 %v1795_v1, %v5773_v50 }
 0x15c   : > { %v1852_v24 = vmul.f32 %v1799_v49, %v5775_v43  ;;  %v1853_v10 = vmul.f32 %v1799_v49, %v5773_v50  ;;  %v1856_v5 = vmul.f32 %v1807_v47, %v5775_v43  ;;  %v1857_v17 = vmul.f32 %v1807_v47, %v5773_v50 }
 0x15d   : > { %v1854_v36 = vmul.f32 %v1803_v56, %v5775_v43  ;;  %v1855_v30 = vmul.f32 %v1803_v56, %v5773_v50  ;;  %v1858_v2 = vmul.f32 %v1811_v13, %v5775_v43  ;;  %v1859_v39 = vmul.f32 %v1811_v13, %v5773_v50 }
 0x15e   : > { %v1860_v45 = vmul.f32 %v1815_v21, %v5775_v43  ;;  %v1861_v0 = vmul.f32 %v1815_v21, %v5773_v50  ;;  %v1862_v57 = vmul.f32 %v1819_v12, %v5775_v43  ;;  %v1863_v1 = vmul.f32 %v1819_v12, %v5773_v50 }
 0x15f   : > { %v5939_v49 = vadd.f32 %v1848_v42, %v5833_v55  ;;  %v5942_v47 = vadd.f32 %v1849_v14, %v5836_v3  ;;  %v5945_v56 = vadd.f32 %v1850_v48, %v5839_v20  ;;  %v5948_v35 = vadd.f32 %v1851_v25, %v5842_v32  ;;  %v5962_v55 = vpop.f32.mrb[13].mxu1  ;;  %v5990_v42 = vpop.permute.xlu0 %2054 }
 0x160   : > { %v5951_v13 = vadd.f32 %v1852_v24, %v5845_v15  ;;  %v5954_v21 = vadd.f32 %v1853_v10, %v5848_v26  ;;  %v5957_v50 = vadd.f32 %v1854_v36, %v5851_v33  ;;  %v5960_v43 = vadd.f32 %v1855_v30, %v5854_v54  ;;  %7136 = vst [vmem:[#allocation10_spill] sm:$0xff] %v5962_v55 }
 0x161   : > { %v5965_v3 = vadd.f32 %v1856_v5, %v5857_v31  ;;  %v5968_v20 = vadd.f32 %v1857_v17, %v5860_v58  ;;  %v5971_v32 = vadd.f32 %v1858_v2, %v5863_v60  ;;  %v5974_v15 = vadd.f32 %v1859_v39, %v5866_v61  ;;  %v5988_v58 = vpop.permute.xlu1 %2058 }
 0x162   : > { %v5977_v26 = vadd.f32 %v1860_v45, %v5869_v62  ;;  %v5980_v33 = vadd.f32 %v1861_v0, %v5872_v38  ;;  %v5983_v54 = vadd.f32 %v1862_v57, %v5875_v7  ;;  %v5986_v31 = vadd.f32 %v1863_v1, %v5878_v40 }
 0x163   : > { %v2048_v60 = vcombine.high %v2046_v53, %v2046_v53  ;;  %v2095_v61 = vrot.slane %v2039_v59, %v5203_v4  ;;  %v2099_v14 = vrot.slane %v2046_v53, %v5203_v4  ;;  %v2103_v62 = vrot.slane %v2047_v41, %v5203_v4  ;;  %v6021_v57 = vpop.permute.xlu0 %2326 }
 0x164   : > { %v2318_v38 = vrot.slane %v2304_v16, %v5332_v19  ;;  %v2319_v7 = vcombine.high %v5907_v52, %v5907_v52  ;;  %v2367_v40 = vrot.slane %v5907_v52, %v5203_v4  ;;  %v7137_v12 = vcombine.high %v7133_v51, %v7133_v51 }
 0x165   : > { %v2107_v25 = vrot.slane %v2048_v60, %v5203_v4  ;;  %v2136_v59 = vmul.f32 %v2095_v61, %v5990_v42  ;;  %v2137_v53 = vmul.f32 %v2095_v61, %v5988_v58  ;;  %v2138_v41 = vmul.f32 %v2099_v14, %v5990_v42  ;;  %v6019_v0 = vpop.permute.xlu1 %2330 }
 0x166   : > { %v1990_v48 = vrot.slane %v7137_v12, %v5332_v19  ;;  %v2139_v16 = vmul.f32 %v2099_v14, %v5988_v58  ;;  %v2140_v24 = vmul.f32 %v2103_v62, %v5990_v42  ;;  %v2141_v10 = vmul.f32 %v2103_v62, %v5988_v58 }
 0x167   : > { %v2320_v52 = vcombine.high %v2318_v38, %v2318_v38  ;;  %v2142_v5 = vmul.f32 %v2107_v25, %v5990_v42  ;;  %v2143_v51 = vmul.f32 %v2107_v25, %v5988_v58  ;;  %v2160_v17 = vadd.f32 %v2136_v59, %v5790_v23 }
 0x168   : > { %v2161_v36 = vadd.f32 %v2137_v53, %v5792_v27  ;;  %v2162_v30 = vadd.f32 %v2138_v41, %v5794_v44  ;;  %v2163_v2 = vadd.f32 %v2139_v16, %v5796_v63  ;;  %v2164_v39 = vadd.f32 %v2140_v24, %v5798_v6 }
 0x169   : > { %v2165_v45 = vadd.f32 %v2141_v10, %v5800_v29  ;;  %v2166_v1 = vadd.f32 %v2142_v5, %v5802_v9  ;;  %v2167_v60 = vadd.f32 %v2143_v51, %v5804_v18  ;;  %v2371_v23 = vrot.slane %v2318_v38, %v5203_v4  ;;  %v7138_v51 = vld [vmem:[#allocation4_spill] sm:$0xff] }
 0x16a   : > { %v2375_v27 = vrot.slane %v2319_v7, %v5203_v4  ;;  %v2379_v44 = vrot.slane %v2320_v52, %v5203_v4  ;;  %v2408_v63 = vmul.f32 %v2367_v40, %v6021_v57  ;;  %v2409_v6 = vmul.f32 %v2367_v40, %v6019_v0 }
 0x16b   : > { %v1991_v29 = vcombine.high %v5896_v11, %v5896_v11  ;;  %v2410_v61 = vmul.f32 %v2371_v23, %v6021_v57  ;;  %v2411_v14 = vmul.f32 %v2371_v23, %v6019_v0  ;;  %v1992_v24 = vcombine.high %v1990_v48, %v1990_v48 }
 0x16c   : > { %v2412_v9 = vmul.f32 %v2375_v27, %v6021_v57  ;;  %v2413_v18 = vmul.f32 %v2375_v27, %v6019_v0  ;;  %v2414_v62 = vmul.f32 %v2379_v44, %v6021_v57  ;;  %v2415_v38 = vmul.f32 %v2379_v44, %v6019_v0  ;;  %v6068_v27 = vpop.f32.mrb[14].mxu0 }
 0x16d   : > { %v6038_v7 = vadd.f32 %v2408_v63, %v2160_v17  ;;  %v6040_v12 = vadd.f32 %v2409_v6, %v2161_v36  ;;  %v6042_v40 = vadd.f32 %v2410_v61, %v2162_v30  ;;  %v6044_v25 = vadd.f32 %v2411_v14, %v2163_v2  ;;  %7140 = vst [vmem:[#allocation4_spill] sm:$0xff] %v6068_v27 }
 0x16e   : > { %v6046_v59 = vadd.f32 %v2412_v9, %v2164_v39  ;;  %v6048_v53 = vadd.f32 %v2413_v18, %v2165_v45  ;;  %v6050_v41 = vadd.f32 %v2414_v62, %v2166_v1  ;;  %v6052_v16 = vadd.f32 %v2415_v38, %v2167_v60  ;;  %v7139_v45 = vld [vmem:[#allocation5_spill] sm:$0xff] }
 0x16f   : > { %v1999_v10 = vrot.slane %v5896_v11, %v5332_v19  ;;  %v2006_v52 = vrot.slane %v1990_v48, %v5332_v19  ;;  %v2013_v5 = vrot.slane %v1991_v29, %v5332_v19  ;;  %v2248_v17 = vcombine.high %v7138_v51, %v7138_v51 }
 0x170   : > { %v2255_v36 = vrot.slane %v7138_v51, %v5332_v19  ;;  %v2020_v30 = vrot.slane %v1992_v24, %v5332_v19  ;;  %v2575_v1 = vrot.slane %v7139_v45, %v5332_v19 }
 0x171   : > { %v2021_v2 = vcombine.high %v1999_v10, %v1999_v10  ;;  %v2063_v39 = vrot.slane %v1999_v10, %v5203_v4  ;;  %v2022_v60 = vcombine.high %v2006_v52, %v2006_v52  ;;  %v2023_v11 = vcombine.high %v2013_v5, %v2013_v5 }
 0x172   : > { %v2067_v48 = vrot.slane %v2013_v5, %v5203_v4  ;;  %v2079_v23 = vrot.slane %v2006_v52, %v5203_v4  ;;  %v2024_v44 = vcombine.high %v2020_v30, %v2020_v30  ;;  %v2083_v6 = vrot.slane %v2020_v30, %v5203_v4 }
 0x173   : > { %v2071_v63 = vrot.slane %v2021_v2, %v5203_v4  ;;  %v2120_v29 = vmul.f32 %v2063_v39, %v5990_v42  ;;  %v2075_v61 = vrot.slane %v2023_v11, %v5203_v4  ;;  %v2087_v14 = vrot.slane %v2022_v60, %v5203_v4 }
 0x174   : > { %v2121_v9 = vmul.f32 %v2063_v39, %v5988_v58  ;;  %v2122_v18 = vmul.f32 %v2067_v48, %v5990_v42  ;;  %v2091_v62 = vrot.slane %v2024_v44, %v5203_v4  ;;  %v2123_v38 = vmul.f32 %v2067_v48, %v5988_v58 }
 0x175   : > { %v2124_v24 = vmul.f32 %v2071_v63, %v5990_v42  ;;  %v2125_v10 = vmul.f32 %v2071_v63, %v5988_v58  ;;  %v2126_v52 = vmul.f32 %v2075_v61, %v5990_v42  ;;  %v2127_v5 = vmul.f32 %v2075_v61, %v5988_v58  ;;  %v6093_v61 = vpop.f32.mrb[15].mxu0 }
 0x176   : > { %v2128_v51 = vmul.f32 %v2079_v23, %v5990_v42  ;;  %v2129_v30 = vmul.f32 %v2079_v23, %v5988_v58  ;;  %v2130_v2 = vmul.f32 %v2083_v6, %v5990_v42  ;;  %v2131_v39 = vmul.f32 %v2083_v6, %v5988_v58  ;;  %7141 = vst [vmem:[#allocation5_spill] sm:$0xff] %v6093_v61 }
 0x177   : > { %v2132_v45 = vmul.f32 %v2087_v14, %v5990_v42  ;;  %v2133_v60 = vmul.f32 %v2087_v14, %v5988_v58  ;;  %v2134_v11 = vmul.f32 %v2091_v62, %v5990_v42  ;;  %v2135_v48 = vmul.f32 %v2091_v62, %v5988_v58 }
 0x178   : > { %v2144_v44 = vadd.f32 %v2120_v29, %v5939_v49  ;;  %v2145_v63 = vadd.f32 %v2121_v9, %v5942_v47  ;;  %v2146_v23 = vadd.f32 %v2122_v18, %v5945_v56  ;;  %v2147_v27 = vadd.f32 %v2123_v38, %v5948_v35  ;;  %v6103_v29 = vpop.f32.mrb[14].mxu1 }
 0x179   : > { %v2148_v6 = vadd.f32 %v2124_v24, %v5951_v13  ;;  %v2149_v55 = vadd.f32 %v2125_v10, %v5954_v21  ;;  %v2150_v14 = vadd.f32 %v2126_v52, %v5957_v50  ;;  %v2151_v42 = vadd.f32 %v2127_v5, %v5960_v43  ;;  %7142 = vst [vmem:[#allocation11_spill] sm:$0xff] %v6103_v29  ;;  %v6124_v10 = vpop.f32.mrb[15].mxu1 }
 0x17a   : > { %v2152_v58 = vadd.f32 %v2128_v51, %v5965_v3  ;;  %v2153_v49 = vadd.f32 %v2129_v30, %v5968_v20  ;;  %v2154_v47 = vadd.f32 %v2130_v2, %v5971_v32  ;;  %v2155_v56 = vadd.f32 %v2131_v39, %v5974_v15  ;;  %v7143_v32 = vld [vmem:[#allocation6_spill] sm:$0xff] }
 0x17b   : > { %v2156_v35 = vadd.f32 %v2132_v45, %v5977_v26  ;;  %v2157_v13 = vadd.f32 %v2133_v60, %v5980_v33  ;;  %v2158_v21 = vadd.f32 %v2134_v11, %v5983_v54  ;;  %v2159_v50 = vadd.f32 %v2135_v48, %v5986_v31  ;;  %v7144_v54 = vld [vmem:[#allocation7_spill] sm:$0xff]  ;;  %7145 = vst [vmem:[#allocation6_spill] sm:$0xff] %v6124_v10 }
 0x17c   : > { %v2262_v43 = vrot.slane %v2248_v17, %v5332_v19  ;;  %v2263_v9 = vcombine.high %v2255_v36, %v2255_v36  ;;  %v2271_v3 = vrot.slane %v2255_v36, %v5332_v19  ;;  %v2576_v20 = vcombine.high %v2575_v1, %v2575_v1 }
 0x17d   : > { %v2583_v18 = vrot.slane %v2575_v1, %v5332_v19  ;;  %v6116_v62 = vrot.slane %v7143_v32, %v5332_v19  ;;  %v2520_v31 = vcombine.high %v7144_v54, %v7144_v54 }
 0x17e   : > { %v2264_v15 = vcombine.high %v2262_v43, %v2262_v43  ;;  %v2278_v26 = vrot.slane %v2262_v43, %v5332_v19  ;;  %v2285_v33 = vrot.slane %v2263_v9, %v5332_v19  ;;  %v2293_v38 = vcombine.high %v2271_v3, %v2271_v3 }
 0x17f   : > { %v2335_v17 = vrot.slane %v2271_v3, %v5203_v4  ;;  %v2590_v36 = vrot.slane %v2576_v20, %v5332_v19  ;;  %v2591_v24 = vcombine.high %v2583_v18, %v2583_v18 }
 0x180   : > { %v2292_v1 = vrot.slane %v2264_v15, %v5332_v19  ;;  %v2294_v52 = vcombine.high %v2278_v26, %v2278_v26  ;;  %v2295_v5 = vcombine.high %v2285_v33, %v2285_v33  ;;  %v2339_v51 = vrot.slane %v2285_v33, %v5203_v4 }
 0x181   : > { %v2343_v30 = vrot.slane %v2293_v38, %v5203_v4  ;;  %v2351_v2 = vrot.slane %v2278_v26, %v5203_v4  ;;  %v2392_v39 = vmul.f32 %v2335_v17, %v6021_v57  ;;  %v2393_v45 = vmul.f32 %v2335_v17, %v6019_v0 }
 0x182   : > { %v2296_v60 = vcombine.high %v2292_v1, %v2292_v1  ;;  %v2347_v11 = vrot.slane %v2295_v5, %v5203_v4  ;;  %v2355_v48 = vrot.slane %v2292_v1, %v5203_v4  ;;  %v2359_v43 = vrot.slane %v2294_v52, %v5203_v4 }
 0x183   : > { %v2394_v9 = vmul.f32 %v2339_v51, %v6021_v57  ;;  %v2395_v3 = vmul.f32 %v2339_v51, %v6019_v0  ;;  %v2396_v20 = vmul.f32 %v2343_v30, %v6021_v57  ;;  %v2397_v32 = vmul.f32 %v2343_v30, %v6019_v0 }
 0x184   : > { %v2363_v15 = vrot.slane %v2296_v60, %v5203_v4  ;;  %v2398_v26 = vmul.f32 %v2347_v11, %v6021_v57  ;;  %v2399_v33 = vmul.f32 %v2347_v11, %v6019_v0  ;;  %v2400_v38 = vmul.f32 %v2351_v2, %v6021_v57 }
 0x185   : > { %v2401_v17 = vmul.f32 %v2351_v2, %v6019_v0  ;;  %v2402_v1 = vmul.f32 %v2355_v48, %v6021_v57  ;;  %v2403_v52 = vmul.f32 %v2355_v48, %v6019_v0  ;;  %v2404_v5 = vmul.f32 %v2359_v43, %v6021_v57 }
 0x186   : > { %v2405_v51 = vmul.f32 %v2359_v43, %v6019_v0  ;;  %v2406_v30 = vmul.f32 %v2363_v15, %v6021_v57  ;;  %v2407_v60 = vmul.f32 %v2363_v15, %v6019_v0  ;;  %v6150_v10 = vadd.f32 %v2392_v39, %v2144_v44 }
 0x187   : > { %v6152_v29 = vadd.f32 %v2393_v45, %v2145_v63  ;;  %v6154_v11 = vadd.f32 %v2394_v9, %v2146_v23  ;;  %v6156_v61 = vadd.f32 %v2395_v3, %v2147_v27  ;;  %v6158_v2 = vadd.f32 %v2396_v20, %v2148_v6 }
 0x188   : > { %v6160_v8 = vadd.f32 %v2397_v32, %v2149_v55  ;;  %v6162_v48 = vadd.f32 %v2398_v26, %v2150_v14  ;;  %v6164_v37 = vadd.f32 %v2399_v33, %v2151_v42  ;;  %v6166_v43 = vadd.f32 %v2400_v38, %v2152_v58 }
 0x189   : > { %v6168_v57 = vadd.f32 %v2401_v17, %v2153_v49  ;;  %v6170_v0 = vadd.f32 %v2402_v1, %v2154_v47  ;;  %v6172_v44 = vadd.f32 %v2403_v52, %v2155_v56  ;;  %v6174_v63 = vadd.f32 %v2404_v5, %v2156_v35  ;;  %v6187_v47 = vpop.permute.xlu1 %2602  ;;  %v6189_v56 = vpop.permute.xlu0 %2598 }
 0x18a   : > { %v6176_v27 = vadd.f32 %v2405_v51, %v2157_v13  ;;  %v6178_v23 = vadd.f32 %v2406_v30, %v2158_v21  ;;  %v6180_v55 = vadd.f32 %v2407_v60, %v2159_v50  ;;  %v2592_v6 = vcombine.high %v2590_v36, %v2590_v36 }
 0x18b   : > { %v2639_v14 = vrot.slane %v2583_v18, %v5203_v4  ;;  %v2643_v42 = vrot.slane %v2590_v36, %v5203_v4  ;;  %v2647_v58 = vrot.slane %v2591_v24, %v5203_v4  ;;  %v2848_v49 = vcombine.high %v6116_v62, %v6116_v62 }
 0x18c   : > { %v2651_v35 = vrot.slane %v2592_v6, %v5203_v4  ;;  %v2855_v13 = vrot.slane %v6116_v62, %v5332_v19  ;;  %v2527_v21 = vrot.slane %v7144_v54, %v5332_v19  ;;  %v2534_v50 = vrot.slane %v2520_v31, %v5332_v19 }
 0x18d   : > { %v2680_v18 = vmul.f32 %v2639_v14, %v6189_v56  ;;  %v2681_v36 = vmul.f32 %v2639_v14, %v6187_v47  ;;  %v2682_v24 = vmul.f32 %v2643_v42, %v6189_v56  ;;  %v2683_v39 = vmul.f32 %v2643_v42, %v6187_v47  ;;  %v6215_v5 = vpop.permute.xlu0 %2870  ;;  %v6221_v51 = vpop.permute.xlu1 %2874 }
 0x18e   : > { %v2684_v45 = vmul.f32 %v2647_v58, %v6189_v56  ;;  %v2685_v9 = vmul.f32 %v2647_v58, %v6187_v47  ;;  %v2686_v3 = vmul.f32 %v2651_v35, %v6189_v56  ;;  %v2687_v62 = vmul.f32 %v2651_v35, %v6187_v47 }
 0x18f   : > { %v2704_v54 = vadd.f32 %v2680_v18, %v6038_v7  ;;  %v2705_v31 = vadd.f32 %v2681_v36, %v6040_v12  ;;  %v2706_v20 = vadd.f32 %v2682_v24, %v6042_v40  ;;  %v2707_v32 = vadd.f32 %v2683_v39, %v6044_v25 }
 0x190   : > { %v2708_v15 = vadd.f32 %v2684_v45, %v6046_v59  ;;  %v2709_v26 = vadd.f32 %v2685_v9, %v6048_v53  ;;  %v2710_v33 = vadd.f32 %v2686_v3, %v6050_v41  ;;  %v2711_v38 = vadd.f32 %v2687_v62, %v6052_v16  ;;  %v7146_v59 = vld [vmem:[#allocation8_spill] sm:$0xff] }
 0x191   : > { %v2862_v17 = vrot.slane %v2848_v49, %v5332_v19  ;;  %v2863_v1 = vcombine.high %v2855_v13, %v2855_v13  ;;  %v2911_v52 = vrot.slane %v2855_v13, %v5203_v4  ;;  %v2535_v7 = vcombine.high %v2527_v21, %v2527_v21 }
 0x192   : > { %v2536_v12 = vcombine.high %v2534_v50, %v2534_v50  ;;  %v2543_v40 = vrot.slane %v2527_v21, %v5332_v19  ;;  %v2550_v25 = vrot.slane %v2534_v50, %v5332_v19  ;;  %v2792_v53 = vcombine.high %v7146_v59, %v7146_v59 }
 0x193   : > { %v2864_v41 = vcombine.high %v2862_v17, %v2862_v17  ;;  %v2915_v16 = vrot.slane %v2862_v17, %v5203_v4  ;;  %v2919_v30 = vrot.slane %v2863_v1, %v5203_v4  ;;  %v2952_v60 = vmul.f32 %v2911_v52, %v6215_v5 }
 0x194   : > { %v2953_v6 = vmul.f32 %v2911_v52, %v6221_v51  ;;  %v2557_v14 = vrot.slane %v2535_v7, %v5332_v19  ;;  %v2564_v42 = vrot.slane %v2536_v12, %v5332_v19  ;;  %v2565_v58 = vcombine.high %v2543_v40, %v2543_v40 }
 0x195   : > { %v2923_v49 = vrot.slane %v2864_v41, %v5203_v4  ;;  %v2954_v35 = vmul.f32 %v2915_v16, %v6215_v5  ;;  %v2955_v13 = vmul.f32 %v2915_v16, %v6221_v51  ;;  %v2956_v21 = vmul.f32 %v2919_v30, %v6215_v5 }
 0x196   : > { %v2957_v50 = vmul.f32 %v2919_v30, %v6221_v51  ;;  %v6234_v18 = vadd.f32 %v2952_v60, %v2704_v54  ;;  %v6236_v36 = vadd.f32 %v2953_v6, %v2705_v31  ;;  %v2566_v24 = vcombine.high %v2550_v25, %v2550_v25 }
 0x197   : > { %v2958_v39 = vmul.f32 %v2923_v49, %v6215_v5  ;;  %v2959_v45 = vmul.f32 %v2923_v49, %v6221_v51  ;;  %v6240_v9 = vadd.f32 %v2954_v35, %v2706_v20  ;;  %v6242_v3 = vadd.f32 %v2955_v13, %v2707_v32 }
 0x198   : > { %v6244_v62 = vadd.f32 %v2956_v21, %v2708_v15  ;;  %v6246_v17 = vadd.f32 %v2957_v50, %v2709_v26  ;;  %v2567_v1 = vcombine.high %v2557_v14, %v2557_v14  ;;  %v2568_v52 = vcombine.high %v2564_v42, %v2564_v42 }
 0x199   : > { %v6248_v7 = vadd.f32 %v2958_v39, %v2710_v33  ;;  %v6250_v54 = vadd.f32 %v2959_v45, %v2711_v38  ;;  %v2607_v31 = vrot.slane %v2543_v40, %v5203_v4  ;;  %v2611_v12 = vrot.slane %v2557_v14, %v5203_v4 }
 0x19a   : > { %v2615_v41 = vrot.slane %v2565_v58, %v5203_v4  ;;  %v2619_v20 = vrot.slane %v2567_v1, %v5203_v4  ;;  %v2623_v32 = vrot.slane %v2550_v25, %v5203_v4  ;;  %v2627_v15 = vrot.slane %v2564_v42, %v5203_v4 }
 0x19b   : > { %v2631_v26 = vrot.slane %v2566_v24, %v5203_v4  ;;  %v2635_v16 = vrot.slane %v2568_v52, %v5203_v4  ;;  %v2664_v33 = vmul.f32 %v2607_v31, %v6189_v56  ;;  %v2665_v38 = vmul.f32 %v2607_v31, %v6187_v47 }
 0x19c   : > { %v2666_v40 = vmul.f32 %v2611_v12, %v6189_v56  ;;  %v2667_v30 = vmul.f32 %v2611_v12, %v6187_v47  ;;  %v2668_v60 = vmul.f32 %v2615_v41, %v6189_v56  ;;  %v2669_v6 = vmul.f32 %v2615_v41, %v6187_v47 }
 0x19d   : > { %v2670_v25 = vmul.f32 %v2619_v20, %v6189_v56  ;;  %v2671_v14 = vmul.f32 %v2619_v20, %v6187_v47  ;;  %v2672_v42 = vmul.f32 %v2623_v32, %v6189_v56  ;;  %v2673_v58 = vmul.f32 %v2623_v32, %v6187_v47 }
 0x19e   : > { %v2674_v49 = vmul.f32 %v2627_v15, %v6189_v56  ;;  %v2675_v35 = vmul.f32 %v2627_v15, %v6187_v47  ;;  %v2676_v13 = vmul.f32 %v2631_v26, %v6189_v56  ;;  %v2677_v21 = vmul.f32 %v2631_v26, %v6187_v47 }
 0x19f   : > { %v2678_v50 = vmul.f32 %v2635_v16, %v6189_v56  ;;  %v2679_v24 = vmul.f32 %v2635_v16, %v6187_v47  ;;  %v2688_v39 = vadd.f32 %v2664_v33, %v6150_v10  ;;  %v2689_v45 = vadd.f32 %v2665_v38, %v6152_v29 }
 0x1a0   : > { %v2690_v1 = vadd.f32 %v2666_v40, %v6154_v11  ;;  %v2691_v52 = vadd.f32 %v2667_v30, %v6156_v61  ;;  %v2692_v31 = vadd.f32 %v2668_v60, %v6158_v2  ;;  %v2693_v12 = vadd.f32 %v2669_v6, %v6160_v8 }
 0x1a1   : > { %v2694_v41 = vadd.f32 %v2670_v25, %v6162_v48  ;;  %v2695_v20 = vadd.f32 %v2671_v14, %v6164_v37  ;;  %v2696_v56 = vadd.f32 %v2672_v42, %v6166_v43  ;;  %v2697_v47 = vadd.f32 %v2673_v58, %v6168_v57  ;;  %v7147_v43 = vld [vmem:[#allocation9_spill] sm:$0xff] }
 0x1a2   : > { %v2698_v10 = vadd.f32 %v2674_v49, %v6170_v0  ;;  %v2699_v29 = vadd.f32 %v2675_v35, %v6172_v44  ;;  %v2700_v11 = vadd.f32 %v2676_v13, %v6174_v63  ;;  %v2701_v61 = vadd.f32 %v2677_v21, %v6176_v27 }
 0x1a3   : > { %v2702_v2 = vadd.f32 %v2678_v50, %v6178_v23  ;;  %v2703_v8 = vadd.f32 %v2679_v24, %v6180_v55  ;;  %v2799_v48 = vrot.slane %v7146_v59, %v5332_v19  ;;  %v2806_v37 = vrot.slane %v2792_v53, %v5332_v19 }
 0x1a4   : > { %v3119_v57 = vrot.slane %v7147_v43, %v5332_v19  ;;  %v6302_v0 = vrot.slane %v5667_v34, %v5332_v19  ;;  %v3064_v44 = vcombine.high %v5686_v46, %v5686_v46  ;;  %v6308_v63 = vrot.slane %v5686_v46, %v5332_v19 }
 0x1a5   : > { %v2807_v27 = vcombine.high %v2799_v48, %v2799_v48  ;;  %v2808_v23 = vcombine.high %v2806_v37, %v2806_v37  ;;  %v2815_v55 = vrot.slane %v2799_v48, %v5332_v19  ;;  %v2822_v59 = vrot.slane %v2806_v37, %v5332_v19 }
 0x1a6   : > { %v3120_v53 = vcombine.high %v3119_v57, %v3119_v57  ;;  %v3127_v32 = vrot.slane %v3119_v57, %v5332_v19  ;;  %v3392_v34 = vcombine.high %v6302_v0, %v6302_v0  ;;  %v6317_v15 = vrot.slane %v6302_v0, %v5332_v19 }
 0x1a7   : > { %v2829_v26 = vrot.slane %v2807_v27, %v5332_v19  ;;  %v2836_v16 = vrot.slane %v2808_v23, %v5332_v19  ;;  %v2837_v33 = vcombine.high %v2815_v55, %v2815_v55  ;;  %v2838_v38 = vcombine.high %v2822_v59, %v2822_v59 }
 0x1a8   : > { %v2879_v40 = vrot.slane %v2815_v55, %v5203_v4  ;;  %v2895_v30 = vrot.slane %v2822_v59, %v5203_v4  ;;  %v3134_v60 = vrot.slane %v3120_v53, %v5332_v19  ;;  %v3135_v6 = vcombine.high %v3127_v32, %v3127_v32 }
 0x1a9   : > { %v2839_v25 = vcombine.high %v2829_v26, %v2829_v26  ;;  %v2840_v14 = vcombine.high %v2836_v16, %v2836_v16  ;;  %v2883_v42 = vrot.slane %v2829_v26, %v5203_v4  ;;  %v2887_v58 = vrot.slane %v2837_v33, %v5203_v4 }
 0x1aa   : > { %v2899_v49 = vrot.slane %v2836_v16, %v5203_v4  ;;  %v2903_v35 = vrot.slane %v2838_v38, %v5203_v4  ;;  %v2936_v13 = vmul.f32 %v2879_v40, %v6215_v5  ;;  %v2937_v21 = vmul.f32 %v2879_v40, %v6221_v51 }
 0x1ab   : > { %v2891_v50 = vrot.slane %v2839_v25, %v5203_v4  ;;  %v2907_v24 = vrot.slane %v2840_v14, %v5203_v4  ;;  %v2938_v48 = vmul.f32 %v2883_v42, %v6215_v5  ;;  %v2939_v37 = vmul.f32 %v2883_v42, %v6221_v51 }
 0x1ac   : > { %v2940_v43 = vmul.f32 %v2887_v58, %v6215_v5  ;;  %v2941_v57 = vmul.f32 %v2887_v58, %v6221_v51  ;;  %v2944_v0 = vmul.f32 %v2895_v30, %v6215_v5  ;;  %v2945_v27 = vmul.f32 %v2895_v30, %v6221_v51 }
 0x1ad   : > { %v2942_v23 = vmul.f32 %v2891_v50, %v6215_v5  ;;  %v2943_v55 = vmul.f32 %v2891_v50, %v6221_v51  ;;  %v2946_v59 = vmul.f32 %v2899_v49, %v6215_v5  ;;  %v2947_v53 = vmul.f32 %v2899_v49, %v6221_v51 }
 0x1ae   : > { %v2948_v26 = vmul.f32 %v2903_v35, %v6215_v5  ;;  %v2949_v16 = vmul.f32 %v2903_v35, %v6221_v51  ;;  %v2950_v33 = vmul.f32 %v2907_v24, %v6215_v5  ;;  %v2951_v38 = vmul.f32 %v2907_v24, %v6221_v51 }
 0x1af   : > { %v6346_v40 = vadd.f32 %v2936_v13, %v2688_v39  ;;  %v6348_v25 = vadd.f32 %v2937_v21, %v2689_v45  ;;  %v6350_v30 = vadd.f32 %v2938_v48, %v2690_v1  ;;  %v6352_v14 = vadd.f32 %v2939_v37, %v2691_v52 }
 0x1b0   : > { %v6354_v42 = vadd.f32 %v2940_v43, %v2692_v31  ;;  %v6356_v58 = vadd.f32 %v2941_v57, %v2693_v12  ;;  %v6358_v49 = vadd.f32 %v2942_v23, %v2694_v41  ;;  %v6360_v50 = vadd.f32 %v2943_v55, %v2695_v20  ;;  %v6378_v12 = vpop.permute.xlu1 %3146  ;;  %v6380_v41 = vpop.permute.xlu0 %3142 }
 0x1b1   : > { %v6362_v35 = vadd.f32 %v2944_v0, %v2696_v56  ;;  %v6364_v5 = vadd.f32 %v2945_v27, %v2697_v47  ;;  %v6366_v51 = vadd.f32 %v2946_v59, %v2698_v10  ;;  %v6368_v39 = vadd.f32 %v2947_v53, %v2699_v29 }
 0x1b2   : > { %v6370_v45 = vadd.f32 %v2948_v26, %v2700_v11  ;;  %v6372_v1 = vadd.f32 %v2949_v16, %v2701_v61  ;;  %v6374_v52 = vadd.f32 %v2950_v33, %v2702_v2  ;;  %v6376_v31 = vadd.f32 %v2951_v38, %v2703_v8 }
 0x1b3   : > { %v3136_v20 = vcombine.high %v3134_v60, %v3134_v60  ;;  %v3183_v56 = vrot.slane %v3127_v32, %v5203_v4  ;;  %v3187_v47 = vrot.slane %v3134_v60, %v5203_v4  ;;  %v3191_v10 = vrot.slane %v3135_v6, %v5203_v4 }
 0x1b4   : > { %v3406_v29 = vrot.slane %v3392_v34, %v5332_v19  ;;  %v3407_v11 = vcombine.high %v6317_v15, %v6317_v15  ;;  %v3455_v61 = vrot.slane %v6317_v15, %v5203_v4  ;;  %v3078_v2 = vrot.slane %v3064_v44, %v5332_v19  ;;  %v6409_v27 = vpop.permute.xlu1 %3418  ;;  %v6411_v23 = vpop.permute.xlu0 %3414 }
 0x1b5   : > { %v3195_v8 = vrot.slane %v3136_v20, %v5203_v4  ;;  %v3224_v32 = vmul.f32 %v3183_v56, %v6380_v41  ;;  %v3225_v60 = vmul.f32 %v3183_v56, %v6378_v12  ;;  %v3226_v6 = vmul.f32 %v3187_v47, %v6380_v41 }
 0x1b6   : > { %v3227_v34 = vmul.f32 %v3187_v47, %v6378_v12  ;;  %v3228_v13 = vmul.f32 %v3191_v10, %v6380_v41  ;;  %v3229_v21 = vmul.f32 %v3191_v10, %v6378_v12  ;;  %v3408_v15 = vcombine.high %v3406_v29, %v3406_v29 }
 0x1b7   : > { %v3230_v24 = vmul.f32 %v3195_v8, %v6380_v41  ;;  %v3231_v46 = vmul.f32 %v3195_v8, %v6378_v12  ;;  %v3248_v44 = vadd.f32 %v3224_v32, %v6234_v18  ;;  %v3249_v48 = vadd.f32 %v3225_v60, %v6236_v36 }
 0x1b8   : > { %v3250_v37 = vadd.f32 %v3226_v6, %v6240_v9  ;;  %v3251_v43 = vadd.f32 %v3227_v34, %v6242_v3  ;;  %v3252_v57 = vadd.f32 %v3228_v13, %v6244_v62  ;;  %v3253_v0 = vadd.f32 %v3229_v21, %v6246_v17 }
 0x1b9   : > { %v3254_v55 = vadd.f32 %v3230_v24, %v6248_v7  ;;  %v3255_v59 = vadd.f32 %v3231_v46, %v6250_v54  ;;  %v3459_v18 = vrot.slane %v3406_v29, %v5203_v4  ;;  %v3463_v36 = vrot.slane %v3407_v11, %v5203_v4 }
 0x1ba   : > { %v3467_v9 = vrot.slane %v3408_v15, %v5203_v4  ;;  %v3496_v3 = vmul.f32 %v3455_v61, %v6411_v23  ;;  %v3497_v62 = vmul.f32 %v3455_v61, %v6409_v27  ;;  %v3079_v17 = vcombine.high %v6308_v63, %v6308_v63 }
 0x1bb   : > { %v3498_v53 = vmul.f32 %v3459_v18, %v6411_v23  ;;  %v3499_v26 = vmul.f32 %v3459_v18, %v6409_v27  ;;  %v3500_v7 = vmul.f32 %v3463_v36, %v6411_v23  ;;  %v3501_v54 = vmul.f32 %v3463_v36, %v6409_v27 }
 0x1bc   : > { %v3502_v16 = vmul.f32 %v3467_v9, %v6411_v23  ;;  %v3503_v33 = vmul.f32 %v3467_v9, %v6409_v27  ;;  %v6428_v38 = vadd.f32 %v3496_v3, %v3248_v44  ;;  %v6430_v20 = vadd.f32 %v3497_v62, %v3249_v48 }
 0x1bd   : > { %v6432_v56 = vadd.f32 %v3498_v53, %v3250_v37  ;;  %v6434_v47 = vadd.f32 %v3499_v26, %v3251_v43  ;;  %v6436_v10 = vadd.f32 %v3500_v7, %v3252_v57  ;;  %v6438_v29 = vadd.f32 %v3501_v54, %v3253_v0 }
 0x1be   : > { %v6440_v11 = vadd.f32 %v3502_v16, %v3254_v55  ;;  %v6442_v61 = vadd.f32 %v3503_v33, %v3255_v59  ;;  %v3080_v8 = vcombine.high %v3078_v2, %v3078_v2  ;;  %v3087_v32 = vrot.slane %v6308_v63, %v5332_v19 }
 0x1bf   : > { %v3094_v60 = vrot.slane %v3078_v2, %v5332_v19  ;;  %v3101_v6 = vrot.slane %v3079_v17, %v5332_v19  ;;  %v3336_v34 = vcombine.high %v5753_v28, %v5753_v28  ;;  %v3343_v13 = vrot.slane %v5753_v28, %v5332_v19 }
 0x1c0   : > { %v3108_v21 = vrot.slane %v3080_v8, %v5332_v19  ;;  %v3109_v15 = vcombine.high %v3087_v32, %v3087_v32  ;;  %v3151_v24 = vrot.slane %v3087_v32, %v5203_v4  ;;  %v3663_v46 = vrot.slane %v5828_v22, %v5332_v19 }
 0x1c1   : > { %v3110_v44 = vcombine.high %v3094_v60, %v3094_v60  ;;  %v3111_v63 = vcombine.high %v3101_v6, %v3101_v6  ;;  %v3155_v2 = vrot.slane %v3101_v6, %v5203_v4  ;;  %v3167_v48 = vrot.slane %v3094_v60, %v5203_v4 }
 0x1c2   : > { %v3112_v37 = vcombine.high %v3108_v21, %v3108_v21  ;;  %v3159_v43 = vrot.slane %v3109_v15, %v5203_v4  ;;  %v3171_v57 = vrot.slane %v3108_v21, %v5203_v4  ;;  %v3208_v28 = vmul.f32 %v3151_v24, %v6380_v41 }
 0x1c3   : > { %v3163_v0 = vrot.slane %v3111_v63, %v5203_v4  ;;  %v3175_v55 = vrot.slane %v3110_v44, %v5203_v4  ;;  %v3209_v59 = vmul.f32 %v3151_v24, %v6378_v12  ;;  %v3210_v22 = vmul.f32 %v3155_v2, %v6380_v41 }
 0x1c4   : > { %v3179_v18 = vrot.slane %v3112_v37, %v5203_v4  ;;  %v3211_v36 = vmul.f32 %v3155_v2, %v6378_v12  ;;  %v3212_v9 = vmul.f32 %v3159_v43, %v6380_v41  ;;  %v3213_v3 = vmul.f32 %v3159_v43, %v6378_v12 }
 0x1c5   : > { %v3214_v62 = vmul.f32 %v3163_v0, %v6380_v41  ;;  %v3215_v17 = vmul.f32 %v3163_v0, %v6378_v12  ;;  %v3216_v53 = vmul.f32 %v3167_v48, %v6380_v41  ;;  %v3217_v26 = vmul.f32 %v3167_v48, %v6378_v12 }
 0x1c6   : > { %v3218_v7 = vmul.f32 %v3171_v57, %v6380_v41  ;;  %v3219_v54 = vmul.f32 %v3171_v57, %v6378_v12  ;;  %v3220_v16 = vmul.f32 %v3175_v55, %v6380_v41  ;;  %v3221_v33 = vmul.f32 %v3175_v55, %v6378_v12 }
 0x1c7   : > { %v3222_v8 = vmul.f32 %v3179_v18, %v6380_v41  ;;  %v3223_v32 = vmul.f32 %v3179_v18, %v6378_v12  ;;  %v3232_v60 = vadd.f32 %v3208_v28, %v6346_v40  ;;  %v3233_v6 = vadd.f32 %v3209_v59, %v6348_v25 }
 0x1c8   : > { %v3234_v21 = vadd.f32 %v3210_v22, %v6350_v30  ;;  %v3235_v15 = vadd.f32 %v3211_v36, %v6352_v14  ;;  %v3236_v24 = vadd.f32 %v3212_v9, %v6354_v42  ;;  %v3237_v44 = vadd.f32 %v3213_v3, %v6356_v58 }
 0x1c9   : > { %v3238_v63 = vadd.f32 %v3214_v62, %v6358_v49  ;;  %v3239_v2 = vadd.f32 %v3215_v17, %v6360_v50  ;;  %v3240_v41 = vadd.f32 %v3216_v53, %v6362_v35  ;;  %v3241_v12 = vadd.f32 %v3217_v26, %v6364_v5 }
 0x1ca   : > { %v3242_v40 = vadd.f32 %v3218_v7, %v6366_v51  ;;  %v3243_v25 = vadd.f32 %v3219_v54, %v6368_v39  ;;  %v3244_v30 = vadd.f32 %v3220_v16, %v6370_v45  ;;  %v3245_v14 = vadd.f32 %v3221_v33, %v6372_v1  ;;  %v7148_v51 = vld [vmem:[#allocation2_spill] sm:$0xff] }
 0x1cb   : > { %v3246_v42 = vadd.f32 %v3222_v8, %v6374_v52  ;;  %v3247_v58 = vadd.f32 %v3223_v32, %v6376_v31  ;;  %v3350_v49 = vrot.slane %v3336_v34, %v5332_v19  ;;  %v3351_v48 = vcombine.high %v3343_v13, %v3343_v13  ;;  %v7149_v52 = vld [vmem:[#allocation3_spill] sm:$0xff] }
 0x1cc   : > { %v3359_v50 = vrot.slane %v3343_v13, %v5332_v19  ;;  %v3664_v35 = vcombine.high %v3663_v46, %v3663_v46  ;;  %v3671_v5 = vrot.slane %v3663_v46, %v5332_v19  ;;  %v6500_v37 = vrot.slane %v7148_v51, %v5332_v19 }
 0x1cd   : > { %v3352_v39 = vcombine.high %v3350_v49, %v3350_v49  ;;  %v3366_v45 = vrot.slane %v3350_v49, %v5332_v19  ;;  %v3373_v1 = vrot.slane %v3351_v48, %v5332_v19  ;;  %v3608_v31 = vcombine.high %v7149_v52, %v7149_v52 }
 0x1ce   : > { %v3381_v43 = vcombine.high %v3359_v50, %v3359_v50  ;;  %v3423_v34 = vrot.slane %v3359_v50, %v5203_v4  ;;  %v3678_v13 = vrot.slane %v3664_v35, %v5332_v19  ;;  %v3679_v57 = vcombine.high %v3671_v5, %v3671_v5 }
 0x1cf   : > { %v3380_v46 = vrot.slane %v3352_v39, %v5332_v19  ;;  %v3382_v28 = vcombine.high %v3366_v45, %v3366_v45  ;;  %v3383_v0 = vcombine.high %v3373_v1, %v3373_v1  ;;  %v3427_v55 = vrot.slane %v3373_v1, %v5203_v4 }
 0x1d0   : > { %v3431_v59 = vrot.slane %v3381_v43, %v5203_v4  ;;  %v3439_v22 = vrot.slane %v3366_v45, %v5203_v4  ;;  %v3480_v18 = vmul.f32 %v3423_v34, %v6411_v23  ;;  %v3481_v36 = vmul.f32 %v3423_v34, %v6409_v27 }
 0x1d1   : > { %v3384_v9 = vcombine.high %v3380_v46, %v3380_v46  ;;  %v3435_v3 = vrot.slane %v3383_v0, %v5203_v4  ;;  %v3443_v62 = vrot.slane %v3380_v46, %v5203_v4  ;;  %v3447_v17 = vrot.slane %v3382_v28, %v5203_v4 }
 0x1d2   : > { %v3482_v53 = vmul.f32 %v3427_v55, %v6411_v23  ;;  %v3483_v26 = vmul.f32 %v3427_v55, %v6409_v27  ;;  %v3484_v7 = vmul.f32 %v3431_v59, %v6411_v23  ;;  %v3485_v54 = vmul.f32 %v3431_v59, %v6409_v27 }
 0x1d3   : > { %v3451_v16 = vrot.slane %v3384_v9, %v5203_v4  ;;  %v3486_v33 = vmul.f32 %v3435_v3, %v6411_v23  ;;  %v3487_v8 = vmul.f32 %v3435_v3, %v6409_v27  ;;  %v3488_v32 = vmul.f32 %v3439_v22, %v6411_v23 }
 0x1d4   : > { %v3489_v49 = vmul.f32 %v3439_v22, %v6409_v27  ;;  %v3490_v48 = vmul.f32 %v3443_v62, %v6411_v23  ;;  %v3491_v50 = vmul.f32 %v3443_v62, %v6409_v27  ;;  %v3492_v35 = vmul.f32 %v3447_v17, %v6411_v23 }
 0x1d5   : > { %v3493_v51 = vmul.f32 %v3447_v17, %v6409_v27  ;;  %v3494_v39 = vmul.f32 %v3451_v16, %v6411_v23  ;;  %v3495_v45 = vmul.f32 %v3451_v16, %v6409_v27  ;;  %v6532_v1 = vadd.f32 %v3480_v18, %v3232_v60 }
 0x1d6   : > { %v6534_v43 = vadd.f32 %v3481_v36, %v3233_v6  ;;  %v6536_v34 = vadd.f32 %v3482_v53, %v3234_v21  ;;  %v6538_v46 = vadd.f32 %v3483_v26, %v3235_v15  ;;  %v6540_v28 = vadd.f32 %v3484_v7, %v3236_v24 }
 0x1d7   : > { %v6542_v0 = vadd.f32 %v3485_v54, %v3237_v44  ;;  %v6544_v55 = vadd.f32 %v3486_v33, %v3238_v63  ;;  %v6546_v59 = vadd.f32 %v3487_v8, %v3239_v2  ;;  %v6548_v22 = vadd.f32 %v3488_v32, %v3240_v41 }
 0x1d8   : > { %v6550_v23 = vadd.f32 %v3489_v49, %v3241_v12  ;;  %v6552_v27 = vadd.f32 %v3490_v48, %v3242_v40  ;;  %v6554_v60 = vadd.f32 %v3491_v50, %v3243_v25  ;;  %v6556_v6 = vadd.f32 %v3492_v35, %v3244_v30  ;;  %v6569_v40 = vpop.permute.xlu1 %3690  ;;  %v3687_v25 = vpop.permute.xlu0 %3686 }
 0x1d9   : > { %v6558_v21 = vadd.f32 %v3493_v51, %v3245_v14  ;;  %v6560_v15 = vadd.f32 %v3494_v39, %v3246_v42  ;;  %v6562_v24 = vadd.f32 %v3495_v45, %v3247_v58  ;;  %v3680_v44 = vcombine.high %v3678_v13, %v3678_v13 }
 0x1da   : > { %v3727_v63 = vrot.slane %v3671_v5, %v5203_v4  ;;  %v3731_v2 = vrot.slane %v3678_v13, %v5203_v4  ;;  %v3735_v41 = vrot.slane %v3679_v57, %v5203_v4  ;;  %v3936_v12 = vcombine.high %v6500_v37, %v6500_v37 }
 0x1db   : > { %v3739_v30 = vrot.slane %v3680_v44, %v5203_v4  ;;  %v3943_v14 = vrot.slane %v6500_v37, %v5332_v19  ;;  %v3615_v42 = vrot.slane %v7149_v52, %v5332_v19  ;;  %v3622_v58 = vrot.slane %v3608_v31, %v5332_v19 }
 0x1dc   : > { %v3768_v5 = vmul.f32 %v3727_v63, %v3687_v25  ;;  %v3769_v13 = vmul.f32 %v3727_v63, %v6569_v40  ;;  %v3770_v57 = vmul.f32 %v3731_v2, %v3687_v25  ;;  %v3771_v18 = vmul.f32 %v3731_v2, %v6569_v40 }
 0x1dd   : > { %v3772_v36 = vmul.f32 %v3735_v41, %v3687_v25  ;;  %v3773_v9 = vmul.f32 %v3735_v41, %v6569_v40  ;;  %v3774_v3 = vmul.f32 %v3739_v30, %v3687_v25  ;;  %v3775_v62 = vmul.f32 %v3739_v30, %v6569_v40 }
 0x1de   : > { %v6582_v17 = vadd.f32 %v3768_v5, %v6428_v38  ;;  %v6585_v37 = vadd.f32 %v3769_v13, %v6430_v20  ;;  %v6588_v52 = vadd.f32 %v3770_v57, %v6432_v56  ;;  %v6591_v31 = vadd.f32 %v3771_v18, %v6434_v47 }
 0x1df   : > { %v6594_v53 = vadd.f32 %v3772_v36, %v6436_v10  ;;  %v6597_v26 = vadd.f32 %v3773_v9, %v6438_v29  ;;  %v6600_v7 = vadd.f32 %v3774_v3, %v6440_v11  ;;  %v6603_v38 = vadd.f32 %v3775_v62, %v6442_v61  ;;  %v7154_v29 = vld [vmem:[#allocation10_spill] sm:$0xff] }
 0x1e0   : > { %7150 = vst [vmem:[#allocation7_spill] sm:$0xff] %v6582_v17  ;;  %7151 = vst [vmem:[#allocation8_spill] sm:$0xff] %v6588_v52  ;;  %v3950_v20 = vrot.slane %v3936_v12, %v5332_v19  ;;  %v3951_v54 = vcombine.high %v3943_v14, %v3943_v14  ;;  %v6607_v56 = vrot.slane %v3943_v14, %v5203_v4 }
 0x1e1   : > { %7152 = vst [vmem:[#allocation9_spill] sm:$0xff] %v6594_v53  ;;  %7153 = vst [vmem:[#allocation2_spill] sm:$0xff] %v6600_v7  ;;  %v3623_v47 = vcombine.high %v3615_v42, %v3615_v42  ;;  %v3624_v16 = vcombine.high %v3622_v58, %v3622_v58  ;;  %v3631_v10 = vrot.slane %v3615_v42, %v5332_v19 }
 0x1e2   : > { %v3638_v33 = vrot.slane %v3622_v58, %v5332_v19  ;;  %v3880_v8 = vcombine.high %v7154_v29, %v7154_v29  ;;  %v3952_v11 = vcombine.high %v3950_v20, %v3950_v20  ;;  %v4003_v32 = vrot.slane %v3950_v20, %v5203_v4 }
 0x1e3   : > { %v4007_v61 = vrot.slane %v3951_v54, %v5203_v4  ;;  %v3645_v49 = vrot.slane %v3623_v47, %v5332_v19  ;;  %v3652_v48 = vrot.slane %v3624_v16, %v5332_v19  ;;  %v3653_v50 = vcombine.high %v3631_v10, %v3631_v10 }
 0x1e4   : > { %v3654_v35 = vcombine.high %v3638_v33, %v3638_v33  ;;  %v3695_v51 = vrot.slane %v3631_v10, %v5203_v4  ;;  %v4011_v39 = vrot.slane %v3952_v11, %v5203_v4  ;;  %v3711_v63 = vrot.slane %v3638_v33, %v5203_v4 }
 0x1e5   : > { %v3655_v45 = vcombine.high %v3645_v49, %v3645_v49  ;;  %v3699_v44 = vrot.slane %v3645_v49, %v5203_v4  ;;  %v3656_v2 = vcombine.high %v3652_v48, %v3652_v48  ;;  %v3703_v41 = vrot.slane %v3653_v50, %v5203_v4 }
 0x1e6   : > { %v3715_v12 = vrot.slane %v3652_v48, %v5203_v4  ;;  %v3719_v30 = vrot.slane %v3654_v35, %v5203_v4  ;;  %v3752_v42 = vmul.f32 %v3695_v51, %v3687_v25  ;;  %v3753_v58 = vmul.f32 %v3695_v51, %v6569_v40 }
 0x1e7   : > { %v3707_v14 = vrot.slane %v3655_v45, %v5203_v4  ;;  %v3754_v5 = vmul.f32 %v3699_v44, %v3687_v25  ;;  %v3723_v13 = vrot.slane %v3656_v2, %v5203_v4  ;;  %v3755_v57 = vmul.f32 %v3699_v44, %v6569_v40 }
 0x1e8   : > { %v3756_v18 = vmul.f32 %v3703_v41, %v3687_v25  ;;  %v3757_v36 = vmul.f32 %v3703_v41, %v6569_v40  ;;  %v3760_v62 = vmul.f32 %v3711_v63, %v3687_v25  ;;  %v3761_v20 = vmul.f32 %v3711_v63, %v6569_v40  ;;  %v3959_v41 = vpop.permute.xlu0 %3958 }
 0x1e9   : > { %v3758_v9 = vmul.f32 %v3707_v14, %v3687_v25  ;;  %v3759_v3 = vmul.f32 %v3707_v14, %v6569_v40  ;;  %v3762_v54 = vmul.f32 %v3715_v12, %v3687_v25  ;;  %v3763_v47 = vmul.f32 %v3715_v12, %v6569_v40 }
 0x1ea   : > { %v3764_v16 = vmul.f32 %v3719_v30, %v3687_v25  ;;  %v3765_v10 = vmul.f32 %v3719_v30, %v6569_v40  ;;  %v3766_v33 = vmul.f32 %v3723_v13, %v3687_v25  ;;  %v3767_v11 = vmul.f32 %v3723_v13, %v6569_v40  ;;  %v3963_v25 = vpop.permute.xlu1 %3962 }
 0x1eb   : > { %v6635_v49 = vadd.f32 %v3752_v42, %v6532_v1  ;;  %v6638_v48 = vadd.f32 %v3753_v58, %v6534_v43  ;;  %v6641_v50 = vadd.f32 %v3754_v5, %v6536_v34  ;;  %v6644_v35 = vadd.f32 %v3755_v57, %v6538_v46 }
 0x1ec   : > { %v6647_v51 = vadd.f32 %v3756_v18, %v6540_v28  ;;  %v6650_v45 = vadd.f32 %v3757_v36, %v6542_v0  ;;  %v6653_v40 = vadd.f32 %v3758_v9, %v6544_v55  ;;  %v6656_v1 = vadd.f32 %v3759_v3, %v6546_v59  ;;  %v7163_v18 = vld [vmem:[#allocation4_spill] sm:$0xff]  ;;  %v7164_v36 = vld [vmem:[#allocation5_spill] sm:$0xff] }
 0x1ed   : > { %v6659_v43 = vadd.f32 %v3760_v62, %v6548_v22  ;;  %v6662_v34 = vadd.f32 %v3761_v20, %v6550_v23  ;;  %v6665_v46 = vadd.f32 %v3762_v54, %v6552_v27  ;;  %v6668_v28 = vadd.f32 %v3763_v47, %v6554_v60 }
 0x1ee   : > { %v6671_v0 = vadd.f32 %v3764_v16, %v6556_v6  ;;  %v6674_v55 = vadd.f32 %v3765_v10, %v6558_v21  ;;  %v6677_v59 = vadd.f32 %v3766_v33, %v6560_v15  ;;  %v6680_v22 = vadd.f32 %v3767_v11, %v6562_v24 }
 0x1ef   : > { %7155 = vst [vmem:[#allocation3_spill] sm:$0xff] %v6659_v43  ;;  %7156 = vst [vmem:[#allocation10_spill] sm:$0xff] %v6665_v46  ;;  %v3887_v23 = vrot.slane %v7154_v29, %v5332_v19  ;;  %v3894_v27 = vrot.slane %v3880_v8, %v5332_v19  ;;  %v6686_v60 = vmul.f32 %v6607_v56, %v3963_v25 }
 0x1f0   : > { %7157 = vst [vmem:[#allocation12_spill] sm:$0xff] %v6671_v0  ;;  %7158 = vst [vmem:[#allocation13_spill] sm:$0xff] %v6677_v59  ;;  %v6688_v6 = vmul.f32 %v4003_v32, %v3963_v25  ;;  %v6690_v44 = vmul.f32 %v4007_v61, %v3963_v25  ;;  %v6692_v21 = vmul.f32 %v4011_v39, %v3963_v25  ;;  %v7112_v59 = vmov 0.0  }
 0x1f1   : > { %v3895_v15 = vcombine.high %v3887_v23, %v3887_v23  ;;  %v3896_v63 = vcombine.high %v3894_v27, %v3894_v27  ;;  %v3903_v24 = vrot.slane %v3887_v23, %v5332_v19  ;;  %v3910_v2 = vrot.slane %v3894_v27, %v5332_v19  ;;  %231 = vst.msk [vmem:[%s6791_s4 + $0x8] sm:$0xf] %vm230_vm1, %v7112_v59 }
 0x1f2   : > { %v6697_v29 = vmul.f32 %v6607_v56, %v3959_v41  ;;  %v6699_v8 = vmul.f32 %v4003_v32, %v3959_v41  ;;  %v6701_v12 = vmul.f32 %v4007_v61, %v3959_v41  ;;  %v6703_v30 = vmul.f32 %v4011_v39, %v3959_v41  ;;  %233 = vst.msk [vmem:[%s6791_s4 + $0x18] sm:$0xf] %vm230_vm1, %v7112_v59 }
 0x1f3   : > { %v3917_v14 = vrot.slane %v3895_v15, %v5332_v19  ;;  %v3924_v42 = vrot.slane %v3896_v63, %v5332_v19  ;;  %v3925_v58 = vcombine.high %v3903_v24, %v3903_v24  ;;  %v3926_v5 = vcombine.high %v3910_v2, %v3910_v2  ;;  %235 = vst.msk [vmem:[%s6791_s4 + $0x28] sm:$0xf] %vm230_vm1, %v7112_v59 }
 0x1f4   : > { %7159 = vst [vmem:[#allocation14_spill] sm:$0xff] %v6697_v29  ;;  %7160 = vst [vmem:[#allocation15_spill] sm:$0xff] %v6699_v8  ;;  %v3967_v13 = vrot.slane %v3903_v24, %v5203_v4  ;;  %v3983_v57 = vrot.slane %v3910_v2, %v5203_v4  ;;  %v4207_v56 = vrot.slane %v7163_v18, %v5332_v19 }
 0x1f5   : > { %7161 = vst [vmem:[#allocation16_spill] sm:$0xff] %v6701_v12  ;;  %7162 = vst [vmem:[#allocation17_spill] sm:$0xff] %v6703_v30  ;;  %v4152_v32 = vcombine.high %v7164_v36, %v7164_v36  ;;  %v3927_v61 = vcombine.high %v3917_v14, %v3917_v14  ;;  %v3928_v9 = vcombine.high %v3924_v42, %v3924_v42  ;;  %v7170_v30 = vld [vmem:[#allocation6_spill] sm:$0xff] }
 0x1f6   : > { %v3971_v39 = vrot.slane %v3917_v14, %v5203_v4  ;;  %v3975_v3 = vrot.slane %v3925_v58, %v5203_v4  ;;  %v3987_v62 = vrot.slane %v3924_v42, %v5203_v4  ;;  %v3991_v20 = vrot.slane %v3926_v5, %v5203_v4  ;;  %237 = vst.msk [vmem:[%s6791_s4 + $0x38] sm:$0xf] %vm230_vm1, %v7112_v59 }
 0x1f7   : > { %v6717_v54 = vmul.f32 %v3967_v13, %v3963_v25  ;;  %v6719_v47 = vmul.f32 %v3983_v57, %v3963_v25  ;;  %v3979_v16 = vrot.slane %v3927_v61, %v5203_v4  ;;  %v3995_v10 = vrot.slane %v3928_v9, %v5203_v4  ;;  %239 = vst.msk [vmem:[%s6791_s4 + $0x48] sm:$0xf] %vm230_vm1, %v7112_v59 }
 0x1f8   : > { %v6723_v33 = vmul.f32 %v3971_v39, %v3963_v25  ;;  %v6725_v11 = vmul.f32 %v3975_v3, %v3963_v25  ;;  %v6727_v23 = vmul.f32 %v3987_v62, %v3963_v25  ;;  %v6729_v27 = vmul.f32 %v3991_v20, %v3963_v25  ;;  %241 = vst.msk [vmem:[%s6791_s4 + $0x58] sm:$0xf] %vm230_vm1, %v7112_v59 }
 0x1f9   : > { %v6731_v15 = vmul.f32 %v3967_v13, %v3959_v41  ;;  %v6733_v63 = vmul.f32 %v3971_v39, %v3959_v41  ;;  %v6735_v24 = vmul.f32 %v3979_v16, %v3963_v25  ;;  %v6737_v2 = vmul.f32 %v3995_v10, %v3963_v25  ;;  %243 = vst.msk [vmem:[%s6791_s4 + $0x68] sm:$0xf] %vm230_vm1, %v7112_v59 }
 0x1fa   : > { %v6739_v14 = vmul.f32 %v3975_v3, %v3959_v41  ;;  %v6741_v42 = vmul.f32 %v3979_v16, %v3959_v41  ;;  %v6743_v58 = vmul.f32 %v3983_v57, %v3959_v41  ;;  %v6745_v5 = vmul.f32 %v3987_v62, %v3959_v41  ;;  %v7169_v3 = vld [vmem:[#allocation11_spill] sm:$0xff]  ;;  %245 = vst.msk [vmem:[%s6791_s4 + $0x78] sm:$0xf] %vm230_vm1, %v7112_v59 }
 0x1fb   : > { %v6747_v18 = vmul.f32 %v3991_v20, %v3959_v41  ;;  %v6749_v61 = vmul.f32 %v3995_v10, %v3959_v41  ;;  %v4208_v13 = vcombine.high %v4207_v56, %v4207_v56  ;;  %v4215_v9 = vrot.slane %v4207_v56, %v5332_v19  ;;  %247 = vst.msk [vmem:[%s6791_s4 + $0x88] sm:$0xf] %vm230_vm1, %v7112_v59 }
 0x1fc   : > { %7165 = vst [vmem:[#allocation4_spill] sm:$0xff] %v6743_v58  ;;  %7166 = vst [vmem:[#allocation5_spill] sm:$0xff] %v6745_v5  ;;  %v4159_v25 = vrot.slane %v7164_v36, %v5332_v19  ;;  %v4166_v39 = vrot.slane %v4152_v32, %v5332_v19  ;;  %v4479_v16 = vrot.slane %v7169_v3, %v5332_v19 }
 0x1fd   : > { %7167 = vst [vmem:[#allocation18_spill] sm:$0xff] %v6747_v18  ;;  %7168 = vst [vmem:[#allocation19_spill] sm:$0xff] %v6749_v61  ;;  %v4424_v57 = vcombine.high %v7170_v30, %v7170_v30  ;;  %v4431_v62 = vrot.slane %v7170_v30, %v5332_v19  ;;  %v4222_v41 = vrot.slane %v4208_v13, %v5332_v19 }
 0x1fe   : > { %v4223_v20 = vcombine.high %v4215_v9, %v4215_v9  ;;  %v6763_v10 = vrot.slane %v4215_v9, %v5203_v4  ;;  %v4167_v56 = vcombine.high %v4159_v25, %v4159_v25  ;;  %v4168_v36 = vcombine.high %v4166_v39, %v4166_v39  ;;  %249 = vst.msk [vmem:[%s6791_s4 + $0x98] sm:$0xf] %vm230_vm1, %v7112_v59 }
 0x1ff   : > { %v4175_v32 = vrot.slane %v4159_v25, %v5332_v19  ;;  %v4182_v7 = vrot.slane %v4166_v39, %v5332_v19  ;;  %v4480_v3 = vcombine.high %v4479_v16, %v4479_v16  ;;  %v4224_v12 = vcombine.high %v4222_v41, %v4222_v41  ;;  %251 = vst.msk [vmem:[%s6791_s4 + $0xa8] sm:$0xf] %vm230_vm1, %v7112_v59 }
 0x200   : > { %7171 = vst [vmem:[#allocation11_spill] sm:$0xff] %v6763_v10  ;;  %v6769_v53 = vrot.slane %v4222_v41, %v5203_v4  ;;  %v6772_v30 = vrot.slane %v4223_v20, %v5203_v4  ;;  %v4189_v13 = vrot.slane %v4167_v56, %v5332_v19  ;;  %v4196_v9 = vrot.slane %v4168_v36, %v5332_v19 }
 0x201   : > { %v4197_v8 = vcombine.high %v4175_v32, %v4175_v32  ;;  %v4198_v52 = vcombine.high %v4182_v7, %v4182_v7  ;;  %v6777_v29 = vrot.slane %v4175_v32, %v5203_v4  ;;  %v6780_v25 = vrot.slane %v4224_v12, %v5203_v4  ;;  %253 = vst.msk [vmem:[%s6791_s4 + $0xb8] sm:$0xf] %vm230_vm1, %v7112_v59 }
 0x202   : > { %7172 = vst [vmem:[#allocation6_spill] sm:$0xff] %v6769_v53  ;;  %7173 = vst [vmem:[#allocation20_spill] sm:$0xff] %v6772_v30  ;;  %v4199_v39 = vcombine.high %v4189_v13, %v4189_v13  ;;  %v6783_v17 = vrot.slane %v4189_v13, %v5203_v4  ;;  %v6786_v41 = vrot.slane %v4182_v7, %v5203_v4 }
 0x203   : > { %v4200_v20 = vcombine.high %v4196_v9, %v4196_v9  ;;  %v6794_v56 = vrot.slane %v4197_v8, %v5203_v4  ;;  %v6797_v12 = vrot.slane %v4196_v9, %v5203_v4  ;;  %v6800_v36 = vrot.slane %v4198_v52, %v5203_v4 }
 0x204   : > { %7174 = vst [vmem:[#allocation21_spill] sm:$0xff] %v6786_v41  ;;  %v6803_v7 = vrot.slane %v4199_v39, %v5203_v4  ;;  %v4487_v32 = vrot.slane %v4479_v16, %v5332_v19  ;;  %v4494_v13 = vrot.slane %v4480_v3, %v5332_v19  ;;  %v4438_v8 = vrot.slane %v4424_v57, %v5332_v19 }
 0x205   : > { %7175 = vst [vmem:[#allocation22_spill] sm:$0xff] %v6797_v12  ;;  %7176 = vst [vmem:[#allocation23_spill] sm:$0xff] %v6800_v36  ;;  %v6809_v9 = vrot.slane %v4200_v20, %v5203_v4  ;;  %v4439_v52 = vcombine.high %v4431_v62, %v4431_v62  ;;  %v4447_v61 = vrot.slane %v4431_v62, %v5332_v19 }
 0x206   : > { %7177 = vst [vmem:[#allocation24_spill] sm:$0xff] %v6803_v7  ;;  %v4495_v39 = vcombine.high %v4487_v32, %v4487_v32  ;;  %v4496_v16 = vcombine.high %v4494_v13, %v4494_v13  ;;  %v6813_v3 = vrot.slane %v4487_v32, %v5203_v4  ;;  %v6816_v57 = vrot.slane %v4494_v13, %v5203_v4 }
 0x207   : > { %7178 = vst [vmem:[#allocation25_spill] sm:$0xff] %v6809_v9  ;;  %v4440_v62 = vcombine.high %v4438_v8, %v4438_v8  ;;  %v4454_v20 = vrot.slane %v4438_v8, %v5332_v19  ;;  %v4461_v32 = vrot.slane %v4439_v52, %v5332_v19  ;;  %v4469_v13 = vcombine.high %v4447_v61, %v4447_v61 }
 0x208   : > { %v6857_v18 = vrot.slane %v4495_v39, %v5203_v4  ;;  %v6860_v0 = vrot.slane %v4496_v16, %v5203_v4  ;;  %v6863_v5 = vrot.slane %v4447_v61, %v5203_v4  ;;  %v4049_v46 = vadd.f32 %v6717_v54, %v6638_v48 }
 0x209   : > { %v4468_v59 = vrot.slane %v4440_v62, %v5332_v19  ;;  %v4470_v58 = vcombine.high %v4454_v20, %v4454_v20  ;;  %v4471_v43 = vcombine.high %v4461_v32, %v4461_v32  ;;  %v6869_v8 = vrot.slane %v4461_v32, %v5203_v4  ;;  %v4235_v32 = vpop.permute.xlu1 %4234 }
 0x20a   : > { %7179 = vst [vmem:[#allocation26_spill] sm:$0xff] %v6857_v18  ;;  %7180 = vst [vmem:[#allocation27_spill] sm:$0xff] %v6860_v0  ;;  %v6872_v52 = vrot.slane %v4469_v13, %v5203_v4  ;;  %v6875_v39 = vrot.slane %v4454_v20, %v5203_v4  ;;  %v4051_v61 = vadd.f32 %v6723_v33, %v6644_v35 }
 0x20b   : > { %v4053_v16 = vadd.f32 %v6725_v11, %v6650_v45  ;;  %v4472_v48 = vcombine.high %v4468_v59, %v4468_v59  ;;  %v6882_v19 = vrot.slane %v4471_v43, %v5203_v4  ;;  %v6885_v54 = vrot.slane %v4468_v59, %v5203_v4 }
 0x20c   : > { %v6888_v62 = vrot.slane %v4470_v58, %v5203_v4  ;;  %v4055_v20 = vadd.f32 %v6735_v24, %v6656_v1  ;;  %v4057_v35 = vadd.f32 %v6719_v47, %v6662_v34  ;;  %v4059_v45 = vadd.f32 %v6727_v23, %v6668_v28 }
 0x20d   : > { %v4061_v43 = vadd.f32 %v6729_v27, %v6674_v55  ;;  %v6899_v33 = vrot.slane %v4472_v48, %v5203_v4  ;;  %v4063_v59 = vadd.f32 %v6737_v2, %v6680_v22  ;;  %v4065_v11 = vadd.f32 %v6686_v60, %v6585_v37 }
 0x20e   : > { %v4067_v1 = vadd.f32 %v6688_v6, %v6591_v31  ;;  %v4069_v34 = vadd.f32 %v6690_v44, %v6597_v26  ;;  %v4071_v28 = vadd.f32 %v6692_v21, %v6603_v38  ;;  %v4297_v55 = vmul.f32 %v6777_v29, %v4235_v32  ;;  %v4507_v6 = vpop.permute.xlu1 %4506 }
 0x20f   : > { %v4299_v4 = vmul.f32 %v6783_v17, %v4235_v32  ;;  %v4301_v47 = vmul.f32 %v6794_v56, %v4235_v32  ;;  %v4303_v22 = vmul.f32 %v6803_v7, %v4235_v32  ;;  %v4305_v23 = vmul.f32 %v6786_v41, %v4235_v32 }
 0x210   : > { %v4307_v37 = vmul.f32 %v6797_v12, %v4235_v32  ;;  %v4309_v31 = vmul.f32 %v6800_v36, %v4235_v32  ;;  %v4311_v60 = vmul.f32 %v6809_v9, %v4235_v32  ;;  %v4313_v26 = vmul.f32 %v6763_v10, %v4235_v32 }
 0x211   : > { %v4315_v38 = vmul.f32 %v6769_v53, %v4235_v32  ;;  %v4317_v44 = vmul.f32 %v6772_v30, %v4235_v32  ;;  %v4319_v21 = vmul.f32 %v6780_v25, %v4235_v32  ;;  %v4321_v27 = vadd.f32 %v4297_v55, %v4049_v46  ;;  %v4619_v55 = vld [vmem:[%s6791_s4 + $0x18] sm:$0xf] }
 0x212   : > { %v4323_v24 = vadd.f32 %v4299_v4, %v4051_v61  ;;  %v4325_v2 = vadd.f32 %v4301_v47, %v4053_v16  ;;  %v4327_v58 = vadd.f32 %v4303_v22, %v4055_v20  ;;  %v4329_v13 = vadd.f32 %v4305_v23, %v4057_v35  ;;  %v4621_v4 = vld [vmem:[%s6791_s4 + $0x28] sm:$0xf]  ;;  %v4623_v47 = vld [vmem:[%s6791_s4 + $0x38] sm:$0xf] }
 0x213   : > { %v4331_v48 = vadd.f32 %v4307_v37, %v4059_v45  ;;  %v4333_v12 = vadd.f32 %v4309_v31, %v4061_v43  ;;  %v4335_v36 = vadd.f32 %v4311_v60, %v4063_v59  ;;  %v4337_v41 = vadd.f32 %v4313_v26, %v4065_v11  ;;  %v4617_v59 = vld [vmem:[%s6791_s4 + $0x8] sm:$0xf]  ;;  %v4627_v26 = vld [vmem:[%s6791_s4 + $0x58] sm:$0xf] }
 0x214   : > { %v4339_v9 = vadd.f32 %v4315_v38, %v4067_v1  ;;  %v4341_v7 = vadd.f32 %v4317_v44, %v4069_v34  ;;  %v4343_v10 = vadd.f32 %v4319_v21, %v4071_v28  ;;  %v4569_v53 = vmul.f32 %v6863_v5, %v4507_v6  ;;  %v4625_v60 = vld [vmem:[%s6791_s4 + $0x48] sm:$0xf] }
 0x215   : > { %v4571_v30 = vmul.f32 %v6869_v8, %v4507_v6  ;;  %v4573_v46 = vmul.f32 %v6872_v52, %v4507_v6  ;;  %v4575_v61 = vmul.f32 %v6882_v19, %v4507_v6  ;;  %v4577_v16 = vmul.f32 %v6875_v39, %v4507_v6  ;;  %v4629_v38 = vld [vmem:[%s6791_s4 + $0x68] sm:$0xf] }
 0x216   : > { %v4579_v32 = vmul.f32 %v6885_v54, %v4507_v6  ;;  %v4581_v20 = vmul.f32 %v6888_v62, %v4507_v6  ;;  %v4583_v35 = vmul.f32 %v6899_v33, %v4507_v6  ;;  %v4585_v45 = vmul.f32 %v6813_v3, %v4507_v6 }
 0x217   : > { %v4587_v43 = vmul.f32 %v6816_v57, %v4507_v6  ;;  %v4589_v11 = vmul.f32 %v6857_v18, %v4507_v6  ;;  %v4591_v1 = vmul.f32 %v6860_v0, %v4507_v6  ;;  %v4593_v34 = vadd.f32 %v4569_v53, %v4321_v27  ;;  %v4631_v27 = vld [vmem:[%s6791_s4 + $0x78] sm:$0xf] }
 0x218   : > { %v4595_v28 = vadd.f32 %v4571_v30, %v4323_v24  ;;  %v4597_v22 = vadd.f32 %v4573_v46, %v4325_v2  ;;  %v4599_v23 = vadd.f32 %v4575_v61, %v4327_v58  ;;  %v4601_v37 = vadd.f32 %v4577_v16, %v4329_v13  ;;  %v4633_v30 = vld [vmem:[%s6791_s4 + $0x88] sm:$0xf]  ;;  %v4635_v24 = vld [vmem:[%s6791_s4 + $0x98] sm:$0xf] }
 0x219   : > { %v4603_v31 = vadd.f32 %v4579_v32, %v4331_v48  ;;  %v4605_v44 = vadd.f32 %v4581_v20, %v4333_v12  ;;  %v4607_v21 = vadd.f32 %v4583_v35, %v4335_v36  ;;  %v4609_v6 = vadd.f32 %v4585_v45, %v4337_v41  ;;  %v4637_v2 = vld [vmem:[%s6791_s4 + $0xa8] sm:$0xf]  ;;  %v4639_v46 = vld [vmem:[%s6791_s4 + $0xb8] sm:$0xf] }
 0x21a   : > { %v4611_v53 = vadd.f32 %v4587_v43, %v4339_v9  ;;  %v4613_v0 = vadd.f32 %v4589_v11, %v4341_v7  ;;  %v4615_v18 = vadd.f32 %v4591_v1, %v4343_v10  ;;  %v4641_v58 = vadd.f32 %v4617_v59, %v4593_v34  ;;  %v4231_v7 = vpop.permute.xlu0 %4230  ;;  %v7182_v45 = vld [vmem:[#allocation3_spill] sm:$0xff]  ;;  %v7183_v43 = vld [vmem:[#allocation4_spill] sm:$0xff]  ;;  %v7184_v11 = vld [vmem:[#allocation10_spill] sm:$0xff] }
 0x21b   : > { %v4643_v13 = vadd.f32 %v4619_v55, %v4595_v28  ;;  %v4645_v48 = vadd.f32 %v4621_v4, %v4597_v22  ;;  %v4647_v12 = vadd.f32 %v4623_v47, %v4599_v23  ;;  %v4649_v36 = vadd.f32 %v4625_v60, %v4601_v37  ;;  %v7185_v1 = vld [vmem:[#allocation5_spill] sm:$0xff]  ;;  %v7186_v28 = vld [vmem:[#allocation12_spill] sm:$0xff]  ;;  %v7187_v55 = vld [vmem:[#allocation18_spill] sm:$0xff] }
 0x21c   : > { %v4651_v41 = vadd.f32 %v4627_v26, %v4603_v31  ;;  %v4653_v9 = vadd.f32 %v4629_v38, %v4605_v44  ;;  %v4655_v61 = vadd.f32 %v4631_v27, %v4607_v21  ;;  %v4657_v16 = vadd.f32 %v4633_v30, %v4609_v6  ;;  %4667 = vst.msk [vmem:[%s6791_s4 + $0x8] sm:$0xf] %vm230_vm1, %v4641_v58  ;;  %v7194_v37 = vld [vmem:[#allocation9_spill] sm:$0xff]  ;;  %v7195_v31 = vld [vmem:[#allocation16_spill] sm:$0xff]  ;;  %v7196_v26 = vld [vmem:[#allocation2_spill] sm:$0xff] }
 0x21d   : > { %v4659_v10 = vadd.f32 %v4635_v24, %v4611_v53  ;;  %4669 = vst.msk [vmem:[%s6791_s4 + $0x18] sm:$0xf] %vm230_vm1, %v4643_v13  ;;  %v4661_v32 = vadd.f32 %v4637_v2, %v4613_v0  ;;  %v4663_v20 = vadd.f32 %v4639_v46, %v4615_v18  ;;  %4671 = vst.msk [vmem:[%s6791_s4 + $0x28] sm:$0xf] %vm230_vm1, %v4645_v48  ;;  %v7181_v18 = vmov 0.0   ;;  %v7197_v38 = vld [vmem:[#allocation17_spill] sm:$0xff] }
 0x21e   : > { %4673 = vst.msk [vmem:[%s6791_s4 + $0x38] sm:$0xf] %vm230_vm1, %v4647_v12  ;;  %4675 = vst.msk [vmem:[%s6791_s4 + $0x48] sm:$0xf] %vm230_vm1, %v4649_v36  ;;  %v4048_v0 = vadd.f32 %v6731_v15, %v6635_v49  ;;  %v4050_v49 = vadd.f32 %v6733_v63, %v6641_v50  ;;  %v4052_v15 = vadd.f32 %v6739_v14, %v6647_v51  ;;  %v7188_v50 = vld [vmem:[#allocation13_spill] sm:$0xff]  ;;  %v7189_v63 = vld [vmem:[#allocation19_spill] sm:$0xff] }
 0x21f   : > { %4677 = vst.msk [vmem:[%s6791_s4 + $0x58] sm:$0xf] %vm230_vm1, %v4651_v41  ;;  %4679 = vst.msk [vmem:[%s6791_s4 + $0x68] sm:$0xf] %vm230_vm1, %v4653_v9  ;;  %v4054_v35 = vadd.f32 %v6741_v42, %v6653_v40  ;;  %v4056_v59 = vadd.f32 %v7183_v43, %v7182_v45  ;;  %v4058_v34 = vadd.f32 %v7185_v1, %v7184_v11  ;;  %v7190_v51 = vld [vmem:[#allocation7_spill] sm:$0xff]  ;;  %v7191_v14 = vld [vmem:[#allocation14_spill] sm:$0xff] }
 0x220   : > { %4681 = vst.msk [vmem:[%s6791_s4 + $0x78] sm:$0xf] %vm230_vm1, %v4655_v61  ;;  %4683 = vst.msk [vmem:[%s6791_s4 + $0x88] sm:$0xf] %vm230_vm1, %v4657_v16  ;;  %v4060_v4 = vadd.f32 %v7187_v55, %v7186_v28  ;;  %v4062_v47 = vadd.f32 %v7189_v63, %v7188_v50  ;;  %v4064_v22 = vadd.f32 %v7191_v14, %v7190_v51  ;;  %v7192_v40 = vld [vmem:[#allocation8_spill] sm:$0xff]  ;;  %v7193_v42 = vld [vmem:[#allocation15_spill] sm:$0xff]  ;;  %v4503_v61 = vpop.permute.xlu0 %4502 }
 0x221   : > { %4685 = vst.msk [vmem:[%s6791_s4 + $0x98] sm:$0xf] %vm230_vm1, %v4659_v10  ;;  %4687 = vst.msk [vmem:[%s6791_s4 + $0xa8] sm:$0xf] %vm230_vm1, %v4661_v32  ;;  %v4066_v23 = vadd.f32 %v7193_v42, %v7192_v40  ;;  %v4068_v60 = vadd.f32 %v7195_v31, %v7194_v37  ;;  %v4070_v44 = vadd.f32 %v7197_v38, %v7196_v26  ;;  %v7198_v27 = vld [vmem:[#allocation24_spill] sm:$0xff]  ;;  %v7199_v24 = vld [vmem:[#allocation21_spill] sm:$0xff] }
 0x222   : > { %229 = vst.msk [vmem:[%s6791_s4] sm:$0xff] %vm228_vm2, %v7181_v18  ;;  %232 = vst.msk [vmem:[%s6791_s4 + $0x10] sm:$0xff] %vm228_vm2, %v7181_v18  ;;  %v4296_v21 = vmul.f32 %v6777_v29, %v4231_v7  ;;  %v4298_v6 = vmul.f32 %v6783_v17, %v4231_v7  ;;  %v4300_v53 = vmul.f32 %v6794_v56, %v4231_v7  ;;  %v7200_v46 = vld [vmem:[#allocation22_spill] sm:$0xff]  ;;  %v7201_v13 = vld [vmem:[#allocation23_spill] sm:$0xff] }
 0x223   : > { %234 = vst.msk [vmem:[%s6791_s4 + $0x20] sm:$0xff] %vm228_vm2, %v7181_v18  ;;  %236 = vst.msk [vmem:[%s6791_s4 + $0x30] sm:$0xff] %vm228_vm2, %v7181_v18  ;;  %v4302_v30 = vmul.f32 %v7198_v27, %v4231_v7  ;;  %v4304_v2 = vmul.f32 %v7199_v24, %v4231_v7  ;;  %v4306_v58 = vmul.f32 %v7200_v46, %v4231_v7  ;;  %v7202_v12 = vld [vmem:[#allocation25_spill] sm:$0xff]  ;;  %v7203_v41 = vld [vmem:[#allocation11_spill] sm:$0xff] }
 0x224   : > { %238 = vst.msk [vmem:[%s6791_s4 + $0x40] sm:$0xff] %vm228_vm2, %v7181_v18  ;;  %240 = vst.msk [vmem:[%s6791_s4 + $0x50] sm:$0xff] %vm228_vm2, %v7181_v18  ;;  %v4308_v48 = vmul.f32 %v7201_v13, %v4231_v7  ;;  %v4310_v36 = vmul.f32 %v7202_v12, %v4231_v7  ;;  %v4312_v9 = vmul.f32 %v7203_v41, %v4231_v7  ;;  %v7204_v16 = vld [vmem:[#allocation6_spill] sm:$0xff]  ;;  %v7205_v29 = vld [vmem:[#allocation20_spill] sm:$0xff] }
 0x225   : > { %242 = vst.msk [vmem:[%s6791_s4 + $0x60] sm:$0xff] %vm228_vm2, %v7181_v18  ;;  %244 = vst.msk [vmem:[%s6791_s4 + $0x70] sm:$0xff] %vm228_vm2, %v7181_v18  ;;  %v4314_v10 = vmul.f32 %v7204_v16, %v4231_v7  ;;  %v4316_v32 = vmul.f32 %v7205_v29, %v4231_v7  ;;  %v4318_v17 = vmul.f32 %v6780_v25, %v4231_v7 }
 0x226   : > { %246 = vst.msk [vmem:[%s6791_s4 + $0x80] sm:$0xff] %vm228_vm2, %v7181_v18  ;;  %248 = vst.msk [vmem:[%s6791_s4 + $0x90] sm:$0xff] %vm228_vm2, %v7181_v18  ;;  %v4320_v56 = vadd.f32 %v4296_v21, %v4048_v0  ;;  %v4326_v45 = vadd.f32 %v4302_v30, %v4054_v35  ;;  %v4328_v43 = vadd.f32 %v4304_v2, %v4056_v59 }
 0x227   : > { %250 = vst.msk [vmem:[%s6791_s4 + $0xa0] sm:$0xff] %vm228_vm2, %v7181_v18  ;;  %252 = vst.msk [vmem:[%s6791_s4 + $0xb0] sm:$0xff] %vm228_vm2, %v7181_v18  ;;  %v4324_v18 = vadd.f32 %v4300_v53, %v4052_v15  ;;  %v4330_v11 = vadd.f32 %v4306_v58, %v4058_v34  ;;  %v4332_v1 = vadd.f32 %v4308_v48, %v4060_v4 }
 0x228   : > { %4689 = vst.msk [vmem:[%s6791_s4 + $0xb8] sm:$0xf] %vm230_vm1, %v4663_v20  ;;  %v4322_v20 = vadd.f32 %v4298_v6, %v4050_v49  ;;  %v4334_v28 = vadd.f32 %v4310_v36, %v4062_v47  ;;  %v4336_v55 = vadd.f32 %v4312_v9, %v4064_v22  ;;  %v4338_v50 = vadd.f32 %v4314_v10, %v4066_v23 }
 0x229   : > { %v4340_v63 = vadd.f32 %v4316_v32, %v4068_v60  ;;  %v4342_v51 = vadd.f32 %v4318_v17, %v4070_v44  ;;  %v4568_v14 = vmul.f32 %v6863_v5, %v4503_v61  ;;  %v4570_v40 = vmul.f32 %v6869_v8, %v4503_v61  ;;  %v7206_v8 = vld [vmem:[#allocation26_spill] sm:$0xff] }
 0x22a   : > { %v4572_v25 = vmul.f32 %v6872_v52, %v4503_v61  ;;  %v4574_v7 = vmul.f32 %v6882_v19, %v4503_v61  ;;  %v4576_v0 = vmul.f32 %v6875_v39, %v4503_v61  ;;  %v4578_v49 = vmul.f32 %v6885_v54, %v4503_v61  ;;  %v7207_v52 = vld [vmem:[#allocation27_spill] sm:$0xff]  ;;  %v4616_v39 = vld [vmem:[%s6791_s4] sm:$0xff]  ;;  %v4618_v54 = vld [vmem:[%s6791_s4 + $0x10] sm:$0xff] }
 0x22b   : > { %v4580_v15 = vmul.f32 %v6888_v62, %v4503_v61  ;;  %v4582_v35 = vmul.f32 %v6899_v33, %v4503_v61  ;;  %v4584_v59 = vmul.f32 %v6813_v3, %v4503_v61  ;;  %v4586_v5 = vmul.f32 %v6816_v57, %v4503_v61  ;;  %v4620_v47 = vld [vmem:[%s6791_s4 + $0x20] sm:$0xff]  ;;  %v4622_v3 = vld [vmem:[%s6791_s4 + $0x30] sm:$0xff] }
 0x22c   : > { %v4588_v34 = vmul.f32 %v7206_v8, %v4503_v61  ;;  %v4590_v4 = vmul.f32 %v7207_v52, %v4503_v61  ;;  %v4592_v19 = vadd.f32 %v4568_v14, %v4320_v56  ;;  %v4594_v22 = vadd.f32 %v4570_v40, %v4322_v20  ;;  %v4624_v57 = vld [vmem:[%s6791_s4 + $0x40] sm:$0xff]  ;;  %v4626_v23 = vld [vmem:[%s6791_s4 + $0x50] sm:$0xff] }
 0x22d   : > { %v4596_v62 = vadd.f32 %v4572_v25, %v4324_v18  ;;  %v4598_v42 = vadd.f32 %v4574_v7, %v4326_v45  ;;  %v4600_v33 = vadd.f32 %v4576_v0, %v4328_v43  ;;  %v4602_v37 = vadd.f32 %v4578_v49, %v4330_v11  ;;  %v4628_v38 = vld [vmem:[%s6791_s4 + $0x60] sm:$0xff]  ;;  %v4630_v44 = vld [vmem:[%s6791_s4 + $0x70] sm:$0xff] }
 0x22e   : > { %v4604_v31 = vadd.f32 %v4580_v15, %v4332_v1  ;;  %v4606_v60 = vadd.f32 %v4582_v35, %v4334_v28  ;;  %v4608_v26 = vadd.f32 %v4584_v59, %v4336_v55  ;;  %v4632_v21 = vld [vmem:[%s6791_s4 + $0x80] sm:$0xff]  ;;  %v4610_v6 = vadd.f32 %v4586_v5, %v4338_v50  ;;  %v4634_v30 = vld [vmem:[%s6791_s4 + $0x90] sm:$0xff] }
 0x22f   : > { %v4612_v53 = vadd.f32 %v4588_v34, %v4340_v63  ;;  %v4614_v27 = vadd.f32 %v4590_v4, %v4342_v51  ;;  %v4636_v24 = vld [vmem:[%s6791_s4 + $0xa0] sm:$0xff]  ;;  %v4638_v2 = vld [vmem:[%s6791_s4 + $0xb0] sm:$0xff]  ;;  %v4640_v46 = vadd.f32 %v4616_v39, %v4592_v19  ;;  %v4642_v58 = vadd.f32 %v4618_v54, %v4594_v22 }
 0x230   : > { %v4644_v13 = vadd.f32 %v4620_v47, %v4596_v62  ;;  %v4646_v48 = vadd.f32 %v4622_v3, %v4598_v42  ;;  %v4648_v12 = vadd.f32 %v4624_v57, %v4600_v33  ;;  %v4650_v36 = vadd.f32 %v4626_v23, %v4602_v37 }
 0x231   : > { %v4652_v41 = vadd.f32 %v4628_v38, %v4604_v31  ;;  %v4654_v9 = vadd.f32 %v4630_v44, %v4606_v60  ;;  %v4656_v61 = vadd.f32 %v4632_v21, %v4608_v26  ;;  %4665 = vst.msk [vmem:[%s6791_s4] sm:$0xff] %vm228_vm2, %v4640_v46  ;;  %v4658_v16 = vadd.f32 %v4634_v30, %v4610_v6 }
 0x232   : > { %v4660_v10 = vadd.f32 %v4636_v24, %v4612_v53  ;;  %v4662_v29 = vadd.f32 %v4638_v2, %v4614_v27  ;;  %4668 = vst.msk [vmem:[%s6791_s4 + $0x10] sm:$0xff] %vm228_vm2, %v4642_v58  ;;  %4670 = vst.msk [vmem:[%s6791_s4 + $0x20] sm:$0xff] %vm228_vm2, %v4644_v13 }
 0x233   : > { %4672 = vst.msk [vmem:[%s6791_s4 + $0x30] sm:$0xff] %vm228_vm2, %v4646_v48  ;;  %4674 = vst.msk [vmem:[%s6791_s4 + $0x40] sm:$0xff] %vm228_vm2, %v4648_v12 }
 0x234   : > { %4676 = vst.msk [vmem:[%s6791_s4 + $0x50] sm:$0xff] %vm228_vm2, %v4650_v36  ;;  %4678 = vst.msk [vmem:[%s6791_s4 + $0x60] sm:$0xff] %vm228_vm2, %v4652_v41 }
 0x235   : > { %4680 = vst.msk [vmem:[%s6791_s4 + $0x70] sm:$0xff] %vm228_vm2, %v4654_v9  ;;  %4682 = vst.msk [vmem:[%s6791_s4 + $0x80] sm:$0xff] %vm228_vm2, %v4656_v61 }
 0x236   : > { %4684 = vst.msk [vmem:[%s6791_s4 + $0x90] sm:$0xff] %vm228_vm2, %v4658_v16  ;;  %4686 = vst.msk [vmem:[%s6791_s4 + $0xa0] sm:$0xff] %vm228_vm2, %v4660_v10 }
 0x237   : > { %4688 = vst.msk [vmem:[%s6791_s4 + $0xb0] sm:$0xff] %vm228_vm2, %v4662_v29 }
 0x238 PF: > { %s13_s14 = sadd.s32 1, %s5141_s14   ;;  %s7208_s12 = smov %s5137_s13 }
 0x239   : > { %p10_p5 = scmp.ge.s32.totalorder %s13_s14, 4   ;;  %s7209_s13 = smov %s7211_s15 }
 0x23b   :  { %12 = sbr.rel (!%p10_p5) target bundleno = 2 (0x2), region = 84 }

// kernel: pyramid_pooling_forward.5
= control target key start
LH: loop header
LB: loop body
LE: loop exit
PB: predicated region body
PF: predicated region fallthrough
CT: control target
= control target key end

     0   :  { %10 = vsyncpa [#allocation3], 0  ;;  %s2224_s0 = inlined_call_operand.vmem [shape: f32[2,16,16,64], index: 0, kind: input, shape index: {}]   ;;  %s2225_s1 = inlined_call_operand.vmem [shape: f32[16,16,64], index: 1, kind: input, shape index: {}]   ;;  %s2226_s2 = inlined_call_operand.vmem [shape: f32[2,64,64], index: 2, kind: input, shape index: {}]   ;;  %s2227_s3 = inlined_call_operand.vmem [shape: f32[64,64], index: 3, kind: input, shape index: {}]   ;;  %s2228_s4 = inlined_call_operand.vmem [shape: f32[1,64], index: 4, kind: input, shape index: {}]   ;;  %s2229_s5 = inlined_call_operand.hbm [shape: f32[2,16,16,64], index: 5, kind: output, shape index: {}]  }
   0x1   :  { %12 = vsyncpa [#allocation3 + $0x1], 0  ;;  %s1780_s18 = smov 0   ;;  %s1782_s19 = smov 0  }
   0x2   :  { %s1784_s20 = smov 0   ;;  %s1786_s21 = smov 0  }
   0x3   :  { %s1788_s22 = smov 0   ;;  %s1790_s23 = smov 0  }
   0x4 LB: > { %s1254_s24 = sadd.s32 4294967295, %s1745_s23   ;;  %s1255_s25 = sadd.s32 4294967294, %s1745_s23   ;;  %s1745_s23 = sphi %s1790_s23, %s18_s23   ;;  %s1741_s22 = sphi %s1788_s22, %s2236_s22   ;;  %s1737_s21 = sphi %s1786_s21, %s2235_s21   ;;  %s1733_s20 = sphi %s1784_s20, %s2234_s20   ;;  %s1729_s19 = sphi %s1782_s19, %s2233_s19   ;;  %s1725_s18 = sphi %s1780_s18, %s2232_s18  }
   0x5   : > { %s30_s26 = sadd.s32 1, %s1741_s22  ;;  %s161_s27 = sadd.s32 1, %s1733_s20 }
   0x6   : > { %p32_p0 = scmp.ge.s32.totalorder %s30_s26, 2  ;;  %p171_p1 = scmp.ne.s32.totalorder %s1733_s20, %s1729_s19 }
   0x7   : > { %p172_p2 = scmp.eq.s32.totalorder %s1254_s24, 1  ;;  %p177_p3 = scmp.ne.s32.totalorder %s1729_s19, %s1725_s18 }
   0x8   : > { %s2238_s26 = smov (%p32_p0, %s30_s26), 0  ;;  %p178_p5 = scmp.eq.s32.totalorder %s1255_s25, 1 }
   0x9   : > { %p1820_p4 = por %p172_p2, %p171_p1  ;;  %s156_s29 = ssub.s32 %s1741_s22, %s2238_s26 }
   0xa   : > { %p1259_p6 = scmp.ge.s32.totalorder %s1745_s23, 1  ;;  %p159_p7 = scmp.eq.s32.totalorder %s156_s29, 0 }
   0xb   : > { %p1827_p8 = por %p178_p5, %p177_p3  ;;  %p234_p9 = scmp.lt.s32.totalorder %s1745_s23, 3 }
   0xc   : > { %s1833_s6 = scalar_select %p159_p7, %s1733_s20, %s161_s27  }
   0xd   : > { %p235_p10 = pnand %p1259_p6, %p234_p9 }
   0xe   : > { %v366_v0 = vld [vmem:[%s2227_s3] sm:$0xff] (!%p235_p10)  ;;  %v367_v1 = vld [vmem:[%s2227_s3 + $0x8] sm:$0xff] (!%p235_p10)  ;;  %p279_p11 = scmp.lt.s32.totalorder (!%p235_p10), %s1737_s21, 1  ;;  %v368_v2 = vld [vmem:[%s2227_s3 + $0x10] sm:$0xff] (!%p235_p10)  ;;  %vm382_vm0 = vcmask (!%p235_p10), 523264   ;;  %s275_s9 = sand.u32 (!%p235_p10), 1, %s1729_s19  }
   0xf   : > { %238 = sbr.rel (%p235_p10) target bundleno = 339 (0x153), region = 40  ;;  %v1562_v3 = vpack.c.bf16 (!%p235_p10), %v367_v1, %v366_v0  ;;  %v369_v4 = vld [vmem:[%s2227_s3 + $0x18] sm:$0xff] (!%p235_p10)  ;;  %v370_v6 = vld [vmem:[%s2227_s3 + $0x20] sm:$0xff] (!%p235_p10)  ;;  %v371_v7 = vld [vmem:[%s2227_s3 + $0x28] sm:$0xff] (!%p235_p10)  ;;  %s1260_s13 = sshll.u32 (!%p235_p10), %s275_s9, 8 }
  0x10   : > { %v1566_v5 = vpack.c.bf16 (!%p235_p10), %v369_v4, %v368_v2  ;;  %v334_v8 = vld [vmem:[%s2225_s1] sm:$0xff] (!%p235_p10)  ;;  %v1570_v9 = vpack.c.bf16 (!%p235_p10), %v371_v7, %v370_v6  ;;  %v372_v10 = vld [vmem:[%s2227_s3 + $0x30] sm:$0xff] (!%p235_p10)  ;;  %v373_v11 = vld [vmem:[%s2227_s3 + $0x38] sm:$0xff] (!%p235_p10)  ;;  %s1337_s16 = sshll.u32 (!%p235_p10), %s1737_s21, 12  ;;  %s1747_s29 = smov (!%p235_p10), [#allocation2]  }
  0x11   : > { %1563 = vmatprep.subr.bf16.mxu0 (!%p235_p10), %v1562_v3  ;;  %1434 = vmatprep.mubr.msk.f32.mxu1 (!%p235_p10), %vm382_vm0, %v334_v8  ;;  %v1574_v21 = vpack.c.bf16 (!%p235_p10), %v373_v11, %v372_v10  ;;  %v335_v30 = vld [vmem:[%s2225_s1 + $0x8] sm:$0xff] (!%p235_p10)  ;;  %v336_v31 = vld [vmem:[%s2225_s1 + $0x10] sm:$0xff] (!%p235_p10)  ;;  %v337_v34 = vld [vmem:[%s2225_s1 + $0x18] sm:$0xff] (!%p235_p10) }
  0x12   : > { %1565 = vmatpush3.bf16.msra.mxu0 (!%p235_p10), %v1562_v3  ;;  %v338_v35 = vld [vmem:[%s2225_s1 + $0x20] sm:$0xff] (!%p235_p10)  ;;  %v339_v38 = vld [vmem:[%s2225_s1 + $0x28] sm:$0xff] (!%p235_p10)  ;;  %v340_v39 = vld [vmem:[%s2225_s1 + $0x30] sm:$0xff] (!%p235_p10) }
  0x13   : > { %1567 = vmatprep.subr.bf16.mxu0 (!%p235_p10), %v1566_v5  ;;  %v341_v42 = vld [vmem:[%s2225_s1 + $0x38] sm:$0xff] (!%p235_p10)  ;;  %v342_v43 = vld [vmem:[%s2225_s1 + $0x40] sm:$0xff] (!%p235_p10)  ;;  %v343_v46 = vld [vmem:[%s2225_s1 + $0x48] sm:$0xff] (!%p235_p10) }
  0x14   : > { %v344_v47 = vld [vmem:[%s2225_s1 + $0x50] sm:$0xff] (!%p235_p10)  ;;  %v345_v50 = vld [vmem:[%s2225_s1 + $0x58] sm:$0xff] (!%p235_p10)  ;;  %v346_v51 = vld [vmem:[%s2225_s1 + $0x60] sm:$0xff] (!%p235_p10) }
  0x15   : > { %v347_v54 = vld [vmem:[%s2225_s1 + $0x68] sm:$0xff] (!%p235_p10)  ;;  %v348_v55 = vld [vmem:[%s2225_s1 + $0x70] sm:$0xff] (!%p235_p10)  ;;  %v349_v58 = vld [vmem:[%s2225_s1 + $0x78] sm:$0xff] (!%p235_p10) }
  0x16   : > { %s280_s15 = scalar_select %p279_p11, %s1737_s21, 1  ;;  %1569 = vmatpush3.bf16.msra.mxu0 %v1566_v5  ;;  %v350_v59 = vld [vmem:[%s2225_s1 + $0x80] sm:$0xff]  ;;  %v351_v62 = vld [vmem:[%s2225_s1 + $0x88] sm:$0xff]  ;;  %v352_v63 = vld [vmem:[%s2225_s1 + $0x90] sm:$0xff] }
  0x17   : > { %1571 = vmatprep.subr.bf16.mxu0 %v1570_v9  ;;  %v353_v2 = vld [vmem:[%s2225_s1 + $0x98] sm:$0xff]  ;;  %v354_v3 = vld [vmem:[%s2225_s1 + $0xa0] sm:$0xff]  ;;  %v355_v6 = vld [vmem:[%s2225_s1 + $0xa8] sm:$0xff]  ;;  %s2178_s21 = scalar_lea.sflag [#allocation3], %s275_s9 }
  0x18   : > { %s1335_s7 = sshll.u32 %s280_s15, 8  ;;  %s1336_s8 = sshll.u32 %s280_s15, 6  ;;  %v356_v7 = vld [vmem:[%s2225_s1 + $0xb0] sm:$0xff]  ;;  %v357_v10 = vld [vmem:[%s2225_s1 + $0xb8] sm:$0xff]  ;;  %v358_v11 = vld [vmem:[%s2225_s1 + $0xc0] sm:$0xff] }
  0x19   : > { %s1862_s11 = scalar_lea.vmem %s2224_s0, %s1335_s7  ;;  %s300_s14 = scalar_lea.vmem %s2226_s2, %s1336_s8 }
  0x1a   : > { %v374_v12 = vld [vmem:[%s300_s14] sm:$0xff]  ;;  %v375_v13 = vld [vmem:[%s300_s14 + $0x8] sm:$0xff]  ;;  %v376_v14 = vld [vmem:[%s300_s14 + $0x10] sm:$0xff]  ;;  %1573 = vmatpush3.bf16.msra.mxu0 %v1570_v9  ;;  %s2168_s15 = scalar_lea.hbm %s2229_s5, %s1337_s16  ;;  %s1671_s7 = sshll.u32 %s1747_s29, 4  ;;  %s1672_s7 = int_to_ptr.vmem [resolvable:$false] %s1671_s7 }
  0x1b   : > { %v1546_v15 = vpack.c.bf16 %v375_v13, %v374_v12  ;;  %v377_v16 = vld [vmem:[%s300_s14 + $0x18] sm:$0xff]  ;;  %v378_v18 = vld [vmem:[%s300_s14 + $0x20] sm:$0xff]  ;;  %v379_v19 = vld [vmem:[%s300_s14 + $0x28] sm:$0xff]  ;;  %1575 = vmatprep.subr.bf16.mxu0 %v1574_v21 }
  0x1c   : > { %v1550_v17 = vpack.c.bf16 %v377_v16, %v376_v14  ;;  %v302_v20 = vld [vmem:[%s1862_s11] sm:$0xff]  ;;  %v1554_v22 = vpack.c.bf16 %v379_v19, %v378_v18  ;;  %v380_v23 = vld [vmem:[%s300_s14 + $0x30] sm:$0xff]  ;;  %v381_v24 = vld [vmem:[%s300_s14 + $0x38] sm:$0xff]  ;;  %s2071_s14 = scalar_lea.vmem [#allocation2], %s1260_s13 }
  0x1d   : > { %1547 = vmatprep.subr.bf16.mxu1 %v1546_v15  ;;  %1498 = vmatprep.mubr.msk.f32.mxu0 %vm382_vm0, %v302_v20  ;;  %v1558_v25 = vpack.c.bf16 %v381_v24, %v380_v23  ;;  %v303_v26 = vld [vmem:[%s1862_s11 + $0x8] sm:$0xff]  ;;  %v304_v27 = vld [vmem:[%s1862_s11 + $0x10] sm:$0xff]  ;;  %v305_v28 = vld [vmem:[%s1862_s11 + $0x18] sm:$0xff]  ;;  %s1145_s17 = sshll.u32 %s2071_s14, 4  ;;  %s2170_s17 = int_to_ptr.vmem [resolvable:$true] %s1145_s17 }
  0x1e   : > { %1549 = vmatpush3.bf16.msra.mxu1 %v1546_v15  ;;  %1577 = vmatpush3.bf16.msra.mxu0 %v1574_v21  ;;  %v306_v29 = vld [vmem:[%s1862_s11 + $0x20] sm:$0xff]  ;;  %v307_v32 = vld [vmem:[%s1862_s11 + $0x28] sm:$0xff]  ;;  %v308_v33 = vld [vmem:[%s1862_s11 + $0x30] sm:$0xff]  ;;  %s1667_s27 = scalar_lea.vmem %s2170_s17, 4096  ;;  %p1674_p1 = scmp.lt.s32.totalorder %s2170_s17, %s1672_s7 }
  0x1f   : > { %1551 = vmatprep.subr.bf16.mxu1 %v1550_v17  ;;  %v309_v36 = vld [vmem:[%s1862_s11 + $0x38] sm:$0xff]  ;;  %v310_v37 = vld [vmem:[%s1862_s11 + $0x40] sm:$0xff]  ;;  %v311_v40 = vld [vmem:[%s1862_s11 + $0x48] sm:$0xff]  ;;  %p1668_p12 = scmp.ne.s32.totalorder %s2170_s17, %s1667_s27 }
  0x20   : > { %v312_v41 = vld [vmem:[%s1862_s11 + $0x50] sm:$0xff]  ;;  %v313_v44 = vld [vmem:[%s1862_s11 + $0x58] sm:$0xff]  ;;  %v314_v45 = vld [vmem:[%s1862_s11 + $0x60] sm:$0xff] }
  0x21   : > { %1499 = vmatmul.mubr.msk.f32.vlgmr.msra.gmra.mrb[0].mxu0 %vm382_vm0, %v303_v26  ;;  %v315_v48 = vld [vmem:[%s1862_s11 + $0x68] sm:$0xff]  ;;  %v316_v49 = vld [vmem:[%s1862_s11 + $0x70] sm:$0xff]  ;;  %v317_v52 = vld [vmem:[%s1862_s11 + $0x78] sm:$0xff]  ;;  %p1669_p13 = pnand %p1668_p12, %p1820_p4 }
  0x22   : > { %1553 = vmatpush3.bf16.msra.mxu1 %v1550_v17  ;;  %1501 = vmatprep.mubr.msk.f32.mxu0 %vm382_vm0, %v304_v27  ;;  %v318_v53 = vld [vmem:[%s1862_s11 + $0x80] sm:$0xff]  ;;  %v319_v56 = vld [vmem:[%s1862_s11 + $0x88] sm:$0xff]  ;;  %v320_v57 = vld [vmem:[%s1862_s11 + $0x90] sm:$0xff] }
  0x23   : > { %1555 = vmatprep.subr.bf16.mxu1 %v1554_v22  ;;  %v321_v60 = vld [vmem:[%s1862_s11 + $0x98] sm:$0xff]  ;;  %v322_v61 = vld [vmem:[%s1862_s11 + $0xa0] sm:$0xff]  ;;  %v323_v0 = vld [vmem:[%s1862_s11 + $0xa8] sm:$0xff]  ;;  %p1670_p0 = pneg %p1669_p13 }
  0x24   : > { %v324_v1 = vld [vmem:[%s1862_s11 + $0xb0] sm:$0xff]  ;;  %v325_v4 = vld [vmem:[%s1862_s11 + $0xb8] sm:$0xff]  ;;  %v326_v5 = vld [vmem:[%s1862_s11 + $0xc0] sm:$0xff] }
  0x25   : > { %1502 = vmatmul.mubr.msk.f32.gmra.mrb[2].mxu0 %vm382_vm0, %v305_v28  ;;  %v327_v8 = vld [vmem:[%s1862_s11 + $0xc8] sm:$0xff]  ;;  %v328_v9 = vld [vmem:[%s1862_s11 + $0xd0] sm:$0xff]  ;;  %v329_v12 = vld [vmem:[%s1862_s11 + $0xd8] sm:$0xff] }
  0x26   : > { %1557 = vmatpush3.bf16.msra.mxu1 %v1554_v22  ;;  %1504 = vmatprep.mubr.msk.f32.mxu0 %vm382_vm0, %v306_v29  ;;  %v330_v13 = vld [vmem:[%s1862_s11 + $0xe0] sm:$0xff]  ;;  %v359_v14 = vld [vmem:[%s2225_s1 + $0xc8] sm:$0xff]  ;;  %v360_v15 = vld [vmem:[%s2225_s1 + $0xd0] sm:$0xff] }
  0x27   : > { %1559 = vmatprep.subr.bf16.mxu1 %v1558_v25  ;;  %v331_v16 = vld [vmem:[%s1862_s11 + $0xe8] sm:$0xff]  ;;  %v332_v17 = vld [vmem:[%s1862_s11 + $0xf0] sm:$0xff]  ;;  %v361_v18 = vld [vmem:[%s2225_s1 + $0xd8] sm:$0xff] }
  0x28   : > { %v362_v19 = vld [vmem:[%s2225_s1 + $0xe0] sm:$0xff]  ;;  %v333_v20 = vld [vmem:[%s1862_s11 + $0xf8] sm:$0xff]  ;;  %v363_v21 = vld [vmem:[%s2225_s1 + $0xe8] sm:$0xff]  ;;  %s1673_s11 = scalar_lea.vmem %s1672_s7, 8192 }
  0x29   : > { %1505 = vmatmul.mubr.msk.f32.gmra.mrb[4].mxu0 %vm382_vm0, %v307_v32  ;;  %v364_v22 = vld [vmem:[%s2225_s1 + $0xf0] sm:$0xff]  ;;  %v365_v23 = vld [vmem:[%s2225_s1 + $0xf8] sm:$0xff]  ;;  %v2065_v29 = vld [vmem:[%s2228_s4] ss:$0 sm:$0xff]  ;;  %p1675_p2 = scmp.lt.s32.totalorder %s1673_s11, %s1667_s27 }
  0x2a   : > { %1561 = vmatpush3.bf16.msra.mxu1 %v1558_v25  ;;  %1507 = vmatprep.mubr.msk.f32.mxu0 %vm382_vm0, %v308_v33 }
  0x2b   : > { %p1676_p3 = por %p1675_p2, %p1674_p1 }
  0x2d   : > { %1435 = vmatmul.mubr.msk.f32.vlgmr.msra.gmra.mrb[0].mxu1 %vm382_vm0, %v335_v30  ;;  %1508 = vmatmul.mubr.msk.f32.gmra.mrb[6].mxu0 %vm382_vm0, %v309_v36  ;;  %p1677_p5 = pnand %p1676_p3, %p1670_p0 }
  0x2e   : > { %1437 = vmatprep.mubr.msk.f32.mxu1 %vm382_vm0, %v336_v31  ;;  %1510 = vmatprep.mubr.msk.f32.mxu0 %vm382_vm0, %v310_v37 }
  0x31   : > { %1438 = vmatmul.mubr.msk.f32.gmra.mrb[2].mxu1 %vm382_vm0, %v337_v34  ;;  %1511 = vmatmul.mubr.msk.f32.gmra.mrb[8].mxu0 %vm382_vm0, %v311_v40 }
  0x32   : > { %1440 = vmatprep.mubr.msk.f32.mxu1 %vm382_vm0, %v338_v35  ;;  %1513 = vmatprep.mubr.msk.f32.mxu0 %vm382_vm0, %v312_v41 }
  0x35   : > { %1441 = vmatmul.mubr.msk.f32.gmra.mrb[4].mxu1 %vm382_vm0, %v339_v38  ;;  %1514 = vmatmul.mubr.msk.f32.gmra.mrb[10].mxu0 %vm382_vm0, %v313_v44 }
  0x36   : > { %1443 = vmatprep.mubr.msk.f32.mxu1 %vm382_vm0, %v340_v39  ;;  %1516 = vmatprep.mubr.msk.f32.mxu0 %vm382_vm0, %v314_v45 }
  0x39   : > { %1444 = vmatmul.mubr.msk.f32.gmra.mrb[6].mxu1 %vm382_vm0, %v341_v42  ;;  %1517 = vmatmul.mubr.msk.f32.gmra.mrb[12].mxu0 %vm382_vm0, %v315_v48 }
  0x3a   : > { %1446 = vmatprep.mubr.msk.f32.mxu1 %vm382_vm0, %v342_v43  ;;  %1519 = vmatprep.mubr.msk.f32.mxu0 %vm382_vm0, %v316_v49 }
  0x3d   : > { %1447 = vmatmul.mubr.msk.f32.gmra.mrb[8].mxu1 %vm382_vm0, %v343_v46  ;;  %1520 = vmatmul.mubr.msk.f32.gmra.mrb[14].mxu0 %vm382_vm0, %v317_v52 }
  0x3e   : > { %1449 = vmatprep.mubr.msk.f32.mxu1 %vm382_vm0, %v344_v47  ;;  %1522 = vmatprep.mubr.msk.f32.mxu0 %vm382_vm0, %v318_v53 }
  0x41   : > { %1450 = vmatmul.mubr.msk.f32.gmra.mrb[10].mxu1 %vm382_vm0, %v345_v50  ;;  %1523 = vmatmul.mubr.msk.f32.gmra.mrb[16].mxu0 %vm382_vm0, %v319_v56 }
  0x42   : > { %1452 = vmatprep.mubr.msk.f32.mxu1 %vm382_vm0, %v346_v51  ;;  %1525 = vmatprep.mubr.msk.f32.mxu0 %vm382_vm0, %v320_v57 }
  0x45   : > { %1453 = vmatmul.mubr.msk.f32.gmra.mrb[12].mxu1 %vm382_vm0, %v347_v54  ;;  %1526 = vmatmul.mubr.msk.f32.gmra.mrb[18].mxu0 %vm382_vm0, %v321_v60 }
  0x46   : > { %1455 = vmatprep.mubr.msk.f32.mxu1 %vm382_vm0, %v348_v55  ;;  %1528 = vmatprep.mubr.msk.f32.mxu0 %vm382_vm0, %v322_v61 }
  0x49   : > { %1456 = vmatmul.mubr.msk.f32.gmra.mrb[14].mxu1 %vm382_vm0, %v349_v58  ;;  %1529 = vmatmul.mubr.msk.f32.gmra.mrb[20].mxu0 %vm382_vm0, %v323_v0 }
  0x4a   : > { %1458 = vmatprep.mubr.msk.f32.mxu1 %vm382_vm0, %v350_v59  ;;  %1531 = vmatprep.mubr.msk.f32.mxu0 %vm382_vm0, %v324_v1 }
  0x4d   : > { %1459 = vmatmul.mubr.msk.f32.gmra.mrb[16].mxu1 %vm382_vm0, %v351_v62  ;;  %1532 = vmatmul.mubr.msk.f32.gmra.mrb[22].mxu0 %vm382_vm0, %v325_v4 }
  0x4e   : > { %1461 = vmatprep.mubr.msk.f32.mxu1 %vm382_vm0, %v352_v63  ;;  %1534 = vmatprep.mubr.msk.f32.mxu0 %vm382_vm0, %v326_v5 }
  0x51   : > { %1462 = vmatmul.mubr.msk.f32.gmra.mrb[18].mxu1 %vm382_vm0, %v353_v2  ;;  %1535 = vmatmul.mubr.msk.f32.gmra.mrb[24].mxu0 %vm382_vm0, %v327_v8 }
  0x52   : > { %1464 = vmatprep.mubr.msk.f32.mxu1 %vm382_vm0, %v354_v3  ;;  %1537 = vmatprep.mubr.msk.f32.mxu0 %vm382_vm0, %v328_v9 }
  0x55   : > { %1465 = vmatmul.mubr.msk.f32.gmra.mrb[20].mxu1 %vm382_vm0, %v355_v6  ;;  %1538 = vmatmul.mubr.msk.f32.gmra.mrb[26].mxu0 %vm382_vm0, %v329_v12 }
  0x56   : > { %1467 = vmatprep.mubr.msk.f32.mxu1 %vm382_vm0, %v356_v7  ;;  %1540 = vmatprep.mubr.msk.f32.mxu0 %vm382_vm0, %v330_v13 }
  0x59   : > { %1468 = vmatmul.mubr.msk.f32.gmra.mrb[22].mxu1 %vm382_vm0, %v357_v10  ;;  %1541 = vmatmul.mubr.msk.f32.gmra.mrb[28].mxu0 %vm382_vm0, %v331_v16 }
  0x5a   : > { %1470 = vmatprep.mubr.msk.f32.mxu1 %vm382_vm0, %v358_v11  ;;  %1543 = vmatprep.mubr.msk.f32.mxu0 %vm382_vm0, %v332_v17 }
  0x5d   : > { %1471 = vmatmul.mubr.msk.f32.gmra.mrb[24].mxu1 %vm382_vm0, %v359_v14  ;;  %1544 = vmatmul.mubr.msk.f32.gmra.mrb[30].mxu0 %vm382_vm0, %v333_v20 }
  0x5e   : > { %1473 = vmatprep.mubr.msk.f32.mxu1 %vm382_vm0, %v360_v15 }
  0x61   : > { %1474 = vmatmul.mubr.msk.f32.gmra.mrb[26].mxu1 %vm382_vm0, %v361_v18 }
  0x62   : > { %1476 = vmatprep.mubr.msk.f32.mxu1 %vm382_vm0, %v362_v19 }
  0x65   : > { %1477 = vmatmul.mubr.msk.f32.gmra.mrb[28].mxu1 %vm382_vm0, %v363_v21 }
  0x66   : > { %1479 = vmatprep.mubr.msk.f32.mxu1 %vm382_vm0, %v364_v22 }
  0x69   : > { %1480 = vmatmul.mubr.msk.f32.gmra.mrb[30].mxu1 %vm382_vm0, %v365_v23 }
  0xf4   : > { %v1500_v24 = vpop.f32.mrb[0].mxu0 }
  0xf5   : > { %v866_v25 = vpop.f32.mrb[1].mxu0 }
  0xf8   : > { %v1503_v26 = vpop.f32.mrb[2].mxu0 }
  0xf9   : > { %v876_v27 = vpop.f32.mrb[3].mxu0 }
  0xfc   : > { %v1506_v33 = vpop.f32.mrb[4].mxu0 }
  0xfd   : > { %v886_v35 = vpop.f32.mrb[5].mxu0 }
 0x100   : > { %v1436_v28 = vpop.f32.mrb[0].mxu1  ;;  %v1509_v43 = vpop.f32.mrb[6].mxu0 }
 0x101   : > { %v872_v30 = vadd.f32 %v1500_v24, %v1436_v28  ;;  %v545_v31 = vpop.f32.mrb[1].mxu1  ;;  %v896_v45 = vpop.f32.mrb[7].mxu0 }
 0x102   : > { %v867_v32 = vadd.f32 %v866_v25, %v545_v31 }
 0x103   : > { %v1033_v34 = vadd.f32 %v2065_v29, %v872_v30 }
 0x104   : > { %v1032_v36 = vadd.f32 %v2065_v29, %v867_v32  ;;  %v1439_v37 = vpop.f32.mrb[2].mxu1  ;;  %v1512_v53 = vpop.f32.mrb[8].mxu0 }
 0x105   : > { %v1065_v38 = vmax.f32 %v1033_v34, 0.0  ;;  %v882_v39 = vadd.f32 %v1503_v26, %v1439_v37  ;;  %v555_v40 = vpop.f32.mrb[3].mxu1  ;;  %v906_v55 = vpop.f32.mrb[9].mxu0 }
 0x106   : > { %v1064_v41 = vmax.f32 %v1032_v36, 0.0  ;;  %v877_v42 = vadd.f32 %v876_v27, %v555_v40 }
 0x107   : > { %1097 = vst.msk [vmem:[%s2071_s14 + $0x8] sm:$0xff] %vm382_vm0, %v1065_v38  ;;  %v1035_v44 = vadd.f32 %v2065_v29, %v882_v39 }
 0x108   : > { %1096 = vst.msk [vmem:[%s2071_s14] sm:$0xff] %vm382_vm0, %v1064_v41  ;;  %v1034_v46 = vadd.f32 %v2065_v29, %v877_v42  ;;  %v1442_v47 = vpop.f32.mrb[4].mxu1  ;;  %v1515_v63 = vpop.f32.mrb[10].mxu0 }
 0x109   : > { %v1067_v48 = vmax.f32 %v1035_v44, 0.0  ;;  %v892_v49 = vadd.f32 %v1506_v33, %v1442_v47  ;;  %v565_v50 = vpop.f32.mrb[5].mxu1  ;;  %v916_v1 = vpop.f32.mrb[11].mxu0 }
 0x10a   : > { %v1066_v51 = vmax.f32 %v1034_v46, 0.0  ;;  %v887_v52 = vadd.f32 %v886_v35, %v565_v50 }
 0x10b   : > { %1099 = vst.msk [vmem:[%s2071_s14 + $0x18] sm:$0xff] %vm382_vm0, %v1067_v48  ;;  %v1037_v54 = vadd.f32 %v2065_v29, %v892_v49 }
 0x10c   : > { %1098 = vst.msk [vmem:[%s2071_s14 + $0x10] sm:$0xff] %vm382_vm0, %v1066_v51  ;;  %v1036_v56 = vadd.f32 %v2065_v29, %v887_v52  ;;  %v1445_v57 = vpop.f32.mrb[6].mxu1  ;;  %v1518_v9 = vpop.f32.mrb[12].mxu0 }
 0x10d   : > { %v1069_v58 = vmax.f32 %v1037_v54, 0.0  ;;  %v902_v59 = vadd.f32 %v1509_v43, %v1445_v57  ;;  %v575_v60 = vpop.f32.mrb[7].mxu1  ;;  %v926_v11 = vpop.f32.mrb[13].mxu0 }
 0x10e   : > { %v1068_v61 = vmax.f32 %v1036_v56, 0.0  ;;  %v897_v62 = vadd.f32 %v896_v45, %v575_v60 }
 0x10f   : > { %1101 = vst.msk [vmem:[%s2071_s14 + $0x28] sm:$0xff] %vm382_vm0, %v1069_v58  ;;  %v1039_v0 = vadd.f32 %v2065_v29, %v902_v59 }
 0x110   : > { %1100 = vst.msk [vmem:[%s2071_s14 + $0x20] sm:$0xff] %vm382_vm0, %v1068_v61  ;;  %v1038_v2 = vadd.f32 %v2065_v29, %v897_v62  ;;  %v1448_v3 = vpop.f32.mrb[8].mxu1  ;;  %v1521_v19 = vpop.f32.mrb[14].mxu0 }
 0x111   : > { %v1071_v4 = vmax.f32 %v1039_v0, 0.0  ;;  %v912_v5 = vadd.f32 %v1512_v53, %v1448_v3  ;;  %v585_v6 = vpop.f32.mrb[9].mxu1  ;;  %v936_v21 = vpop.f32.mrb[15].mxu0 }
 0x112   : > { %v1070_v7 = vmax.f32 %v1038_v2, 0.0  ;;  %v907_v8 = vadd.f32 %v906_v55, %v585_v6 }
 0x113   : > { %1103 = vst.msk [vmem:[%s2071_s14 + $0x38] sm:$0xff] %vm382_vm0, %v1071_v4  ;;  %v1041_v10 = vadd.f32 %v2065_v29, %v912_v5 }
 0x114   : > { %1102 = vst.msk [vmem:[%s2071_s14 + $0x30] sm:$0xff] %vm382_vm0, %v1070_v7  ;;  %v1040_v12 = vadd.f32 %v2065_v29, %v907_v8  ;;  %v1451_v13 = vpop.f32.mrb[10].mxu1  ;;  %v1524_v30 = vpop.f32.mrb[16].mxu0 }
 0x115   : > { %v1073_v14 = vmax.f32 %v1041_v10, 0.0  ;;  %v922_v15 = vadd.f32 %v1515_v63, %v1451_v13  ;;  %v595_v16 = vpop.f32.mrb[11].mxu1  ;;  %v946_v32 = vpop.f32.mrb[17].mxu0 }
 0x116   : > { %v1072_v17 = vmax.f32 %v1040_v12, 0.0  ;;  %v917_v18 = vadd.f32 %v916_v1, %v595_v16 }
 0x117   : > { %1105 = vst.msk [vmem:[%s2071_s14 + $0x48] sm:$0xff] %vm382_vm0, %v1073_v14  ;;  %v1043_v20 = vadd.f32 %v2065_v29, %v922_v15 }
 0x118   : > { %1104 = vst.msk [vmem:[%s2071_s14 + $0x40] sm:$0xff] %vm382_vm0, %v1072_v17  ;;  %v1042_v22 = vadd.f32 %v2065_v29, %v917_v18  ;;  %v1454_v23 = vpop.f32.mrb[12].mxu1  ;;  %v1527_v40 = vpop.f32.mrb[18].mxu0 }
 0x119   : > { %v1075_v24 = vmax.f32 %v1043_v20, 0.0  ;;  %v932_v25 = vadd.f32 %v1518_v9, %v1454_v23  ;;  %v605_v26 = vpop.f32.mrb[13].mxu1  ;;  %v956_v42 = vpop.f32.mrb[19].mxu0 }
 0x11a   : > { %v1074_v27 = vmax.f32 %v1042_v22, 0.0  ;;  %v927_v28 = vadd.f32 %v926_v11, %v605_v26 }
 0x11b   : > { %1107 = vst.msk [vmem:[%s2071_s14 + $0x58] sm:$0xff] %vm382_vm0, %v1075_v24  ;;  %v1045_v31 = vadd.f32 %v2065_v29, %v932_v25 }
 0x11c   : > { %1106 = vst.msk [vmem:[%s2071_s14 + $0x50] sm:$0xff] %vm382_vm0, %v1074_v27  ;;  %v1044_v33 = vadd.f32 %v2065_v29, %v927_v28  ;;  %v1457_v34 = vpop.f32.mrb[14].mxu1  ;;  %v1530_v50 = vpop.f32.mrb[20].mxu0 }
 0x11d   : > { %v1077_v35 = vmax.f32 %v1045_v31, 0.0  ;;  %v942_v36 = vadd.f32 %v1521_v19, %v1457_v34  ;;  %v615_v37 = vpop.f32.mrb[15].mxu1  ;;  %v966_v52 = vpop.f32.mrb[21].mxu0 }
 0x11e   : > { %v1076_v38 = vmax.f32 %v1044_v33, 0.0  ;;  %v937_v39 = vadd.f32 %v936_v21, %v615_v37 }
 0x11f   : > { %1109 = vst.msk [vmem:[%s2071_s14 + $0x68] sm:$0xff] %vm382_vm0, %v1077_v35  ;;  %v1047_v41 = vadd.f32 %v2065_v29, %v942_v36 }
 0x120   : > { %1108 = vst.msk [vmem:[%s2071_s14 + $0x60] sm:$0xff] %vm382_vm0, %v1076_v38  ;;  %v1046_v43 = vadd.f32 %v2065_v29, %v937_v39  ;;  %v1460_v44 = vpop.f32.mrb[16].mxu1  ;;  %v1533_v60 = vpop.f32.mrb[22].mxu0 }
 0x121   : > { %v1079_v45 = vmax.f32 %v1047_v41, 0.0  ;;  %v952_v46 = vadd.f32 %v1524_v30, %v1460_v44  ;;  %v625_v47 = vpop.f32.mrb[17].mxu1  ;;  %v976_v62 = vpop.f32.mrb[23].mxu0 }
 0x122   : > { %v1078_v48 = vmax.f32 %v1046_v43, 0.0  ;;  %v947_v49 = vadd.f32 %v946_v32, %v625_v47 }
 0x123   : > { %1111 = vst.msk [vmem:[%s2071_s14 + $0x78] sm:$0xff] %vm382_vm0, %v1079_v45  ;;  %v1049_v51 = vadd.f32 %v2065_v29, %v952_v46 }
 0x124   : > { %1110 = vst.msk [vmem:[%s2071_s14 + $0x70] sm:$0xff] %vm382_vm0, %v1078_v48  ;;  %v1048_v53 = vadd.f32 %v2065_v29, %v947_v49  ;;  %v1463_v54 = vpop.f32.mrb[18].mxu1  ;;  %v1536_v6 = vpop.f32.mrb[24].mxu0 }
 0x125   : > { %v1081_v55 = vmax.f32 %v1049_v51, 0.0  ;;  %v962_v56 = vadd.f32 %v1527_v40, %v1463_v54  ;;  %v635_v57 = vpop.f32.mrb[19].mxu1  ;;  %v986_v8 = vpop.f32.mrb[25].mxu0 }
 0x126   : > { %v1080_v58 = vmax.f32 %v1048_v53, 0.0  ;;  %v957_v59 = vadd.f32 %v956_v42, %v635_v57 }
 0x127   : > { %1113 = vst.msk [vmem:[%s2071_s14 + $0x88] sm:$0xff] %vm382_vm0, %v1081_v55  ;;  %v1051_v61 = vadd.f32 %v2065_v29, %v962_v56 }
 0x128   : > { %1112 = vst.msk [vmem:[%s2071_s14 + $0x80] sm:$0xff] %vm382_vm0, %v1080_v58  ;;  %v1050_v63 = vadd.f32 %v2065_v29, %v957_v59  ;;  %v1466_v0 = vpop.f32.mrb[20].mxu1  ;;  %v1539_v16 = vpop.f32.mrb[26].mxu0 }
 0x129   : > { %v1083_v1 = vmax.f32 %v1051_v61, 0.0  ;;  %v972_v2 = vadd.f32 %v1530_v50, %v1466_v0  ;;  %v645_v3 = vpop.f32.mrb[21].mxu1  ;;  %v996_v18 = vpop.f32.mrb[27].mxu0 }
 0x12a   : > { %v1082_v4 = vmax.f32 %v1050_v63, 0.0  ;;  %v967_v5 = vadd.f32 %v966_v52, %v645_v3 }
 0x12b   : > { %1115 = vst.msk [vmem:[%s2071_s14 + $0x98] sm:$0xff] %vm382_vm0, %v1083_v1  ;;  %v1053_v7 = vadd.f32 %v2065_v29, %v972_v2 }
 0x12c   : > { %1114 = vst.msk [vmem:[%s2071_s14 + $0x90] sm:$0xff] %vm382_vm0, %v1082_v4  ;;  %v1052_v9 = vadd.f32 %v2065_v29, %v967_v5  ;;  %v1469_v10 = vpop.f32.mrb[22].mxu1  ;;  %v1542_v26 = vpop.f32.mrb[28].mxu0 }
 0x12d   : > { %v1085_v11 = vmax.f32 %v1053_v7, 0.0  ;;  %v982_v12 = vadd.f32 %v1533_v60, %v1469_v10  ;;  %v655_v13 = vpop.f32.mrb[23].mxu1  ;;  %v1006_v28 = vpop.f32.mrb[29].mxu0 }
 0x12e   : > { %v1084_v14 = vmax.f32 %v1052_v9, 0.0  ;;  %v977_v15 = vadd.f32 %v976_v62, %v655_v13 }
 0x12f   : > { %1117 = vst.msk [vmem:[%s2071_s14 + $0xa8] sm:$0xff] %vm382_vm0, %v1085_v11  ;;  %v1055_v17 = vadd.f32 %v2065_v29, %v982_v12 }
 0x130   : > { %1116 = vst.msk [vmem:[%s2071_s14 + $0xa0] sm:$0xff] %vm382_vm0, %v1084_v14  ;;  %v1054_v19 = vadd.f32 %v2065_v29, %v977_v15  ;;  %v1472_v20 = vpop.f32.mrb[24].mxu1  ;;  %v1545_v37 = vpop.f32.mrb[30].mxu0 }
 0x131   : > { %v1087_v21 = vmax.f32 %v1055_v17, 0.0  ;;  %v992_v22 = vadd.f32 %v1536_v6, %v1472_v20  ;;  %v665_v23 = vpop.f32.mrb[25].mxu1  ;;  %v1016_v39 = vpop.f32.mrb[31].mxu0 }
 0x132   : > { %v1086_v24 = vmax.f32 %v1054_v19, 0.0  ;;  %v987_v25 = vadd.f32 %v986_v8, %v665_v23 }
 0x133   : > { %1119 = vst.msk [vmem:[%s2071_s14 + $0xb8] sm:$0xff] %vm382_vm0, %v1087_v21  ;;  %v1057_v27 = vadd.f32 %v2065_v29, %v992_v22 }
 0x134   : > { %1118 = vst.msk [vmem:[%s2071_s14 + $0xb0] sm:$0xff] %vm382_vm0, %v1086_v24  ;;  %v1056_v30 = vadd.f32 %v2065_v29, %v987_v25  ;;  %v1475_v31 = vpop.f32.mrb[26].mxu1 }
 0x135   : > { %v1089_v32 = vmax.f32 %v1057_v27, 0.0  ;;  %v1002_v33 = vadd.f32 %v1539_v16, %v1475_v31  ;;  %v675_v34 = vpop.f32.mrb[27].mxu1 }
 0x136   : > { %v1088_v35 = vmax.f32 %v1056_v30, 0.0  ;;  %v997_v36 = vadd.f32 %v996_v18, %v675_v34 }
 0x137   : > { %1121 = vst.msk [vmem:[%s2071_s14 + $0xc8] sm:$0xff] %vm382_vm0, %v1089_v32  ;;  %v1059_v38 = vadd.f32 %v2065_v29, %v1002_v33 }
 0x138   : > { %1120 = vst.msk [vmem:[%s2071_s14 + $0xc0] sm:$0xff] %vm382_vm0, %v1088_v35  ;;  %v1058_v40 = vadd.f32 %v2065_v29, %v997_v36  ;;  %v1478_v41 = vpop.f32.mrb[28].mxu1 }
 0x139   : > { %v1091_v42 = vmax.f32 %v1059_v38, 0.0  ;;  %v1012_v43 = vadd.f32 %v1542_v26, %v1478_v41  ;;  %v685_v44 = vpop.f32.mrb[29].mxu1 }
 0x13a   : > { %v1090_v45 = vmax.f32 %v1058_v40, 0.0  ;;  %v1007_v46 = vadd.f32 %v1006_v28, %v685_v44 }
 0x13b   : > { %1123 = vst.msk [vmem:[%s2071_s14 + $0xd8] sm:$0xff] %vm382_vm0, %v1091_v42  ;;  %v1061_v47 = vadd.f32 %v2065_v29, %v1012_v43 }
 0x13c   : > { %1122 = vst.msk [vmem:[%s2071_s14 + $0xd0] sm:$0xff] %vm382_vm0, %v1090_v45  ;;  %v1060_v48 = vadd.f32 %v2065_v29, %v1007_v46  ;;  %v1481_v49 = vpop.f32.mrb[30].mxu1 }
 0x13d   : > { %v1093_v50 = vmax.f32 %v1061_v47, 0.0  ;;  %v1022_v51 = vadd.f32 %v1545_v37, %v1481_v49  ;;  %v695_v52 = vpop.f32.mrb[31].mxu1 }
 0x13e   : > { %v1092_v53 = vmax.f32 %v1060_v48, 0.0  ;;  %v1017_v54 = vadd.f32 %v1016_v39, %v695_v52 }
 0x13f   : > { %1125 = vst.msk [vmem:[%s2071_s14 + $0xe8] sm:$0xff] %vm382_vm0, %v1093_v50  ;;  %v1063_v55 = vadd.f32 %v2065_v29, %v1022_v51 }
 0x140   : > { %1124 = vst.msk [vmem:[%s2071_s14 + $0xe0] sm:$0xff] %vm382_vm0, %v1092_v53  ;;  %v1062_v56 = vadd.f32 %v2065_v29, %v1017_v54 }
 0x141   : > { %v1095_v57 = vmax.f32 %v1063_v55, 0.0 }
 0x142   : > { %v1094_v58 = vmax.f32 %v1062_v56, 0.0 }
 0x143   : > { %1127 = vst.msk [vmem:[%s2071_s14 + $0xf8] sm:$0xff] %vm382_vm0, %v1095_v57 }
 0x144   : > { %1126 = vst.msk [vmem:[%s2071_s14 + $0xf0] sm:$0xff] %vm382_vm0, %v1094_v58 }
 0x145   : > { %1680 = shalt.err (!%p1677_p5)
}
 0x146   : > { %s1681_s8 = scalar_lea.hbm %s2168_s15, 4096  ;;  %s1685_s12 = scalar_lea.hbm %s2229_s5, 8192 }
 0x147   : > { %p1682_p6 = scmp.ne.s32.totalorder %s2168_s15, %s1681_s8  ;;  %p1686_p10 = scmp.lt.u32.totalorder %s2168_s15, %s2229_s5 }
 0x148   : > { %p1687_p11 = scmp.lt.u32.totalorder %s1685_s12, %s1681_s8  ;;  %p1689_p13 = scmp.lt.u32.totalorder %s1681_s8, %s2168_s15 }
 0x149   : > { %p1683_p7 = pnand %p1682_p6, %p1820_p4 }
 0x14a   : > { %p1688_p12 = por %p1687_p11, %p1686_p10 }
 0x14b   : > { %p1684_p9 = pneg %p1683_p7 }
 0x14c   : > { %p1690_p0 = por %p1689_p13, %p1688_p12 }
 0x14e   : > { %p1691_p1 = pnand %p1690_p0, %p1684_p9 }
 0x150   : > { %1694 = shalt.err (!%p1691_p1)
}
 0x151   : > { %s1748_s16 = smov 128   ;;  %s1749_s24 = smov 8  }
 0x152   : > { %1610 = dma.vmem_to_hbm [thread:$0]  (%p1820_p4), %s2170_s17, 4096, %s2168_s15, %s2178_s21, %s1748_s16, %s1748_s16, %s1749_s24  }
 0x153 PF: > { %p1616_p2 = scmp.ge.s32.totalorder %s1745_s23, 2  ;;  %s1160_s25 = sand.u32 1, %s1725_s18  }
 0x154   : > { %s1161_s27 = scalar_lea.sflag [#allocation3], %s1160_s25 }
 0x155   : > { %p1613_p3 = pnand %p1616_p2, %p1827_p8 }
 0x157   : > { %1720 = dma.done.wait (!%p1613_p3), %s1161_s27, 4096  }
 0x158   : > { %1722 = vsyncadd (!%p1613_p3), %s1161_s27, 4294963200  ;;  %s18_s23 = sadd.s32 1, %s1745_s23   ;;  %s2232_s18 = smov %s1729_s19 }
 0x159   : > { %p15_p5 = scmp.ge.s32.totalorder %s18_s23, 4   ;;  %s2233_s19 = smov %s1733_s20 }
 0x15a   : > { %s2234_s20 = smov %s1833_s6  ;;  %s2235_s21 = smov %s1741_s22 }
 0x15b   : > { %s2236_s22 = smov %s2238_s26  ;;  %17 = sbr.rel (!%p15_p5) target bundleno = 4 (0x4), region = 81 }
 0x162   :  { %1166 = vsyncpa [#allocation3], 1 }
 0x163   :  { %1168 = vsyncpa [#allocation3 + $0x1], 1 }

</bundles_post_ra>
